<compile_context>
chip_gen: v5e
topology: v5e:2x2
jax: 0.10.0
libtpu: 0.0.40
codegen_flags: <defaults>
</compile_context>

<pallas_src>
import jax
import jax.numpy as jnp
from jax.experimental import pallas as pl
from jax.experimental.pallas import tpu as pltpu

BETA = 0.95
THRESHOLD = 1.0
NUM_INPUTS = 28 * 28      # 784
NUM_HIDDEN = 1000
NUM_OUTPUTS = 10
NUM_STEPS = 5

# 128-aligned padded sizes; zero padding contributes exactly 0 to every f32
# accumulation, so results are unchanged.
K_PAD = 896               # round_up(784, 128)
H_PAD = 1024              # round_up(1000, 128)


def _round_up(n, m):
    return (n + m - 1) // m * m


def lif_net_kernel(x_ref, w1_ref, b1_ref, w2_ref, b2_ref,
                   spk_out_ref, mem_out_ref, spk1_ref):
    tb = x_ref.shape[0]

    # fc1: input is constant across time -> single bf16 x bf16 -> f32 MXU matmul.
    cur1 = (jnp.dot(x_ref[...], w1_ref[...],
                    preferred_element_type=jnp.float32) + b1_ref[...])

    # lif1 recurrence (subtract reset). Membrane is an SSA value (lives in
    # vregs); per-step spikes are staged into one VMEM slab so fc2 can be
    # issued as a single matmul afterwards.
    mem1 = jnp.zeros_like(cur1)
    for t in range(NUM_STEPS):
        reset1 = (mem1 > THRESHOLD).astype(jnp.float32)
        mem1 = BETA * mem1 + cur1 - reset1 * THRESHOLD
        spk1_ref[t * tb:(t + 1) * tb, :] = (mem1 > THRESHOLD).astype(spk1_ref.dtype)

    # fc2 for all steps at once: M = NUM_STEPS*tb instead of five tiny matmuls.
    cur2_all = (jnp.dot(spk1_ref[...], w2_ref[...],
                        preferred_element_type=jnp.float32) + b2_ref[...])

    # lif2 recurrence with SSA membrane; outputs coalesced into lane-dense
    # (tb, NUM_STEPS*NUM_OUTPUTS) slabs (unscrambled in the JAX wrapper).
    mem2 = jnp.zeros((tb, NUM_OUTPUTS), jnp.float32)
    for t in range(NUM_STEPS):
        cur2 = cur2_all[t * tb:(t + 1) * tb, :]
        reset2 = (mem2 > THRESHOLD).astype(jnp.float32)
        mem2 = BETA * mem2 + cur2 - reset2 * THRESHOLD
        spk2 = (mem2 > THRESHOLD).astype(jnp.float32)
        spk_out_ref[:, t * NUM_OUTPUTS:(t + 1) * NUM_OUTPUTS] = spk2
        mem_out_ref[:, t * NUM_OUTPUTS:(t + 1) * NUM_OUTPUTS] = mem2

    # TODO(synk): the PyTorch module also appends per-layer spike/membrane
    # histories onto self.spk_rec / self.mem_rec (stateful side effect, not part
    # of the returned tensors); only the returned (spk_out, mem_out) of lif2 are
    # reproduced here.


@jax.jit
def lif_net_forward(x, w1_t, b1, w2_t, b2):
    """x:(B,784) f32; w1_t:(784,1000); b1:(1000,); w2_t:(1000,10); b2:(10,).

    Matmul operands are cast to bf16 (f32 accumulation); LIF dynamics stay f32.
    Returns (spk_out, mem_out), each (NUM_STEPS, B, 10) f32.
    """
    B = x.shape[0]
    TB = min(128, _round_up(B, 8))        # batch tile (multiple of 8 sublanes)
    BP = _round_up(B, TB)
    num_blocks = BP // TB
    out_cols = NUM_STEPS * NUM_OUTPUTS

    # Zero-pad to aligned shapes; cast matmul operands to bf16.
    x_p = jnp.zeros((BP, K_PAD), jnp.bfloat16).at[:B, :NUM_INPUTS].set(
        x.astype(jnp.bfloat16))
    w1_p = jnp.zeros((K_PAD, H_PAD), jnp.bfloat16).at[:NUM_INPUTS, :NUM_HIDDEN].set(
        w1_t.astype(jnp.bfloat16))
    b1_p = jnp.zeros((1, H_PAD), jnp.float32).at[:, :NUM_HIDDEN].set(
        b1.astype(jnp.float32))
    w2_p = jnp.zeros((H_PAD, NUM_OUTPUTS), jnp.bfloat16).at[:NUM_HIDDEN, :].set(
        w2_t.astype(jnp.bfloat16))
    b2_p = b2.astype(jnp.float32).reshape(1, NUM_OUTPUTS)

    flops = (2 * BP * K_PAD * H_PAD
             + 2 * (NUM_STEPS * BP) * H_PAD * NUM_OUTPUTS
             + 8 * NUM_STEPS * BP * (H_PAD + NUM_OUTPUTS))
    bytes_accessed = (x_p.size * 2 + w1_p.size * 2 + w2_p.size * 2
                      + b1_p.size * 4 + b2_p.size * 4
                      + 2 * BP * out_cols * 4)

    spk_flat, mem_flat = pl.pallas_call(
        lif_net_kernel,
        out_shape=(
            jax.ShapeDtypeStruct((BP, out_cols), jnp.float32),
            jax.ShapeDtypeStruct((BP, out_cols), jnp.float32),
        ),
        grid_spec=pltpu.PrefetchScalarGridSpec(
            num_scalar_prefetch=0,
            grid=(num_blocks,),
            in_specs=[
                pl.BlockSpec((TB, K_PAD), lambda i: (i, 0)),           # x streams
                pl.BlockSpec((K_PAD, H_PAD), lambda i: (0, 0)),        # w1 resident
                pl.BlockSpec((1, H_PAD), lambda i: (0, 0)),            # b1 resident
                pl.BlockSpec((H_PAD, NUM_OUTPUTS), lambda i: (0, 0)),  # w2 resident
                pl.BlockSpec((1, NUM_OUTPUTS), lambda i: (0, 0)),      # b2 resident
            ],
            out_specs=(
                pl.BlockSpec((TB, out_cols), lambda i: (i, 0)),
                pl.BlockSpec((TB, out_cols), lambda i: (i, 0)),
            ),
            scratch_shapes=[
                pltpu.VMEM((NUM_STEPS * TB, H_PAD), jnp.bfloat16),     # staged spk1
            ],
        ),
        compiler_params=pltpu.CompilerParams(
            dimension_semantics=("parallel",)),
        cost_estimate=pl.CostEstimate(
            flops=flops, transcendentals=0, bytes_accessed=bytes_accessed),
    )(x_p, w1_p, b1_p, w2_p, b2_p)

    # (BP, steps*10) -> (steps, B, 10)
    spk = spk_flat[:B].reshape(B, NUM_STEPS, NUM_OUTPUTS).transpose(1, 0, 2)
    mem = mem_flat[:B].reshape(B, NUM_STEPS, NUM_OUTPUTS).transpose(1, 0, 2)
    return spk, mem


def _reference_forward(x, w1_t, b1, w2_t, b2):
    """Pure-JAX reference with the same bf16-matmul / f32-dynamics precision."""
    B = x.shape[0]
    xb = x.astype(jnp.bfloat16)
    w1b = w1_t.astype(jnp.bfloat16)
    w2b = w2_t.astype(jnp.bfloat16)
    mem1 = jnp.zeros((B, NUM_HIDDEN), jnp.float32)
    mem2 = jnp.zeros((B, NUM_OUTPUTS), jnp.float32)
    cur1 = jnp.dot(xb, w1b, preferred_element_type=jnp.float32) + b1
    spks, mems = [], []
    for _ in range(NUM_STEPS):
        reset1 = (mem1 > THRESHOLD).astype(jnp.float32)
        mem1 = BETA * mem1 + cur1 - reset1 * THRESHOLD
        spk1 = (mem1 > THRESHOLD).astype(jnp.bfloat16)
        cur2 = jnp.dot(spk1, w2b, preferred_element_type=jnp.float32) + b2
        reset2 = (mem2 > THRESHOLD).astype(jnp.float32)
        mem2 = BETA * mem2 + cur2 - reset2 * THRESHOLD
        spk2 = (mem2 > THRESHOLD).astype(jnp.float32)
        spks.append(spk2)
        mems.append(mem2)
    return jnp.stack(spks, 0), jnp.stack(mems, 0)


if __name__ == "__main__":
    key = jax.random.PRNGKey(0)
    kx, kw1, kb1, kw2, kb2 = jax.random.split(key, 5)

    batch = 2
    x = jax.random.normal(kx, (batch, NUM_INPUTS), dtype=jnp.float32)

    # PyTorch-Linear-style init: U(-1/sqrt(fan_in), 1/sqrt(fan_in)).
    bound1 = 1.0 / (NUM_INPUTS ** 0.5)
    w1_t = jax.random.uniform(kw1, (NUM_INPUTS, NUM_HIDDEN), jnp.float32,
                              -bound1, bound1)
    b1 = jax.random.uniform(kb1, (NUM_HIDDEN,), jnp.float32, -bound1, bound1)
    bound2 = 1.0 / (NUM_HIDDEN ** 0.5)
    w2_t = jax.random.uniform(kw2, (NUM_HIDDEN, NUM_OUTPUTS), jnp.float32,
                              -bound2, bound2)
    b2 = jax.random.uniform(kb2, (NUM_OUTPUTS,), jnp.float32, -bound2, bound2)

    spk_out, mem_out = lif_net_forward(x, w1_t, b1, w2_t, b2)
    jax.block_until_ready((spk_out, mem_out))

    spk_ref, mem_ref = _reference_forward(x, w1_t, b1, w2_t, b2)
    assert spk_out.shape == (NUM_STEPS, batch, NUM_OUTPUTS)
    assert mem_out.shape == (NUM_STEPS, batch, NUM_OUTPUTS)
    assert jnp.allclose(mem_out, mem_ref, atol=1e-4, rtol=1e-4)
    assert jnp.allclose(spk_out, spk_ref)

    print("KERNEL_OK")
</pallas_src>

<mosaic_0001>
module attributes {stable_mosaic.version = 11 : i64} {
  func.func @lif_net_kernel(%arg0: i32, %arg1: memref<8x896xbf16, #tpu.memory_space<vmem>>, %arg2: memref<896x1024xbf16, #tpu.memory_space<vmem>>, %arg3: memref<1x1024xf32, #tpu.memory_space<vmem>>, %arg4: memref<1024x10xbf16, #tpu.memory_space<vmem>>, %arg5: memref<1x10xf32, #tpu.memory_space<vmem>>, %arg6: memref<8x50xf32, #tpu.memory_space<vmem>>, %arg7: memref<8x50xf32, #tpu.memory_space<vmem>>, %arg8: memref<40x1024xbf16, #tpu.memory_space<vmem>>) attributes {dimension_semantics = [#tpu.dimension_semantics<parallel>], iteration_bounds = array<i64: 1>, scalar_prefetch = 0 : i64, scratch_operands = 1 : i64, tpu.core_type = #tpu.core_type<tc>, window_params = [{transform_indices = @transform_0, window_bounds = array<i64: 8, 896>}, {pipeline_mode = #tpu.pipeline_mode<synchronous>, transform_indices = @transform_1, window_bounds = array<i64: 896, 1024>}, {pipeline_mode = #tpu.pipeline_mode<synchronous>, transform_indices = @transform_2, window_bounds = array<i64: 1, 1024>}, {pipeline_mode = #tpu.pipeline_mode<synchronous>, transform_indices = @transform_3, window_bounds = array<i64: 1024, 10>}, {pipeline_mode = #tpu.pipeline_mode<synchronous>, transform_indices = @transform_4, window_bounds = array<i64: 1, 10>}, {transform_indices = @transform_5, window_bounds = array<i64: 8, 50>}, {transform_indices = @transform_6, window_bounds = array<i64: 8, 50>}]} {
    %c0 = arith.constant 0 : index
    %c0_0 = arith.constant 0 : index
    %0 = vector.load %arg1[%c0, %c0_0] : memref<8x896xbf16, #tpu.memory_space<vmem>>, vector<8x896xbf16>
    %c0_1 = arith.constant 0 : index
    %c0_2 = arith.constant 0 : index
    %1 = vector.load %arg2[%c0_1, %c0_2] : memref<896x1024xbf16, #tpu.memory_space<vmem>>, vector<896x1024xbf16>
    %cst = arith.constant dense<0.000000e+00> : vector<8x1024xf32>
    %2 = tpu.matmul %0, %1, %cst {dimension_numbers = #tpu.dot_dimension_numbers<[1], [0], [0], [1], [0, 0, 1, 1], [], []>} : vector<8x896xbf16>, vector<896x1024xbf16>, vector<8x1024xf32> -> vector<8x1024xf32>
    %c0_3 = arith.constant 0 : index
    %c0_4 = arith.constant 0 : index
    %3 = vector.load %arg3[%c0_3, %c0_4] : memref<1x1024xf32, #tpu.memory_space<vmem>>, vector<1x1024xf32>
    %4 = vector.broadcast %3 : vector<1x1024xf32> to vector<8x1024xf32>
    %5 = arith.addf %2, %4 : vector<8x1024xf32>
    %cst_5 = arith.constant 0.000000e+00 : f32
    %6 = vector.broadcast %cst_5 : f32 to vector<8x1024xf32>
    %cst_6 = arith.constant 1.000000e+00 : f32
    %7 = vector.broadcast %cst_6 : f32 to vector<8x1024xf32>
    %8 = arith.cmpf ogt, %6, %7 : vector<8x1024xf32>
    %9 = arith.extui %8 : vector<8x1024xi1> to vector<8x1024xi32>
    %10 = arith.sitofp %9 : vector<8x1024xi32> to vector<8x1024xf32>
    %cst_7 = arith.constant 0.949999988 : f32
    %11 = vector.broadcast %cst_7 : f32 to vector<8x1024xf32>
    %12 = arith.mulf %11, %6 : vector<8x1024xf32>
    %13 = arith.addf %12, %5 : vector<8x1024xf32>
    %cst_8 = arith.constant 1.000000e+00 : f32
    %14 = vector.broadcast %cst_8 : f32 to vector<8x1024xf32>
    %15 = arith.mulf %10, %14 : vector<8x1024xf32>
    %16 = arith.subf %13, %15 : vector<8x1024xf32>
    %cst_9 = arith.constant 1.000000e+00 : f32
    %17 = vector.broadcast %cst_9 : f32 to vector<8x1024xf32>
    %18 = arith.cmpf ogt, %16, %17 : vector<8x1024xf32>
    %19 = arith.extui %18 : vector<8x1024xi1> to vector<8x1024xi32>
    %20 = arith.sitofp %19 : vector<8x1024xi32> to vector<8x1024xf32>
    %21 = arith.truncf %20 : vector<8x1024xf32> to vector<8x1024xbf16>
    %c0_10 = arith.constant 0 : index
    %c0_11 = arith.constant 0 : index
    %22 = vector.load %arg8[%c0_10, %c0_11] : memref<40x1024xbf16, #tpu.memory_space<vmem>>, vector<8x1024xbf16>
    tpu.vector_store %arg8[%c0_10, %c0_11], %21 {strides = array<i32>} : memref<40x1024xbf16, #tpu.memory_space<vmem>>, vector<8x1024xbf16>,
    %cst_12 = arith.constant 1.000000e+00 : f32
    %23 = vector.broadcast %cst_12 : f32 to vector<8x1024xf32>
    %24 = arith.cmpf ogt, %16, %23 : vector<8x1024xf32>
    %25 = arith.extui %24 : vector<8x1024xi1> to vector<8x1024xi32>
    %26 = arith.sitofp %25 : vector<8x1024xi32> to vector<8x1024xf32>
    %cst_13 = arith.constant 0.949999988 : f32
    %27 = vector.broadcast %cst_13 : f32 to vector<8x1024xf32>
    %28 = arith.mulf %27, %16 : vector<8x1024xf32>
    %29 = arith.addf %28, %5 : vector<8x1024xf32>
    %cst_14 = arith.constant 1.000000e+00 : f32
    %30 = vector.broadcast %cst_14 : f32 to vector<8x1024xf32>
    %31 = arith.mulf %26, %30 : vector<8x1024xf32>
    %32 = arith.subf %29, %31 : vector<8x1024xf32>
    %cst_15 = arith.constant 1.000000e+00 : f32
    %33 = vector.broadcast %cst_15 : f32 to vector<8x1024xf32>
    %34 = arith.cmpf ogt, %32, %33 : vector<8x1024xf32>
    %35 = arith.extui %34 : vector<8x1024xi1> to vector<8x1024xi32>
    %36 = arith.sitofp %35 : vector<8x1024xi32> to vector<8x1024xf32>
    %37 = arith.truncf %36 : vector<8x1024xf32> to vector<8x1024xbf16>
    %c8 = arith.constant 8 : index
    %c0_16 = arith.constant 0 : index
    %38 = vector.load %arg8[%c8, %c0_16] : memref<40x1024xbf16, #tpu.memory_space<vmem>>, vector<8x1024xbf16>
    tpu.vector_store %arg8[%c8, %c0_16], %37 {strides = array<i32>} : memref<40x1024xbf16, #tpu.memory_space<vmem>>, vector<8x1024xbf16>,
    %cst_17 = arith.constant 1.000000e+00 : f32
    %39 = vector.broadcast %cst_17 : f32 to vector<8x1024xf32>
    %40 = arith.cmpf ogt, %32, %39 : vector<8x1024xf32>
    %41 = arith.extui %40 : vector<8x1024xi1> to vector<8x1024xi32>
    %42 = arith.sitofp %41 : vector<8x1024xi32> to vector<8x1024xf32>
    %cst_18 = arith.constant 0.949999988 : f32
    %43 = vector.broadcast %cst_18 : f32 to vector<8x1024xf32>
    %44 = arith.mulf %43, %32 : vector<8x1024xf32>
    %45 = arith.addf %44, %5 : vector<8x1024xf32>
    %cst_19 = arith.constant 1.000000e+00 : f32
    %46 = vector.broadcast %cst_19 : f32 to vector<8x1024xf32>
    %47 = arith.mulf %42, %46 : vector<8x1024xf32>
    %48 = arith.subf %45, %47 : vector<8x1024xf32>
    %cst_20 = arith.constant 1.000000e+00 : f32
    %49 = vector.broadcast %cst_20 : f32 to vector<8x1024xf32>
    %50 = arith.cmpf ogt, %48, %49 : vector<8x1024xf32>
    %51 = arith.extui %50 : vector<8x1024xi1> to vector<8x1024xi32>
    %52 = arith.sitofp %51 : vector<8x1024xi32> to vector<8x1024xf32>
    %53 = arith.truncf %52 : vector<8x1024xf32> to vector<8x1024xbf16>
    %c16 = arith.constant 16 : index
    %c0_21 = arith.constant 0 : index
    %54 = vector.load %arg8[%c16, %c0_21] : memref<40x1024xbf16, #tpu.memory_space<vmem>>, vector<8x1024xbf16>
    tpu.vector_store %arg8[%c16, %c0_21], %53 {strides = array<i32>} : memref<40x1024xbf16, #tpu.memory_space<vmem>>, vector<8x1024xbf16>,
    %cst_22 = arith.constant 1.000000e+00 : f32
    %55 = vector.broadcast %cst_22 : f32 to vector<8x1024xf32>
    %56 = arith.cmpf ogt, %48, %55 : vector<8x1024xf32>
    %57 = arith.extui %56 : vector<8x1024xi1> to vector<8x1024xi32>
    %58 = arith.sitofp %57 : vector<8x1024xi32> to vector<8x1024xf32>
    %cst_23 = arith.constant 0.949999988 : f32
    %59 = vector.broadcast %cst_23 : f32 to vector<8x1024xf32>
    %60 = arith.mulf %59, %48 : vector<8x1024xf32>
    %61 = arith.addf %60, %5 : vector<8x1024xf32>
    %cst_24 = arith.constant 1.000000e+00 : f32
    %62 = vector.broadcast %cst_24 : f32 to vector<8x1024xf32>
    %63 = arith.mulf %58, %62 : vector<8x1024xf32>
    %64 = arith.subf %61, %63 : vector<8x1024xf32>
    %cst_25 = arith.constant 1.000000e+00 : f32
    %65 = vector.broadcast %cst_25 : f32 to vector<8x1024xf32>
    %66 = arith.cmpf ogt, %64, %65 : vector<8x1024xf32>
    %67 = arith.extui %66 : vector<8x1024xi1> to vector<8x1024xi32>
    %68 = arith.sitofp %67 : vector<8x1024xi32> to vector<8x1024xf32>
    %69 = arith.truncf %68 : vector<8x1024xf32> to vector<8x1024xbf16>
    %c24 = arith.constant 24 : index
    %c0_26 = arith.constant 0 : index
    %70 = vector.load %arg8[%c24, %c0_26] : memref<40x1024xbf16, #tpu.memory_space<vmem>>, vector<8x1024xbf16>
    tpu.vector_store %arg8[%c24, %c0_26], %69 {strides = array<i32>} : memref<40x1024xbf16, #tpu.memory_space<vmem>>, vector<8x1024xbf16>,
    %cst_27 = arith.constant 1.000000e+00 : f32
    %71 = vector.broadcast %cst_27 : f32 to vector<8x1024xf32>
    %72 = arith.cmpf ogt, %64, %71 : vector<8x1024xf32>
    %73 = arith.extui %72 : vector<8x1024xi1> to vector<8x1024xi32>
    %74 = arith.sitofp %73 : vector<8x1024xi32> to vector<8x1024xf32>
    %cst_28 = arith.constant 0.949999988 : f32
    %75 = vector.broadcast %cst_28 : f32 to vector<8x1024xf32>
    %76 = arith.mulf %75, %64 : vector<8x1024xf32>
    %77 = arith.addf %76, %5 : vector<8x1024xf32>
    %cst_29 = arith.constant 1.000000e+00 : f32
    %78 = vector.broadcast %cst_29 : f32 to vector<8x1024xf32>
    %79 = arith.mulf %74, %78 : vector<8x1024xf32>
    %80 = arith.subf %77, %79 : vector<8x1024xf32>
    %cst_30 = arith.constant 1.000000e+00 : f32
    %81 = vector.broadcast %cst_30 : f32 to vector<8x1024xf32>
    %82 = arith.cmpf ogt, %80, %81 : vector<8x1024xf32>
    %83 = arith.extui %82 : vector<8x1024xi1> to vector<8x1024xi32>
    %84 = arith.sitofp %83 : vector<8x1024xi32> to vector<8x1024xf32>
    %85 = arith.truncf %84 : vector<8x1024xf32> to vector<8x1024xbf16>
    %c32 = arith.constant 32 : index
    %c0_31 = arith.constant 0 : index
    %86 = vector.load %arg8[%c32, %c0_31] : memref<40x1024xbf16, #tpu.memory_space<vmem>>, vector<8x1024xbf16>
    tpu.vector_store %arg8[%c32, %c0_31], %85 {strides = array<i32>} : memref<40x1024xbf16, #tpu.memory_space<vmem>>, vector<8x1024xbf16>,
    %c0_32 = arith.constant 0 : index
    %c0_33 = arith.constant 0 : index
    %87 = vector.load %arg8[%c0_32, %c0_33] : memref<40x1024xbf16, #tpu.memory_space<vmem>>, vector<40x1024xbf16>
    %c0_34 = arith.constant 0 : index
    %c0_35 = arith.constant 0 : index
    %88 = vector.load %arg4[%c0_34, %c0_35] : memref<1024x10xbf16, #tpu.memory_space<vmem>>, vector<1024x10xbf16>
    %cst_36 = arith.constant dense<0.000000e+00> : vector<40x10xf32>
    %89 = tpu.matmul %87, %88, %cst_36 {dimension_numbers = #tpu.dot_dimension_numbers<[1], [0], [0], [1], [0, 0, 1, 1], [], []>} : vector<40x1024xbf16>, vector<1024x10xbf16>, vector<40x10xf32> -> vector<40x10xf32>
    %c0_37 = arith.constant 0 : index
    %c0_38 = arith.constant 0 : index
    %90 = vector.load %arg5[%c0_37, %c0_38] : memref<1x10xf32, #tpu.memory_space<vmem>>, vector<1x10xf32>
    %91 = vector.broadcast %90 : vector<1x10xf32> to vector<40x10xf32>
    %92 = arith.addf %89, %91 : vector<40x10xf32>
    %cst_39 = arith.constant 0.000000e+00 : f32
    %93 = vector.broadcast %cst_39 : f32 to vector<8x10xf32>
    %94 = vector.extract_strided_slice %92 {offsets = [0, 0], sizes = [8, 10], strides = [1, 1]} : vector<40x10xf32> to vector<8x10xf32>
    %cst_40 = arith.constant 1.000000e+00 : f32
    %95 = vector.broadcast %cst_40 : f32 to vector<8x10xf32>
    %96 = arith.cmpf ogt, %93, %95 : vector<8x10xf32>
    %97 = arith.extui %96 : vector<8x10xi1> to vector<8x10xi32>
    %98 = arith.sitofp %97 : vector<8x10xi32> to vector<8x10xf32>
    %cst_41 = arith.constant 0.949999988 : f32
    %99 = vector.broadcast %cst_41 : f32 to vector<8x10xf32>
    %100 = arith.mulf %99, %93 : vector<8x10xf32>
    %101 = arith.addf %100, %94 : vector<8x10xf32>
    %cst_42 = arith.constant 1.000000e+00 : f32
    %102 = vector.broadcast %cst_42 : f32 to vector<8x10xf32>
    %103 = arith.mulf %98, %102 : vector<8x10xf32>
    %104 = arith.subf %101, %103 : vector<8x10xf32>
    %cst_43 = arith.constant 1.000000e+00 : f32
    %105 = vector.broadcast %cst_43 : f32 to vector<8x10xf32>
    %106 = arith.cmpf ogt, %104, %105 : vector<8x10xf32>
    %107 = arith.extui %106 : vector<8x10xi1> to vector<8x10xi32>
    %108 = arith.sitofp %107 : vector<8x10xi32> to vector<8x10xf32>
    %c0_44 = arith.constant 0 : index
    %c0_45 = arith.constant 0 : index
    %109 = vector.load %arg6[%c0_44, %c0_45] : memref<8x50xf32, #tpu.memory_space<vmem>>, vector<8x10xf32>
    tpu.vector_store %arg6[%c0_44, %c0_45], %108 {strides = array<i32>} : memref<8x50xf32, #tpu.memory_space<vmem>>, vector<8x10xf32>,
    %c0_46 = arith.constant 0 : index
    %c0_47 = arith.constant 0 : index
    %110 = vector.load %arg7[%c0_46, %c0_47] : memref<8x50xf32, #tpu.memory_space<vmem>>, vector<8x10xf32>
    tpu.vector_store %arg7[%c0_46, %c0_47], %104 {strides = array<i32>} : memref<8x50xf32, #tpu.memory_space<vmem>>, vector<8x10xf32>,
    %111 = vector.extract_strided_slice %92 {offsets = [8, 0], sizes = [8, 10], strides = [1, 1]} : vector<40x10xf32> to vector<8x10xf32>
    %cst_48 = arith.constant 1.000000e+00 : f32
    %112 = vector.broadcast %cst_48 : f32 to vector<8x10xf32>
    %113 = arith.cmpf ogt, %104, %112 : vector<8x10xf32>
    %114 = arith.extui %113 : vector<8x10xi1> to vector<8x10xi32>
    %115 = arith.sitofp %114 : vector<8x10xi32> to vector<8x10xf32>
    %cst_49 = arith.constant 0.949999988 : f32
    %116 = vector.broadcast %cst_49 : f32 to vector<8x10xf32>
    %117 = arith.mulf %116, %104 : vector<8x10xf32>
    %118 = arith.addf %117, %111 : vector<8x10xf32>
    %cst_50 = arith.constant 1.000000e+00 : f32
    %119 = vector.broadcast %cst_50 : f32 to vector<8x10xf32>
    %120 = arith.mulf %115, %119 : vector<8x10xf32>
    %121 = arith.subf %118, %120 : vector<8x10xf32>
    %cst_51 = arith.constant 1.000000e+00 : f32
    %122 = vector.broadcast %cst_51 : f32 to vector<8x10xf32>
    %123 = arith.cmpf ogt, %121, %122 : vector<8x10xf32>
    %124 = arith.extui %123 : vector<8x10xi1> to vector<8x10xi32>
    %125 = arith.sitofp %124 : vector<8x10xi32> to vector<8x10xf32>
    %c0_52 = arith.constant 0 : index
    %c10 = arith.constant 10 : index
    %126 = vector.load %arg6[%c0_52, %c10] : memref<8x50xf32, #tpu.memory_space<vmem>>, vector<8x10xf32>
    tpu.vector_store %arg6[%c0_52, %c10], %125 {strides = array<i32>} : memref<8x50xf32, #tpu.memory_space<vmem>>, vector<8x10xf32>,
    %c0_53 = arith.constant 0 : index
    %c10_54 = arith.constant 10 : index
    %127 = vector.load %arg7[%c0_53, %c10_54] : memref<8x50xf32, #tpu.memory_space<vmem>>, vector<8x10xf32>
    tpu.vector_store %arg7[%c0_53, %c10_54], %121 {strides = array<i32>} : memref<8x50xf32, #tpu.memory_space<vmem>>, vector<8x10xf32>,
    %128 = vector.extract_strided_slice %92 {offsets = [16, 0], sizes = [8, 10], strides = [1, 1]} : vector<40x10xf32> to vector<8x10xf32>
    %cst_55 = arith.constant 1.000000e+00 : f32
    %129 = vector.broadcast %cst_55 : f32 to vector<8x10xf32>
    %130 = arith.cmpf ogt, %121, %129 : vector<8x10xf32>
    %131 = arith.extui %130 : vector<8x10xi1> to vector<8x10xi32>
    %132 = arith.sitofp %131 : vector<8x10xi32> to vector<8x10xf32>
    %cst_56 = arith.constant 0.949999988 : f32
    %133 = vector.broadcast %cst_56 : f32 to vector<8x10xf32>
    %134 = arith.mulf %133, %121 : vector<8x10xf32>
    %135 = arith.addf %134, %128 : vector<8x10xf32>
    %cst_57 = arith.constant 1.000000e+00 : f32
    %136 = vector.broadcast %cst_57 : f32 to vector<8x10xf32>
    %137 = arith.mulf %132, %136 : vector<8x10xf32>
    %138 = arith.subf %135, %137 : vector<8x10xf32>
    %cst_58 = arith.constant 1.000000e+00 : f32
    %139 = vector.broadcast %cst_58 : f32 to vector<8x10xf32>
    %140 = arith.cmpf ogt, %138, %139 : vector<8x10xf32>
    %141 = arith.extui %140 : vector<8x10xi1> to vector<8x10xi32>
    %142 = arith.sitofp %141 : vector<8x10xi32> to vector<8x10xf32>
    %c0_59 = arith.constant 0 : index
    %c20 = arith.constant 20 : index
    %143 = vector.load %arg6[%c0_59, %c20] : memref<8x50xf32, #tpu.memory_space<vmem>>, vector<8x10xf32>
    tpu.vector_store %arg6[%c0_59, %c20], %142 {strides = array<i32>} : memref<8x50xf32, #tpu.memory_space<vmem>>, vector<8x10xf32>,
    %c0_60 = arith.constant 0 : index
    %c20_61 = arith.constant 20 : index
    %144 = vector.load %arg7[%c0_60, %c20_61] : memref<8x50xf32, #tpu.memory_space<vmem>>, vector<8x10xf32>
    tpu.vector_store %arg7[%c0_60, %c20_61], %138 {strides = array<i32>} : memref<8x50xf32, #tpu.memory_space<vmem>>, vector<8x10xf32>,
    %145 = vector.extract_strided_slice %92 {offsets = [24, 0], sizes = [8, 10], strides = [1, 1]} : vector<40x10xf32> to vector<8x10xf32>
    %cst_62 = arith.constant 1.000000e+00 : f32
    %146 = vector.broadcast %cst_62 : f32 to vector<8x10xf32>
    %147 = arith.cmpf ogt, %138, %146 : vector<8x10xf32>
    %148 = arith.extui %147 : vector<8x10xi1> to vector<8x10xi32>
    %149 = arith.sitofp %148 : vector<8x10xi32> to vector<8x10xf32>
    %cst_63 = arith.constant 0.949999988 : f32
    %150 = vector.broadcast %cst_63 : f32 to vector<8x10xf32>
    %151 = arith.mulf %150, %138 : vector<8x10xf32>
    %152 = arith.addf %151, %145 : vector<8x10xf32>
    %cst_64 = arith.constant 1.000000e+00 : f32
    %153 = vector.broadcast %cst_64 : f32 to vector<8x10xf32>
    %154 = arith.mulf %149, %153 : vector<8x10xf32>
    %155 = arith.subf %152, %154 : vector<8x10xf32>
    %cst_65 = arith.constant 1.000000e+00 : f32
    %156 = vector.broadcast %cst_65 : f32 to vector<8x10xf32>
    %157 = arith.cmpf ogt, %155, %156 : vector<8x10xf32>
    %158 = arith.extui %157 : vector<8x10xi1> to vector<8x10xi32>
    %159 = arith.sitofp %158 : vector<8x10xi32> to vector<8x10xf32>
    %c0_66 = arith.constant 0 : index
    %c30 = arith.constant 30 : index
    %160 = vector.load %arg6[%c0_66, %c30] : memref<8x50xf32, #tpu.memory_space<vmem>>, vector<8x10xf32>
    tpu.vector_store %arg6[%c0_66, %c30], %159 {strides = array<i32>} : memref<8x50xf32, #tpu.memory_space<vmem>>, vector<8x10xf32>,
    %c0_67 = arith.constant 0 : index
    %c30_68 = arith.constant 30 : index
    %161 = vector.load %arg7[%c0_67, %c30_68] : memref<8x50xf32, #tpu.memory_space<vmem>>, vector<8x10xf32>
    tpu.vector_store %arg7[%c0_67, %c30_68], %155 {strides = array<i32>} : memref<8x50xf32, #tpu.memory_space<vmem>>, vector<8x10xf32>,
    %162 = vector.extract_strided_slice %92 {offsets = [32, 0], sizes = [8, 10], strides = [1, 1]} : vector<40x10xf32> to vector<8x10xf32>
    %cst_69 = arith.constant 1.000000e+00 : f32
    %163 = vector.broadcast %cst_69 : f32 to vector<8x10xf32>
    %164 = arith.cmpf ogt, %155, %163 : vector<8x10xf32>
    %165 = arith.extui %164 : vector<8x10xi1> to vector<8x10xi32>
    %166 = arith.sitofp %165 : vector<8x10xi32> to vector<8x10xf32>
    %cst_70 = arith.constant 0.949999988 : f32
    %167 = vector.broadcast %cst_70 : f32 to vector<8x10xf32>
    %168 = arith.mulf %167, %155 : vector<8x10xf32>
    %169 = arith.addf %168, %162 : vector<8x10xf32>
    %cst_71 = arith.constant 1.000000e+00 : f32
    %170 = vector.broadcast %cst_71 : f32 to vector<8x10xf32>
    %171 = arith.mulf %166, %170 : vector<8x10xf32>
    %172 = arith.subf %169, %171 : vector<8x10xf32>
    %cst_72 = arith.constant 1.000000e+00 : f32
    %173 = vector.broadcast %cst_72 : f32 to vector<8x10xf32>
    %174 = arith.cmpf ogt, %172, %173 : vector<8x10xf32>
    %175 = arith.extui %174 : vector<8x10xi1> to vector<8x10xi32>
    %176 = arith.sitofp %175 : vector<8x10xi32> to vector<8x10xf32>
    %c0_73 = arith.constant 0 : index
    %c40 = arith.constant 40 : index
    %177 = vector.load %arg6[%c0_73, %c40] : memref<8x50xf32, #tpu.memory_space<vmem>>, vector<8x10xf32>
    tpu.vector_store %arg6[%c0_73, %c40], %176 {strides = array<i32>} : memref<8x50xf32, #tpu.memory_space<vmem>>, vector<8x10xf32>,
    %c0_74 = arith.constant 0 : index
    %c40_75 = arith.constant 40 : index
    %178 = vector.load %arg7[%c0_74, %c40_75] : memref<8x50xf32, #tpu.memory_space<vmem>>, vector<8x10xf32>
    tpu.vector_store %arg7[%c0_74, %c40_75], %172 {strides = array<i32>} : memref<8x50xf32, #tpu.memory_space<vmem>>, vector<8x10xf32>,
    return
  }
  func.func @transform_0(%arg0: i32) -> (i32, i32) {
    %c0_i32 = arith.constant 0 : i32
    %c0_i32_0 = arith.constant 0 : i32
    return %arg0, %c0_i32 : i32, i32
  }
  func.func @transform_1(%arg0: i32) -> (i32, i32) {
    %c0_i32 = arith.constant 0 : i32
    %c0_i32_0 = arith.constant 0 : i32
    %c0_i32_1 = arith.constant 0 : i32
    return %c0_i32, %c0_i32_0 : i32, i32
  }
  func.func @transform_2(%arg0: i32) -> (i32, i32) {
    %c0_i32 = arith.constant 0 : i32
    %c0_i32_0 = arith.constant 0 : i32
    %c0_i32_1 = arith.constant 0 : i32
    return %c0_i32, %c0_i32_0 : i32, i32
  }
  func.func @transform_3(%arg0: i32) -> (i32, i32) {
    %c0_i32 = arith.constant 0 : i32
    %c0_i32_0 = arith.constant 0 : i32
    %c0_i32_1 = arith.constant 0 : i32
    return %c0_i32, %c0_i32_0 : i32, i32
  }
  func.func @transform_4(%arg0: i32) -> (i32, i32) {
    %c0_i32 = arith.constant 0 : i32
    %c0_i32_0 = arith.constant 0 : i32
    %c0_i32_1 = arith.constant 0 : i32
    return %c0_i32, %c0_i32_0 : i32, i32
  }
  func.func @transform_5(%arg0: i32) -> (i32, i32) {
    %c0_i32 = arith.constant 0 : i32
    %c0_i32_0 = arith.constant 0 : i32
    return %arg0, %c0_i32 : i32, i32
  }
  func.func @transform_6(%arg0: i32) -> (i32, i32) {
    %c0_i32 = arith.constant 0 : i32
    %c0_i32_0 = arith.constant 0 : i32
    return %arg0, %c0_i32 : i32, i32
  }
}

</mosaic_0001>

<bundles_post_ra>
// kernel: lif_net_forward.1
= control target key start
LH: loop header
LB: loop body
LE: loop exit
PB: predicated region body
PF: predicated region fallthrough
CT: control target
= control target key end

     0   :  { %s7366_s11 = smov 10   ;;  %s7367_s12 = smov 20   ;;  %s10664_s1 = inlined_call_operand.vmem [shape: bf16[896,1024], index: 1, kind: input, shape index: {}]   ;;  %s10665_s0 = inlined_call_operand.vmem [shape: bf16[8,896], index: 0, kind: input, shape index: {}]   ;;  %s10666_s2 = inlined_call_operand.vmem [shape: f32[1,1024], index: 2, kind: input, shape index: {}]   ;;  %s10667_s3 = inlined_call_operand.vmem [shape: bf16[1024,10], index: 3, kind: input, shape index: {}]   ;;  %s10668_s4 = inlined_call_operand.vmem [shape: f32[1,10], index: 4, kind: input, shape index: {}]   ;;  %s10669_s6 = inlined_call_operand.vmem [shape: f32[8,50], index: 6, kind: output, shape index: {1}]   ;;  %s10670_s5 = inlined_call_operand.vmem [shape: f32[8,50], index: 5, kind: output, shape index: {0}]  }
   0x1   :  { %v4898_v0 = vld [vmem:[%s10664_s1 + $0x1c0] sm:$0xf]  ;;  %s7368_s13 = smov 30   ;;  %s7369_s14 = smov 40  }
   0x2   :  { %v6889_v1 = vld [vmem:[%s10664_s1 + $0x1dc] sm:$0xf0] }
   0x3   :  { %v5154_v2 = vld [vmem:[%s10664_s1 + $0x3c0] sm:$0xf]  ;;  %v4899_v3 = vor.u32 %v6889_v1, %v4898_v0 }
   0x4   :  { %v6953_v4 = vld [vmem:[%s10664_s1 + $0x3dc] sm:$0xf0] }
   0x5   :  { %v5410_v5 = vld [vmem:[%s10664_s1 + $0x5c0] sm:$0xf]  ;;  %v5155_v7 = vor.u32 %v6953_v4, %v5154_v2  ;;  %2757 = vmatpush.bf16.msra.mxu0 %v4899_v3 }
   0x6   :  { %v7017_v6 = vld [vmem:[%s10664_s1 + $0x5dc] sm:$0xf0] }
   0x7   :  { %v5411_v8 = vor.u32 %v7017_v6, %v5410_v5  ;;  %v5666_v9 = vld [vmem:[%s10664_s1 + $0x7c0] sm:$0xf]  ;;  %2770 = vmatpush.bf16.msra.mxu1 %v5155_v7 }
   0x8   :  { %v7081_v10 = vld [vmem:[%s10664_s1 + $0x7dc] sm:$0xf0] }
   0x9   :  { %v4866_v11 = vld [vmem:[%s10664_s1 + $0x180] sm:$0xf]  ;;  %v5667_v12 = vor.u32 %v7081_v10, %v5666_v9  ;;  %2783 = vmatpush.bf16.msra.mxu2 %v5411_v8 }
   0xa   :  { %v6881_v13 = vld [vmem:[%s10664_s1 + $0x19c] sm:$0xf0] }
   0xb   :  { %v5122_v14 = vld [vmem:[%s10664_s1 + $0x380] sm:$0xf]  ;;  %v4867_v16 = vor.u32 %v6881_v13, %v4866_v11  ;;  %2796 = vmatpush.bf16.msra.mxu3 %v5667_v12 }
   0xc   :  { %v6945_v15 = vld [vmem:[%s10664_s1 + $0x39c] sm:$0xf0] }
   0xd   :  { %v5123_v17 = vor.u32 %v6945_v15, %v5122_v14  ;;  %v5378_v18 = vld [vmem:[%s10664_s1 + $0x580] sm:$0xf]  ;;  %2758 = vmatpush.bf16.msra.mxu0 %v4867_v16 }
   0xe   :  { %v7009_v19 = vld [vmem:[%s10664_s1 + $0x59c] sm:$0xf0] }
   0xf   :  { %v5634_v20 = vld [vmem:[%s10664_s1 + $0x780] sm:$0xf]  ;;  %v5379_v21 = vor.u32 %v7009_v19, %v5378_v18  ;;  %2771 = vmatpush.bf16.msra.mxu1 %v5123_v17 }
  0x10   :  { %v7073_v22 = vld [vmem:[%s10664_s1 + $0x79c] sm:$0xf0] }
  0x11   :  { %v4834_v23 = vld [vmem:[%s10664_s1 + $0x140] sm:$0xf]  ;;  %v5635_v25 = vor.u32 %v7073_v22, %v5634_v20  ;;  %2784 = vmatpush.bf16.msra.mxu2 %v5379_v21 }
  0x12   :  { %v6873_v24 = vld [vmem:[%s10664_s1 + $0x15c] sm:$0xf0] }
  0x13   :  { %v5090_v26 = vld [vmem:[%s10664_s1 + $0x340] sm:$0xf]  ;;  %v4835_v29 = vor.u32 %v6873_v24, %v4834_v23  ;;  %2797 = vmatpush.bf16.msra.mxu3 %v5635_v25 }
  0x14   :  { %v6937_v27 = vld [vmem:[%s10664_s1 + $0x35c] sm:$0xf0] }
  0x15   :  { %v5346_v28 = vld [vmem:[%s10664_s1 + $0x540] sm:$0xf]  ;;  %v5091_v33 = vor.u32 %v6937_v27, %v5090_v26  ;;  %2759 = vmatpush.bf16.msra.mxu0 %v4835_v29 }
  0x16   :  { %v7001_v30 = vld [vmem:[%s10664_s1 + $0x55c] sm:$0xf0] }
  0x17   :  { %v5602_v31 = vld [vmem:[%s10664_s1 + $0x740] sm:$0xf]  ;;  %v5347_v34 = vor.u32 %v7001_v30, %v5346_v28  ;;  %2772 = vmatpush.bf16.msra.mxu1 %v5091_v33 }
  0x18   :  { %v7065_v32 = vld [vmem:[%s10664_s1 + $0x75c] sm:$0xf0] }
  0x19   :  { %v4802_v35 = vld [vmem:[%s10664_s1 + $0x100] sm:$0xf]  ;;  %v5603_v38 = vor.u32 %v7065_v32, %v5602_v31  ;;  %2785 = vmatpush.bf16.msra.mxu2 %v5347_v34 }
  0x1a   :  { %v6865_v36 = vld [vmem:[%s10664_s1 + $0x11c] sm:$0xf0] }
  0x1b   :  { %v5058_v37 = vld [vmem:[%s10664_s1 + $0x300] sm:$0xf]  ;;  %v4803_v44 = vor.u32 %v6865_v36, %v4802_v35  ;;  %2798 = vmatpush.bf16.msra.mxu3 %v5603_v38  ;;  %v4900_v38 = vld [vmem:[%s10664_s1 + $0x1e0] sm:$0xf0] }
  0x1c   :  { %v6929_v39 = vld [vmem:[%s10664_s1 + $0x31c] sm:$0xf0] }
  0x1d   :  { %v5314_v40 = vld [vmem:[%s10664_s1 + $0x500] sm:$0xf]  ;;  %v5059_v45 = vor.u32 %v6929_v39, %v5058_v37  ;;  %2760 = vmatpush.bf16.msra.mxu0 %v4803_v44  ;;  %v6885_v37 = vld [vmem:[%s10664_s1 + $0x1c4] sm:$0xf] }
  0x1e   :  { %v6993_v41 = vld [vmem:[%s10664_s1 + $0x51c] sm:$0xf0] }
  0x1f   :  { %v5570_v42 = vld [vmem:[%s10664_s1 + $0x700] sm:$0xf]  ;;  %v5315_v46 = vor.u32 %v6993_v41, %v5314_v40  ;;  %2773 = vmatpush.bf16.msra.mxu1 %v5059_v45 }
  0x20   :  { %v7057_v43 = vld [vmem:[%s10664_s1 + $0x71c] sm:$0xf0] }
  0x21   :  { %v4770_v47 = vld [vmem:[%s10664_s1 + $0xc0] sm:$0xf]  ;;  %v5571_v50 = vor.u32 %v7057_v43, %v5570_v42  ;;  %2786 = vmatpush.bf16.msra.mxu2 %v5315_v46  ;;  %v4903_v46 = vor.u32 %v6885_v37, %v4900_v38 }
  0x22   :  { %v6857_v48 = vld [vmem:[%s10664_s1 + $0xdc] sm:$0xf0] }
  0x23   :  { %v5026_v49 = vld [vmem:[%s10664_s1 + $0x2c0] sm:$0xf]  ;;  %v4771_v56 = vor.u32 %v6857_v48, %v4770_v47  ;;  %2799 = vmatpush.bf16.msra.mxu3 %v5571_v50  ;;  %v6877_v50 = vld [vmem:[%s10664_s1 + $0x184] sm:$0xf] }
  0x24   :  { %v6921_v51 = vld [vmem:[%s10664_s1 + $0x2dc] sm:$0xf0] }
  0x25   :  { %v5282_v52 = vld [vmem:[%s10664_s1 + $0x4c0] sm:$0xf]  ;;  %v5027_v57 = vor.u32 %v6921_v51, %v5026_v49  ;;  %2761 = vmatpush.bf16.msra.mxu0 %v4771_v56  ;;  %v4868_v51 = vld [vmem:[%s10664_s1 + $0x1a0] sm:$0xf0] }
  0x26   :  { %v6985_v53 = vld [vmem:[%s10664_s1 + $0x4dc] sm:$0xf0] }
  0x27   :  { %v5538_v54 = vld [vmem:[%s10664_s1 + $0x6c0] sm:$0xf]  ;;  %v5283_v58 = vor.u32 %v6985_v53, %v5282_v52  ;;  %2774 = vmatpush.bf16.msra.mxu1 %v5027_v57  ;;  %v23_v52 = vld [vmem:[%s10665_s0 + $0x8] sm:$0xff] }
  0x28   :  { %v7049_v55 = vld [vmem:[%s10664_s1 + $0x6dc] sm:$0xf0]  ;;  %v499_v56 = vunpack.c.h.b16 %v23_v52 }
  0x29   :  { %v4738_v59 = vld [vmem:[%s10664_s1 + $0x80] sm:$0xf]  ;;  %v5539_v62 = vor.u32 %v7049_v55, %v5538_v54  ;;  %2787 = vmatpush.bf16.msra.mxu2 %v5283_v58  ;;  %v498_v55 = vunpack.c.l.b16 %v23_v52 }
  0x2a   :  { %v6849_v60 = vld [vmem:[%s10664_s1 + $0x9c] sm:$0xf0] }
  0x2b   :  { %v4994_v61 = vld [vmem:[%s10664_s1 + $0x280] sm:$0xf]  ;;  %v4739_v4 = vor.u32 %v6849_v60, %v4738_v59  ;;  %2800 = vmatpush.bf16.msra.mxu3 %v5539_v62  ;;  %v4871_v62 = vor.u32 %v6877_v50, %v4868_v51 }
  0x2c   :  { %v6913_v63 = vld [vmem:[%s10664_s1 + $0x29c] sm:$0xf0] }
  0x2d   :  { %v5250_v0 = vld [vmem:[%s10664_s1 + $0x480] sm:$0xf]  ;;  %v4995_v5 = vor.u32 %v6913_v63, %v4994_v61  ;;  %2762 = vmatpush.bf16.msra.mxu0 %v4739_v4  ;;  %v4836_v4 = vld [vmem:[%s10664_s1 + $0x160] sm:$0xf0] }
  0x2e   :  { %v6977_v1 = vld [vmem:[%s10664_s1 + $0x49c] sm:$0xf0] }
  0x2f   :  { %v5506_v2 = vld [vmem:[%s10664_s1 + $0x680] sm:$0xf]  ;;  %v5251_v6 = vor.u32 %v6977_v1, %v5250_v0  ;;  %2775 = vmatpush.bf16.msra.mxu1 %v4995_v5  ;;  %v7666_v1 = vpack.c.b16 %v498_v55, %v498_v55 }
  0x30   :  { %v7041_v3 = vld [vmem:[%s10664_s1 + $0x69c] sm:$0xf0] }
  0x31   :  { %v4706_v7 = vld [vmem:[%s10664_s1 + $0x40] sm:$0xf]  ;;  %v5507_v10 = vor.u32 %v7041_v3, %v5506_v2  ;;  %2788 = vmatpush.bf16.msra.mxu2 %v5251_v6  ;;  %v6869_v3 = vld [vmem:[%s10664_s1 + $0x144] sm:$0xf] }
  0x32   :  { %v6841_v8 = vld [vmem:[%s10664_s1 + $0x5c] sm:$0xf0] }
  0x33   :  { %v4962_v9 = vld [vmem:[%s10664_s1 + $0x240] sm:$0xf]  ;;  %v4707_v16 = vor.u32 %v6841_v8, %v4706_v7  ;;  %2801 = vmatpush.bf16.msra.mxu3 %v5507_v10 }
  0x34   :  { %v6905_v11 = vld [vmem:[%s10664_s1 + $0x25c] sm:$0xf0] }
  0x35   :  { %v5218_v12 = vld [vmem:[%s10664_s1 + $0x440] sm:$0xf]  ;;  %v4963_v19 = vor.u32 %v6905_v11, %v4962_v9  ;;  %2763 = vmatpush.bf16.msra.mxu0 %v4707_v16  ;;  %v7678_v9 = vpack.c.b16 %v499_v56, %v499_v56  ;;  %v4839_v16 = vor.u32 %v6869_v3, %v4836_v4  ;;  %v6837_v56 = vld [vmem:[%s10664_s1 + $0x44] sm:$0xf]  ;;  %v25_v4 = vld [vmem:[%s10665_s0 + $0x18] sm:$0xf] }
  0x36   :  { %v6969_v13 = vld [vmem:[%s10664_s1 + $0x45c] sm:$0xf0] }
  0x37   :  { %v5474_v14 = vld [vmem:[%s10664_s1 + $0x640] sm:$0xf]  ;;  %v5219_v20 = vor.u32 %v6969_v13, %v5218_v12  ;;  %2776 = vmatpush.bf16.msra.mxu1 %v4963_v19 }
  0x38   :  { %v7033_v15 = vld [vmem:[%s10664_s1 + $0x65c] sm:$0xf0] }
  0x39   :  { %v4674_v17 = vld [vmem:[%s10664_s1] sm:$0xf]  ;;  %v5475_v24 = vor.u32 %v7033_v15, %v5474_v14  ;;  %2789 = vmatpush.bf16.msra.mxu2 %v5219_v20  ;;  %v6861_v20 = vld [vmem:[%s10664_s1 + $0x104] sm:$0xf] }
  0x3a   :  { %v6833_v18 = vld [vmem:[%s10664_s1 + $0x1c] sm:$0xf0] }
  0x3b   :  { %v4930_v21 = vld [vmem:[%s10664_s1 + $0x200] sm:$0xf]  ;;  %v4675_v31 = vor.u32 %v6833_v18, %v4674_v17  ;;  %2802 = vmatpush.bf16.msra.mxu3 %v5475_v24 }
  0x3c   :  { %v6897_v22 = vld [vmem:[%s10664_s1 + $0x21c] sm:$0xf0] }
  0x3d   :  { %v5186_v23 = vld [vmem:[%s10664_s1 + $0x400] sm:$0xf]  ;;  %v4931_v35 = vor.u32 %v6897_v22, %v4930_v21  ;;  %2764 = vmatpush.bf16.msra.mxu0 %v4675_v31  ;;  %v4804_v21 = vld [vmem:[%s10664_s1 + $0x120] sm:$0xf0] }
  0x3e   :  { %v6961_v25 = vld [vmem:[%s10664_s1 + $0x41c] sm:$0xf0] }
  0x3f   :  { %v5442_v26 = vld [vmem:[%s10664_s1 + $0x600] sm:$0xf]  ;;  %v5187_v36 = vor.u32 %v6961_v25, %v5186_v23  ;;  %2777 = vmatpush.bf16.msra.mxu1 %v4931_v35 }
  0x40   :  { %v7025_v27 = vld [vmem:[%s10664_s1 + $0x61c] sm:$0xf0] }
  0x41   :  { %v5922_v28 = vld [vmem:[%s10664_s1 + $0x9c0] sm:$0xf]  ;;  %v5443_v39 = vor.u32 %v7025_v27, %v5442_v26  ;;  %2790 = vmatpush.bf16.msra.mxu2 %v5187_v36 }
  0x42   :  { %v7145_v29 = vld [vmem:[%s10664_s1 + $0x9dc] sm:$0xf0] }
  0x43   :  { %v6178_v30 = vld [vmem:[%s10664_s1 + $0xbc0] sm:$0xf]  ;;  %v5923_v40 = vor.u32 %v7145_v29, %v5922_v28  ;;  %2803 = vmatpush.bf16.msra.mxu3 %v5443_v39  ;;  %v4807_v28 = vor.u32 %v6861_v20, %v4804_v21 }
  0x44   :  { %v7209_v32 = vld [vmem:[%s10664_s1 + $0xbdc] sm:$0xf0]  ;;  %2791 = vmatmul.bf16.vlgmr.msra.gmra.mxu2 %v7666_v1 }
  0x45   :  { %v6434_v33 = vld [vmem:[%s10664_s1 + $0xdc0] sm:$0xf]  ;;  %v6179_v41 = vor.u32 %v7209_v32, %v6178_v30  ;;  %2809 = vmatpush.bf16.msrb.mxu0 %v5923_v40  ;;  %v6853_v32 = vld [vmem:[%s10664_s1 + $0xc4] sm:$0xf] }
  0x46   :  { %v7273_v34 = vld [vmem:[%s10664_s1 + $0xddc] sm:$0xf0]  ;;  %2804 = vmatmul.bf16.vlgmr.msra.gmra.mxu3 %v7678_v9 }
  0x47   :  { %v6435_v42 = vor.u32 %v7273_v34, %v6434_v33  ;;  %v5890_v43 = vld [vmem:[%s10664_s1 + $0x980] sm:$0xf]  ;;  %2822 = vmatpush.bf16.msrb.mxu1 %v6179_v41  ;;  %2848 = vmatpush.bf16.msrb.mxu3 %v4903_v46  ;;  %v4772_v33 = vld [vmem:[%s10664_s1 + $0xe0] sm:$0xf0] }
  0x48   :  { %v7137_v44 = vld [vmem:[%s10664_s1 + $0x99c] sm:$0xf0]  ;;  %v4775_v40 = vor.u32 %v6853_v32, %v4772_v33  ;;  %v7005_v32 = vld [vmem:[%s10664_s1 + $0x584] sm:$0xf] }
  0x49   :  { %v6146_v45 = vld [vmem:[%s10664_s1 + $0xb80] sm:$0xf]  ;;  %v5891_v53 = vor.u32 %v7137_v44, %v5890_v43  ;;  %2835 = vmatpush.bf16.msrb.mxu2 %v6435_v42  ;;  %v6845_v44 = vld [vmem:[%s10664_s1 + $0x84] sm:$0xf] }
  0x4a   :  { %v7201_v47 = vld [vmem:[%s10664_s1 + $0xb9c] sm:$0xf0] }
  0x4b   :  { %v6402_v48 = vld [vmem:[%s10664_s1 + $0xd80] sm:$0xf]  ;;  %v6147_v57 = vor.u32 %v7201_v47, %v6146_v45  ;;  %2810 = vmatpush.bf16.msrb.mxu0 %v5891_v53  ;;  %2849 = vmatpush.bf16.msrb.mxu3 %v4871_v62  ;;  %v4740_v45 = vld [vmem:[%s10664_s1 + $0xa0] sm:$0xf0] }
  0x4c   :  { %v7265_v49 = vld [vmem:[%s10664_s1 + $0xd9c] sm:$0xf0]  ;;  %v4743_v52 = vor.u32 %v6845_v44, %v4740_v45  ;;  %v6933_v45 = vld [vmem:[%s10664_s1 + $0x344] sm:$0xf] }
  0x4d   :  { %v5858_v54 = vld [vmem:[%s10664_s1 + $0x940] sm:$0xf]  ;;  %v6403_v58 = vor.u32 %v7265_v49, %v6402_v48  ;;  %2823 = vmatpush.bf16.msrb.mxu1 %v6147_v57  ;;  %v4708_v57 = vld [vmem:[%s10664_s1 + $0x60] sm:$0xf0] }
  0x4e   :  { %v7129_v59 = vld [vmem:[%s10664_s1 + $0x95c] sm:$0xf0] }
  0x4f   :  { %v6114_v60 = vld [vmem:[%s10664_s1 + $0xb40] sm:$0xf]  ;;  %v5859_v7 = vor.u32 %v7129_v59, %v5858_v54  ;;  %2836 = vmatpush.bf16.msrb.mxu2 %v6403_v58  ;;  %2850 = vmatpush.bf16.msrb.mxu3 %v4839_v16  ;;  %v5412_v16 = vld [vmem:[%s10664_s1 + $0x5e0] sm:$0xf0] }
  0x50   :  { %v7193_v61 = vld [vmem:[%s10664_s1 + $0xb5c] sm:$0xf0] }
  0x51   :  { %v6370_v63 = vld [vmem:[%s10664_s1 + $0xd40] sm:$0xf]  ;;  %v6115_v8 = vor.u32 %v7193_v61, %v6114_v60  ;;  %2811 = vmatpush.bf16.msrb.mxu0 %v5859_v7  ;;  %v4676_v7 = vld [vmem:[%s10664_s1 + $0x20] sm:$0xf0] }
  0x52   :  { %v7257_v0 = vld [vmem:[%s10664_s1 + $0xd5c] sm:$0xf0] }
  0x53   :  { %v22_v2 = vld [vmem:[%s10665_s0] sm:$0xff]  ;;  %v6371_v10 = vor.u32 %v7257_v0, %v6370_v63  ;;  %2824 = vmatpush.bf16.msrb.mxu1 %v6115_v8  ;;  %2851 = vmatpush.bf16.msrb.mxu3 %v4807_v28  ;;  %v24_v8 = vld [vmem:[%s10665_s0 + $0x10] sm:$0xff] }
  0x54   :  { %v496_v5 = vunpack.c.l.b16 %v22_v2  ;;  %v497_v6 = vunpack.c.h.b16 %v22_v2  ;;  %v5826_v11 = vld [vmem:[%s10664_s1 + $0x900] sm:$0xf] }
  0x55   :  { %v7121_v12 = vld [vmem:[%s10664_s1 + $0x91c] sm:$0xf0]  ;;  %2837 = vmatpush.bf16.msrb.mxu2 %v6371_v10  ;;  %v6949_v10 = vld [vmem:[%s10664_s1 + $0x3c4] sm:$0xf] }
  0x56   :  { %v6082_v13 = vld [vmem:[%s10664_s1 + $0xb00] sm:$0xf]  ;;  %v7689_v14 = vpack.c.b16 %v496_v5, %v496_v5  ;;  %v7691_v15 = vpack.c.b16 %v497_v6, %v497_v6  ;;  %v5827_v22 = vor.u32 %v7121_v12, %v5826_v11  ;;  %v4711_v5 = vor.u32 %v6837_v56, %v4708_v57  ;;  %v6829_v6 = vld [vmem:[%s10664_s1 + $0x4] sm:$0xf] }
  0x57   :  { %v7185_v17 = vld [vmem:[%s10664_s1 + $0xb1c] sm:$0xf0]  ;;  %2852 = vmatpush.bf16.msrb.mxu3 %v4775_v40  ;;  %v5156_v11 = vld [vmem:[%s10664_s1 + $0x3e0] sm:$0xf0] }
  0x58   :  { %v6338_v18 = vld [vmem:[%s10664_s1 + $0xd00] sm:$0xf]  ;;  %2765 = vmatmul.bf16.vlgmr.msra.gmra.mxu0 %v7689_v14  ;;  %2778 = vmatmul.bf16.vlgmr.msra.gmra.mxu1 %v7691_v15  ;;  %v6083_v23 = vor.u32 %v7185_v17, %v6082_v13  ;;  %v7013_v12 = vld [vmem:[%s10664_s1 + $0x5c4] sm:$0xf] }
  0x59   :  { %v7249_v19 = vld [vmem:[%s10664_s1 + $0xd1c] sm:$0xf0]  ;;  %2812 = vmatpush.bf16.msrb.mxu0 %v5827_v22  ;;  %v7077_v17 = vld [vmem:[%s10664_s1 + $0x7c4] sm:$0xf]  ;;  %v5415_v28 = vor.u32 %v7013_v12, %v5412_v16 }
  0x5a   :  { %v6339_v24 = vor.u32 %v7249_v19, %v6338_v18  ;;  %v5794_v25 = vld [vmem:[%s10664_s1 + $0x8c0] sm:$0xf]  ;;  %2825 = vmatpush.bf16.msrb.mxu1 %v6083_v23  ;;  %v5668_v18 = vld [vmem:[%s10664_s1 + $0x7e0] sm:$0xf0]  ;;  %v502_v19 = vunpack.c.l.b16 %v25_v4 }
  0x5b   :  { %v7113_v26 = vld [vmem:[%s10664_s1 + $0x8dc] sm:$0xf0]  ;;  %2853 = vmatpush.bf16.msrb.mxu3 %v4743_v52  ;;  %v7141_v22 = vld [vmem:[%s10664_s1 + $0x9c4] sm:$0xf] }
  0x5c   :  { %v6050_v27 = vld [vmem:[%s10664_s1 + $0xac0] sm:$0xf]  ;;  %v5795_v34 = vor.u32 %v7113_v26, %v5794_v25  ;;  %2838 = vmatpush.bf16.msrb.mxu2 %v6339_v24  ;;  %v5924_v23 = vld [vmem:[%s10664_s1 + $0x9e0] sm:$0xf0]  ;;  %v500_v24 = vunpack.c.l.b16 %v24_v8  ;;  %v501_v25 = vunpack.c.h.b16 %v24_v8  ;;  %v4679_v26 = vor.u32 %v6829_v6, %v4676_v7 }
  0x5d   :  { %v7177_v29 = vld [vmem:[%s10664_s1 + $0xadc] sm:$0xf0]  ;;  %v5927_v33 = vor.u32 %v7141_v22, %v5924_v23  ;;  %v5892_v40 = vld [vmem:[%s10664_s1 + $0x9a0] sm:$0xf0] }
  0x5e   :  { %v6306_v30 = vld [vmem:[%s10664_s1 + $0xcc0] sm:$0xf]  ;;  %v6051_v35 = vor.u32 %v7177_v29, %v6050_v27  ;;  %2813 = vmatpush.bf16.msrb.mxu0 %v5795_v34  ;;  %v5159_v27 = vor.u32 %v6949_v10, %v5156_v11  ;;  %v5671_v29 = vor.u32 %v7077_v17, %v5668_v18  ;;  %v7846_v34 = vpack.c.b16 %v502_v19, %v502_v19  ;;  %v7125_v52 = vld [vmem:[%s10664_s1 + $0x944] sm:$0xf] }
  0x5f   :  { %v7241_v31 = vld [vmem:[%s10664_s1 + $0xcdc] sm:$0xf0]  ;;  %2854 = vmatpush.bf16.msrb.mxu3 %v4711_v5  ;;  %v6925_v57 = vld [vmem:[%s10664_s1 + $0x304] sm:$0xf] }
  0x60   :  { %v6307_v36 = vor.u32 %v7241_v31, %v6306_v30  ;;  %v5762_v37 = vld [vmem:[%s10664_s1 + $0x880] sm:$0xf]  ;;  %2826 = vmatpush.bf16.msrb.mxu1 %v6051_v35  ;;  %v6941_v30 = vld [vmem:[%s10664_s1 + $0x384] sm:$0xf] }
  0x61   :  { %v7105_v38 = vld [vmem:[%s10664_s1 + $0x89c] sm:$0xf0]  ;;  %v5124_v31 = vld [vmem:[%s10664_s1 + $0x3a0] sm:$0xf0] }
  0x62   :  { %v6018_v39 = vld [vmem:[%s10664_s1 + $0xa80] sm:$0xf]  ;;  %v5763_v46 = vor.u32 %v7105_v38, %v5762_v37  ;;  %2839 = vmatpush.bf16.msrb.mxu2 %v6307_v36  ;;  %v5380_v35 = vld [vmem:[%s10664_s1 + $0x5a0] sm:$0xf0]  ;;  %v7857_v38 = vpack.c.b16 %v500_v24, %v500_v24 }
  0x63   :  { %v7169_v41 = vld [vmem:[%s10664_s1 + $0xa9c] sm:$0xf0]  ;;  %v7069_v36 = vld [vmem:[%s10664_s1 + $0x784] sm:$0xf]  ;;  %2855 = vmatpush.bf16.msrb.mxu3 %v4679_v26 }
  0x64   :  { %v6274_v42 = vld [vmem:[%s10664_s1 + $0xc80] sm:$0xf]  ;;  %v6019_v47 = vor.u32 %v7169_v41, %v6018_v39  ;;  %2814 = vmatpush.bf16.msrb.mxu0 %v5763_v46  ;;  %v5636_v37 = vld [vmem:[%s10664_s1 + $0x7a0] sm:$0xf0]  ;;  %v7865_v41 = vpack.c.b16 %v501_v25, %v501_v25 }
  0x65   :  { %v7233_v43 = vld [vmem:[%s10664_s1 + $0xc9c] sm:$0xf0]  ;;  %v7133_v39 = vld [vmem:[%s10664_s1 + $0x984] sm:$0xf]  ;;  %v5639_v44 = vor.u32 %v7069_v36, %v5636_v37 }
  0x66   :  { %v6275_v48 = vor.u32 %v7233_v43, %v6274_v42  ;;  %v5730_v49 = vld [vmem:[%s10664_s1 + $0x840] sm:$0xf]  ;;  %2827 = vmatpush.bf16.msrb.mxu1 %v6019_v47  ;;  %v5127_v42 = vor.u32 %v6941_v30, %v5124_v31  ;;  %v5383_v43 = vor.u32 %v7005_v32, %v5380_v35  ;;  %v5092_v46 = vld [vmem:[%s10664_s1 + $0x360] sm:$0xf0]  ;;  %2856 = vmatmul.bf16.vlgmr.msrb.gmra.mxu3 %v7689_v14 }
  0x67   :  { %v7097_v50 = vld [vmem:[%s10664_s1 + $0x85c] sm:$0xf0]  ;;  %v6997_v47 = vld [vmem:[%s10664_s1 + $0x544] sm:$0xf]  ;;  %2900 = vmatpush.bf16.msra.mxu3 %v5927_v33 }
  0x68   :  { %v5986_v51 = vld [vmem:[%s10664_s1 + $0xa40] sm:$0xf]  ;;  %v5731_v59 = vor.u32 %v7097_v50, %v5730_v49  ;;  %2840 = vmatpush.bf16.msrb.mxu2 %v6275_v48  ;;  %v5895_v48 = vor.u32 %v7133_v39, %v5892_v40  ;;  %v5348_v49 = vld [vmem:[%s10664_s1 + $0x560] sm:$0xf0] }
  0x69   :  { %v7161_v53 = vld [vmem:[%s10664_s1 + $0xa5c] sm:$0xf0]  ;;  %v7061_v50 = vld [vmem:[%s10664_s1 + $0x744] sm:$0xf] }
  0x6a   :  { %v6242_v54 = vld [vmem:[%s10664_s1 + $0xc40] sm:$0xf]  ;;  %v5987_v63 = vor.u32 %v7161_v53, %v5986_v51  ;;  %2815 = vmatpush.bf16.msrb.mxu0 %v5731_v59  ;;  %v5604_v51 = vld [vmem:[%s10664_s1 + $0x760] sm:$0xf0] }
  0x6b   :  { %v7225_v55 = vld [vmem:[%s10664_s1 + $0xc5c] sm:$0xf0]  ;;  %v5860_v53 = vld [vmem:[%s10664_s1 + $0x960] sm:$0xf0]  ;;  %v5607_v56 = vor.u32 %v7061_v50, %v5604_v51  ;;  %2901 = vmatpush.bf16.msra.mxu3 %v5895_v48 }
  0x6c   :  { %v5698_v58 = vld [vmem:[%s10664_s1 + $0x800] sm:$0xf]  ;;  %v6243_v0 = vor.u32 %v7225_v55, %v6242_v54  ;;  %2828 = vmatpush.bf16.msrb.mxu1 %v5987_v63  ;;  %v5095_v54 = vor.u32 %v6933_v45, %v5092_v46  ;;  %v5351_v55 = vor.u32 %v6997_v47, %v5348_v49  ;;  %v6989_v59 = vld [vmem:[%s10664_s1 + $0x504] sm:$0xf] }
  0x6d   :  { %v7089_v60 = vld [vmem:[%s10664_s1 + $0x81c] sm:$0xf0]  ;;  %v5572_v63 = vld [vmem:[%s10664_s1 + $0x720] sm:$0xf0] }
  0x6e   :  { %v5954_v61 = vld [vmem:[%s10664_s1 + $0xa00] sm:$0xf]  ;;  %v5699_v13 = vor.u32 %v7089_v60, %v5698_v58  ;;  %2841 = vmatpush.bf16.msrb.mxu2 %v6243_v0  ;;  %v5060_v58 = vld [vmem:[%s10664_s1 + $0x320] sm:$0xf0]  ;;  %v5863_v60 = vor.u32 %v7125_v52, %v5860_v53 }
  0x6f   :  { %v7153_v62 = vld [vmem:[%s10664_s1 + $0xa1c] sm:$0xf0]  ;;  %v7117_v0 = vld [vmem:[%s10664_s1 + $0x904] sm:$0xf] }
  0x70   :  { %v6210_v2 = vld [vmem:[%s10664_s1 + $0xc00] sm:$0xf]  ;;  %v5955_v20 = vor.u32 %v7153_v62, %v5954_v61  ;;  %2816 = vmatpush.bf16.msrb.mxu0 %v5699_v13  ;;  %v5316_v61 = vld [vmem:[%s10664_s1 + $0x520] sm:$0xf0]  ;;  %2902 = vmatpush.bf16.msra.mxu3 %v5863_v60 }
  0x71   :  { %v7217_v3 = vld [vmem:[%s10664_s1 + $0xc1c] sm:$0xf0]  ;;  %v7053_v62 = vld [vmem:[%s10664_s1 + $0x704] sm:$0xf]  ;;  %v5319_v4 = vor.u32 %v6989_v59, %v5316_v61 }
  0x72   :  { %v6211_v21 = vor.u32 %v7217_v3, %v6210_v2  ;;  %2829 = vmatpush.bf16.msrb.mxu1 %v5955_v20  ;;  %v5828_v2 = vld [vmem:[%s10664_s1 + $0x920] sm:$0xf0]  ;;  %v5063_v3 = vor.u32 %v6925_v57, %v5060_v58  ;;  %v5575_v5 = vor.u32 %v7053_v62, %v5572_v63  ;;  %v4906_v62 = vld [vmem:[%s10664_s1 + $0x1c8] sm:$0xf] }
  0x73   :  { %2817 = vmatmul.bf16.vlgmr.msrb.gmra.mxu0 %v7857_v38  ;;  %v6917_v6 = vld [vmem:[%s10664_s1 + $0x2c4] sm:$0xf]  ;;  %v5831_v10 = vor.u32 %v7117_v0, %v5828_v2  ;;  %v6890_v63 = vld [vmem:[%s10664_s1 + $0x1e4] sm:$0xf0] }
  0x74   :  { %2842 = vmatpush.bf16.msrb.mxu2 %v6211_v21  ;;  %2861 = vmatpush.bf16.msra.mxu0 %v5159_v27  ;;  %v5028_v7 = vld [vmem:[%s10664_s1 + $0x2e0] sm:$0xf0] }
  0x75   :  { %2830 = vmatmul.bf16.vlgmr.msrb.gmra.mxu1 %v7865_v41  ;;  %v6981_v8 = vld [vmem:[%s10664_s1 + $0x4c4] sm:$0xf]  ;;  %v5031_v18 = vor.u32 %v6917_v6, %v5028_v7  ;;  %2903 = vmatpush.bf16.msra.mxu3 %v5831_v10 }
  0x76   :  { %2874 = vmatpush.bf16.msra.mxu1 %v5415_v28  ;;  %v5284_v11 = vld [vmem:[%s10664_s1 + $0x4e0] sm:$0xf0] }
  0x77   :  { %2843 = vmatmul.bf16.vlgmr.msrb.gmra.mxu2 %v7846_v34  ;;  %v7045_v12 = vld [vmem:[%s10664_s1 + $0x6c4] sm:$0xf]  ;;  %v5287_v19 = vor.u32 %v6981_v8, %v5284_v11  ;;  %v4907_v8 = vor.u32 %v6890_v63, %v4906_v62 }
  0x78   :  { %2887 = vmatpush.bf16.msra.mxu2 %v5671_v29  ;;  %2862 = vmatpush.bf16.msra.mxu0 %v5127_v42  ;;  %v5540_v13 = vld [vmem:[%s10664_s1 + $0x6e0] sm:$0xf0] }
  0x79   :  { %v7109_v16 = vld [vmem:[%s10664_s1 + $0x8c4] sm:$0xf]  ;;  %v5543_v20 = vor.u32 %v7045_v12, %v5540_v13 }
  0x7a   :  { %2875 = vmatpush.bf16.msra.mxu1 %v5383_v43  ;;  %v5796_v17 = vld [vmem:[%s10664_s1 + $0x8e0] sm:$0xf0] }
  0x7b   :  { %v6909_v21 = vld [vmem:[%s10664_s1 + $0x284] sm:$0xf]  ;;  %v5799_v24 = vor.u32 %v7109_v16, %v5796_v17  ;;  %v4874_v17 = vld [vmem:[%s10664_s1 + $0x188] sm:$0xf] }
  0x7c   :  { %2888 = vmatpush.bf16.msra.mxu2 %v5639_v44  ;;  %2863 = vmatpush.bf16.msra.mxu0 %v5095_v54  ;;  %v4996_v22 = vld [vmem:[%s10664_s1 + $0x2a0] sm:$0xf0] }
  0x7d   :  { %v6973_v23 = vld [vmem:[%s10664_s1 + $0x484] sm:$0xf]  ;;  %v4999_v30 = vor.u32 %v6909_v21, %v4996_v22  ;;  %2904 = vmatpush.bf16.msra.mxu3 %v5799_v24 }
  0x7e   :  { %2876 = vmatpush.bf16.msra.mxu1 %v5351_v55  ;;  %v5252_v25 = vld [vmem:[%s10664_s1 + $0x4a0] sm:$0xf0] }
  0x7f   :  { %v7037_v26 = vld [vmem:[%s10664_s1 + $0x684] sm:$0xf]  ;;  %v5255_v31 = vor.u32 %v6973_v23, %v5252_v25 }
  0x80   :  { %2889 = vmatpush.bf16.msra.mxu2 %v5607_v56  ;;  %2864 = vmatpush.bf16.msra.mxu0 %v5063_v3  ;;  %v5508_v27 = vld [vmem:[%s10664_s1 + $0x6a0] sm:$0xf0]  ;;  %v5162_v3 = vld [vmem:[%s10664_s1 + $0x3c8] sm:$0xf] }
  0x81   :  { %v7101_v28 = vld [vmem:[%s10664_s1 + $0x884] sm:$0xf]  ;;  %v5511_v32 = vor.u32 %v7037_v26, %v5508_v27 }
  0x82   :  { %2877 = vmatpush.bf16.msra.mxu1 %v5319_v4  ;;  %v5764_v29 = vld [vmem:[%s10664_s1 + $0x8a0] sm:$0xf0]  ;;  %v6954_v4 = vld [vmem:[%s10664_s1 + $0x3e4] sm:$0xf0] }
  0x83   :  { %v6901_v33 = vld [vmem:[%s10664_s1 + $0x244] sm:$0xf]  ;;  %v5767_v37 = vor.u32 %v7101_v28, %v5764_v29  ;;  %v5163_v13 = vor.u32 %v6954_v4, %v5162_v3  ;;  %v4842_v29 = vld [vmem:[%s10664_s1 + $0x148] sm:$0xf] }
  0x84   :  { %2890 = vmatpush.bf16.msra.mxu2 %v5575_v5  ;;  %2865 = vmatpush.bf16.msra.mxu0 %v5031_v18  ;;  %v4964_v35 = vld [vmem:[%s10664_s1 + $0x260] sm:$0xf0]  ;;  %v6882_v18 = vld [vmem:[%s10664_s1 + $0x1a4] sm:$0xf0] }
  0x85   :  { %v6965_v36 = vld [vmem:[%s10664_s1 + $0x444] sm:$0xf]  ;;  %v4967_v45 = vor.u32 %v6901_v33, %v4964_v35  ;;  %2905 = vmatpush.bf16.msra.mxu3 %v5767_v37  ;;  %v4875_v23 = vor.u32 %v6882_v18, %v4874_v17 }
  0x86   :  { %2878 = vmatpush.bf16.msra.mxu1 %v5287_v19  ;;  %v5220_v39 = vld [vmem:[%s10664_s1 + $0x460] sm:$0xf0]  ;;  %v5130_v19 = vld [vmem:[%s10664_s1 + $0x388] sm:$0xf] }
  0x87   :  { %v7029_v40 = vld [vmem:[%s10664_s1 + $0x644] sm:$0xf]  ;;  %v5223_v48 = vor.u32 %v6965_v36, %v5220_v39 }
  0x88   :  { %2891 = vmatpush.bf16.msra.mxu2 %v5543_v20  ;;  %v5476_v42 = vld [vmem:[%s10664_s1 + $0x660] sm:$0xf0]  ;;  %2866 = vmatpush.bf16.msra.mxu0 %v4999_v30  ;;  %v6946_v20 = vld [vmem:[%s10664_s1 + $0x3a4] sm:$0xf0] }
  0x89   :  { %v7093_v43 = vld [vmem:[%s10664_s1 + $0x844] sm:$0xf]  ;;  %v5479_v49 = vor.u32 %v7029_v40, %v5476_v42  ;;  %v5131_v27 = vor.u32 %v6946_v20, %v5130_v19  ;;  %v6874_v30 = vld [vmem:[%s10664_s1 + $0x164] sm:$0xf0] }
  0x8a   :  { %v5732_v44 = vld [vmem:[%s10664_s1 + $0x860] sm:$0xf0]  ;;  %2879 = vmatpush.bf16.msra.mxu1 %v5255_v31  ;;  %v5098_v31 = vld [vmem:[%s10664_s1 + $0x348] sm:$0xf]  ;;  %v4843_v36 = vor.u32 %v6874_v30, %v4842_v29 }
  0x8b   :  { %v6893_v46 = vld [vmem:[%s10664_s1 + $0x204] sm:$0xf]  ;;  %v5735_v53 = vor.u32 %v7093_v43, %v5732_v44  ;;  %v4810_v44 = vld [vmem:[%s10664_s1 + $0x108] sm:$0xf] }
  0x8c   :  { %v4932_v47 = vld [vmem:[%s10664_s1 + $0x220] sm:$0xf0]  ;;  %2892 = vmatpush.bf16.msra.mxu2 %v5511_v32  ;;  %2867 = vmatpush.bf16.msra.mxu0 %v4967_v45  ;;  %v6938_v32 = vld [vmem:[%s10664_s1 + $0x364] sm:$0xf0] }
  0x8d   :  { %v6957_v50 = vld [vmem:[%s10664_s1 + $0x404] sm:$0xf]  ;;  %v4935_v60 = vor.u32 %v6893_v46, %v4932_v47  ;;  %2906 = vmatpush.bf16.msra.mxu3 %v5735_v53  ;;  %v5099_v42 = vor.u32 %v6938_v32, %v5098_v31  ;;  %v6866_v45 = vld [vmem:[%s10664_s1 + $0x124] sm:$0xf0] }
  0x8e   :  { %v5188_v51 = vld [vmem:[%s10664_s1 + $0x420] sm:$0xf0]  ;;  %2880 = vmatpush.bf16.msra.mxu1 %v5223_v48  ;;  %v5066_v46 = vld [vmem:[%s10664_s1 + $0x308] sm:$0xf] }
  0x8f   :  { %v7021_v52 = vld [vmem:[%s10664_s1 + $0x604] sm:$0xf]  ;;  %v5191_v0 = vor.u32 %v6957_v50, %v5188_v51  ;;  %v6930_v47 = vld [vmem:[%s10664_s1 + $0x324] sm:$0xf0]  ;;  %v4811_v50 = vor.u32 %v6866_v45, %v4810_v44 }
  0x90   :  { %v5444_v54 = vld [vmem:[%s10664_s1 + $0x620] sm:$0xf0]  ;;  %2893 = vmatpush.bf16.msra.mxu2 %v5479_v49  ;;  %2868 = vmatpush.bf16.msra.mxu0 %v4935_v60  ;;  %v4714_v20 = vld [vmem:[%s10664_s1 + $0x48] sm:$0xf] }
  0x91   :  { %v7085_v55 = vld [vmem:[%s10664_s1 + $0x804] sm:$0xf]  ;;  %v5447_v2 = vor.u32 %v7021_v52, %v5444_v54  ;;  %v5067_v54 = vor.u32 %v6930_v47, %v5066_v46  ;;  %v4682_v31 = vld [vmem:[%s10664_s1 + $0x8] sm:$0xf] }
  0x92   :  { %v5700_v56 = vld [vmem:[%s10664_s1 + $0x820] sm:$0xf0]  ;;  %2881 = vmatpush.bf16.msra.mxu1 %v5191_v0  ;;  %v5930_v44 = vld [vmem:[%s10664_s1 + $0x9c8] sm:$0xf] }
  0x93   :  { %v7205_v57 = vld [vmem:[%s10664_s1 + $0xbc4] sm:$0xf]  ;;  %v5703_v5 = vor.u32 %v7085_v55, %v5700_v56  ;;  %2869 = vmatmul.bf16.vlgmr.msra.gmra.mxu0 %v7691_v15  ;;  %v4778_v56 = vld [vmem:[%s10664_s1 + $0xc8] sm:$0xf] }
  0x94   :  { %v6180_v58 = vld [vmem:[%s10664_s1 + $0xbe0] sm:$0xf0]  ;;  %2894 = vmatpush.bf16.msra.mxu2 %v5447_v2  ;;  %v7146_v45 = vld [vmem:[%s10664_s1 + $0x9e4] sm:$0xf0] }
  0x95   :  { %v7269_v59 = vld [vmem:[%s10664_s1 + $0xdc4] sm:$0xf]  ;;  %v6183_v6 = vor.u32 %v7205_v57, %v6180_v58  ;;  %2907 = vmatpush.bf16.msra.mxu3 %v5703_v5  ;;  %2882 = vmatmul.bf16.vlgmr.msra.gmra.mxu1 %v7666_v1  ;;  %v6858_v57 = vld [vmem:[%s10664_s1 + $0xe4] sm:$0xf0] }
  0x96   :  { %v6436_v61 = vld [vmem:[%s10664_s1 + $0xde0] sm:$0xf0]  ;;  %v5034_v58 = vld [vmem:[%s10664_s1 + $0x2c8] sm:$0xf]  ;;  %v4779_v62 = vor.u32 %v6858_v57, %v4778_v56 }
  0x97   :  { %v6439_v7 = vor.u32 %v7269_v59, %v6436_v61  ;;  %v7197_v10 = vld [vmem:[%s10664_s1 + $0xb84] sm:$0xf]  ;;  %2913 = vmatpush.bf16.msrb.mxu0 %v6183_v6  ;;  %2895 = vmatmul.bf16.vlgmr.msra.gmra.mxu2 %v7678_v9  ;;  %v6922_v59 = vld [vmem:[%s10664_s1 + $0x2e4] sm:$0xf0] }
  0x98   :  { %v6148_v11 = vld [vmem:[%s10664_s1 + $0xba0] sm:$0xf0]  ;;  %2939 = vmatpush.bf16.msrb.mxu2 %v4907_v8  ;;  %2908 = vmatmul.bf16.vlgmr.msra.gmra.mxu3 %v7857_v38  ;;  %v5035_v3 = vor.u32 %v6922_v59, %v5034_v58  ;;  %v4746_v5 = vld [vmem:[%s10664_s1 + $0x88] sm:$0xf] }
  0x99   :  { %v7261_v12 = vld [vmem:[%s10664_s1 + $0xd84] sm:$0xf]  ;;  %v6151_v21 = vor.u32 %v7197_v10, %v6148_v11  ;;  %2926 = vmatpush.bf16.msrb.mxu1 %v6439_v7  ;;  %2952 = vmatpush.bf16.msrb.mxu3 %v5163_v13  ;;  %v6850_v6 = vld [vmem:[%s10664_s1 + $0xa4] sm:$0xf0] }
  0x9a   :  { %v6404_v16 = vld [vmem:[%s10664_s1 + $0xda0] sm:$0xf0]  ;;  %v5002_v7 = vld [vmem:[%s10664_s1 + $0x288] sm:$0xf] }
  0x9b   :  { %v6407_v22 = vor.u32 %v7261_v12, %v6404_v16  ;;  %v7189_v24 = vld [vmem:[%s10664_s1 + $0xb44] sm:$0xf]  ;;  %2914 = vmatpush.bf16.msrb.mxu0 %v6151_v21  ;;  %v6914_v8 = vld [vmem:[%s10664_s1 + $0x2a4] sm:$0xf0]  ;;  %v4747_v12 = vor.u32 %v6850_v6, %v4746_v5 }
  0x9c   :  { %v6116_v25 = vld [vmem:[%s10664_s1 + $0xb60] sm:$0xf0]  ;;  %2940 = vmatpush.bf16.msrb.mxu2 %v4875_v23  ;;  %v5003_v18 = vor.u32 %v6914_v8, %v5002_v7  ;;  %v6842_v21 = vld [vmem:[%s10664_s1 + $0x64] sm:$0xf0] }
  0x9d   :  { %v7253_v26 = vld [vmem:[%s10664_s1 + $0xd44] sm:$0xf]  ;;  %v6119_v33 = vor.u32 %v7189_v24, %v6116_v25  ;;  %2927 = vmatpush.bf16.msrb.mxu1 %v6407_v22  ;;  %2953 = vmatpush.bf16.msrb.mxu3 %v5131_v27  ;;  %v4970_v22 = vld [vmem:[%s10664_s1 + $0x248] sm:$0xf] }
  0x9e   :  { %v6372_v28 = vld [vmem:[%s10664_s1 + $0xd60] sm:$0xf0]  ;;  %v6906_v23 = vld [vmem:[%s10664_s1 + $0x264] sm:$0xf0] }
  0x9f   :  { %v6375_v35 = vor.u32 %v7253_v26, %v6372_v28  ;;  %v7181_v37 = vld [vmem:[%s10664_s1 + $0xb04] sm:$0xf]  ;;  %2915 = vmatpush.bf16.msrb.mxu0 %v6119_v33  ;;  %v4715_v28 = vor.u32 %v6842_v21, %v4714_v20  ;;  %v4971_v32 = vor.u32 %v6906_v23, %v4970_v22  ;;  %v6834_v33 = vld [vmem:[%s10664_s1 + $0x24] sm:$0xf0] }
  0xa0   :  { %v6084_v39 = vld [vmem:[%s10664_s1 + $0xb20] sm:$0xf0]  ;;  %2941 = vmatpush.bf16.msrb.mxu2 %v4843_v36  ;;  %v6898_v36 = vld [vmem:[%s10664_s1 + $0x224] sm:$0xf0]  ;;  %v4683_v47 = vor.u32 %v6834_v33, %v4682_v31 }
  0xa1   :  { %v7245_v40 = vld [vmem:[%s10664_s1 + $0xd04] sm:$0xf]  ;;  %v6087_v48 = vor.u32 %v7181_v37, %v6084_v39  ;;  %2928 = vmatpush.bf16.msrb.mxu1 %v6375_v35  ;;  %2954 = vmatpush.bf16.msrb.mxu3 %v5099_v42  ;;  %v4938_v35 = vld [vmem:[%s10664_s1 + $0x208] sm:$0xf] }
  0xa2   :  { %v6340_v43 = vld [vmem:[%s10664_s1 + $0xd20] sm:$0xf0]  ;;  %v5418_v37 = vld [vmem:[%s10664_s1 + $0x5c8] sm:$0xf] }
  0xa3   :  { %v6343_v49 = vor.u32 %v7245_v40, %v6340_v43  ;;  %v7173_v51 = vld [vmem:[%s10664_s1 + $0xac4] sm:$0xf]  ;;  %2916 = vmatpush.bf16.msrb.mxu0 %v6087_v48  ;;  %v7018_v39 = vld [vmem:[%s10664_s1 + $0x5e4] sm:$0xf0] }
  0xa4   :  { %v6052_v52 = vld [vmem:[%s10664_s1 + $0xae0] sm:$0xf0]  ;;  %2942 = vmatpush.bf16.msrb.mxu2 %v4811_v50  ;;  %v5674_v40 = vld [vmem:[%s10664_s1 + $0x7c8] sm:$0xf]  ;;  %v4939_v50 = vor.u32 %v6898_v36, %v4938_v35 }
  0xa5   :  { %v7237_v53 = vld [vmem:[%s10664_s1 + $0xcc4] sm:$0xf]  ;;  %v6055_v60 = vor.u32 %v7173_v51, %v6052_v52  ;;  %2929 = vmatpush.bf16.msrb.mxu1 %v6343_v49  ;;  %2955 = vmatpush.bf16.msrb.mxu3 %v5067_v54  ;;  %v7082_v43 = vld [vmem:[%s10664_s1 + $0x7e4] sm:$0xf0]  ;;  %v5419_v51 = vor.u32 %v7018_v39, %v5418_v37 }
  0xa6   :  { %v6308_v55 = vld [vmem:[%s10664_s1 + $0xce0] sm:$0xf0]  ;;  %v6186_v48 = vld [vmem:[%s10664_s1 + $0xbc8] sm:$0xf]  ;;  %v5675_v52 = vor.u32 %v7082_v43, %v5674_v40 }
  0xa7   :  { %v6311_v61 = vor.u32 %v7237_v53, %v6308_v55  ;;  %v7165_v63 = vld [vmem:[%s10664_s1 + $0xa84] sm:$0xf]  ;;  %2917 = vmatpush.bf16.msrb.mxu0 %v6055_v60  ;;  %v7210_v49 = vld [vmem:[%s10664_s1 + $0xbe4] sm:$0xf0]  ;;  %v5931_v53 = vor.u32 %v7146_v45, %v5930_v44 }
  0xa8   :  { %v6020_v0 = vld [vmem:[%s10664_s1 + $0xaa0] sm:$0xf0]  ;;  %2943 = vmatpush.bf16.msrb.mxu2 %v4779_v62  ;;  %v5386_v54 = vld [vmem:[%s10664_s1 + $0x588] sm:$0xf]  ;;  %v6187_v57 = vor.u32 %v7210_v49, %v6186_v48 }
  0xa9   :  { %v7229_v2 = vld [vmem:[%s10664_s1 + $0xc84] sm:$0xf]  ;;  %v6023_v10 = vor.u32 %v7165_v63, %v6020_v0  ;;  %2930 = vmatpush.bf16.msrb.mxu1 %v6311_v61  ;;  %2956 = vmatpush.bf16.msrb.mxu3 %v5035_v3  ;;  %v7010_v55 = vld [vmem:[%s10664_s1 + $0x5a4] sm:$0xf0] }
  0xaa   :  { %v6276_v4 = vld [vmem:[%s10664_s1 + $0xca0] sm:$0xf0]  ;;  %v5642_v56 = vld [vmem:[%s10664_s1 + $0x788] sm:$0xf]  ;;  %v5387_v63 = vor.u32 %v7010_v55, %v5386_v54 }
  0xab   :  { %v6279_v11 = vor.u32 %v7229_v2, %v6276_v4  ;;  %v7157_v13 = vld [vmem:[%s10664_s1 + $0xa44] sm:$0xf]  ;;  %2918 = vmatpush.bf16.msrb.mxu0 %v6023_v10  ;;  %v7074_v58 = vld [vmem:[%s10664_s1 + $0x7a4] sm:$0xf0] }
  0xac   :  { %v5988_v16 = vld [vmem:[%s10664_s1 + $0xa60] sm:$0xf0]  ;;  %2944 = vmatpush.bf16.msrb.mxu2 %v4747_v12  ;;  %v5898_v59 = vld [vmem:[%s10664_s1 + $0x988] sm:$0xf]  ;;  %v5643_v0 = vor.u32 %v7074_v58, %v5642_v56 }
  0xad   :  { %v7221_v17 = vld [vmem:[%s10664_s1 + $0xc44] sm:$0xf]  ;;  %v5991_v24 = vor.u32 %v7157_v13, %v5988_v16  ;;  %2931 = vmatpush.bf16.msrb.mxu1 %v6279_v11  ;;  %2957 = vmatpush.bf16.msrb.mxu3 %v5003_v18  ;;  %v7138_v60 = vld [vmem:[%s10664_s1 + $0x9a4] sm:$0xf0] }
  0xae   :  { %v6244_v19 = vld [vmem:[%s10664_s1 + $0xc60] sm:$0xf0]  ;;  %v6154_v61 = vld [vmem:[%s10664_s1 + $0xb88] sm:$0xf]  ;;  %v5899_v2 = vor.u32 %v7138_v60, %v5898_v59 }
  0xaf   :  { %v7149_v25 = vld [vmem:[%s10664_s1 + $0xa04] sm:$0xf]  ;;  %v6247_v27 = vor.u32 %v7221_v17, %v6244_v19  ;;  %2919 = vmatpush.bf16.msrb.mxu0 %v5991_v24  ;;  %v7202_v62 = vld [vmem:[%s10664_s1 + $0xba4] sm:$0xf0] }
  0xb0   :  { %v5956_v26 = vld [vmem:[%s10664_s1 + $0xa20] sm:$0xf0]  ;;  %2945 = vmatpush.bf16.msrb.mxu2 %v4715_v28  ;;  %v5354_v3 = vld [vmem:[%s10664_s1 + $0x548] sm:$0xf]  ;;  %v6155_v6 = vor.u32 %v7202_v62, %v6154_v61 }
  0xb1   :  { %v7213_v29 = vld [vmem:[%s10664_s1 + $0xc04] sm:$0xf]  ;;  %v5959_v42 = vor.u32 %v7149_v25, %v5956_v26  ;;  %2932 = vmatpush.bf16.msrb.mxu1 %v6247_v27  ;;  %2958 = vmatpush.bf16.msrb.mxu3 %v4971_v32  ;;  %v7002_v4 = vld [vmem:[%s10664_s1 + $0x564] sm:$0xf0] }
  0xb2   :  { %v6212_v30 = vld [vmem:[%s10664_s1 + $0xc20] sm:$0xf0]  ;;  %v5610_v5 = vld [vmem:[%s10664_s1 + $0x748] sm:$0xf]  ;;  %v5355_v13 = vor.u32 %v7002_v4, %v5354_v3 }
  0xb3   :  { %v6215_v46 = vor.u32 %v7213_v29, %v6212_v30  ;;  %2920 = vmatpush.bf16.msrb.mxu0 %v5959_v42  ;;  %v7066_v7 = vld [vmem:[%s10664_s1 + $0x764] sm:$0xf0] }
  0xb4   :  { %2946 = vmatpush.bf16.msrb.mxu2 %v4683_v47  ;;  %v5866_v8 = vld [vmem:[%s10664_s1 + $0x948] sm:$0xf]  ;;  %v5611_v16 = vor.u32 %v7066_v7, %v5610_v5 }
  0xb5   :  { %2933 = vmatpush.bf16.msrb.mxu1 %v6215_v46  ;;  %2959 = vmatpush.bf16.msrb.mxu3 %v4939_v50  ;;  %v7130_v10 = vld [vmem:[%s10664_s1 + $0x964] sm:$0xf0] }
  0xb6   :  { %2921 = vmatmul.bf16.vlgmr.msrb.gmra.mxu0 %v7865_v41  ;;  %v6122_v11 = vld [vmem:[%s10664_s1 + $0xb48] sm:$0xf]  ;;  %v5867_v17 = vor.u32 %v7130_v10, %v5866_v8 }
  0xb7   :  { %2965 = vmatpush.bf16.msra.mxu0 %v5419_v51  ;;  %v7194_v12 = vld [vmem:[%s10664_s1 + $0xb64] sm:$0xf0]  ;;  %2947 = vmatmul.bf16.vlgmr.msrb.gmra.mxu2 %v7689_v14 }
  0xb8   :  { %2991 = vmatpush.bf16.msra.mxu2 %v5931_v53  ;;  %2934 = vmatmul.bf16.vlgmr.msrb.gmra.mxu1 %v7846_v34  ;;  %v5322_v18 = vld [vmem:[%s10664_s1 + $0x508] sm:$0xf]  ;;  %v6123_v21 = vor.u32 %v7194_v12, %v6122_v11 }
  0xb9   :  { %2978 = vmatpush.bf16.msra.mxu1 %v5675_v52  ;;  %3004 = vmatpush.bf16.msra.mxu3 %v6187_v57  ;;  %v6994_v19 = vld [vmem:[%s10664_s1 + $0x524] sm:$0xf0] }
  0xba   :  { %2960 = vmatmul.bf16.vlgmr.msrb.gmra.mxu3 %v7691_v15  ;;  %v5578_v20 = vld [vmem:[%s10664_s1 + $0x708] sm:$0xf]  ;;  %v5323_v27 = vor.u32 %v6994_v19, %v5322_v18 }
  0xbb   :  { %2966 = vmatpush.bf16.msra.mxu0 %v5387_v63  ;;  %v7058_v22 = vld [vmem:[%s10664_s1 + $0x724] sm:$0xf0] }
  0xbc   :  { %2992 = vmatpush.bf16.msra.mxu2 %v5899_v2  ;;  %v5834_v23 = vld [vmem:[%s10664_s1 + $0x908] sm:$0xf]  ;;  %v5579_v28 = vor.u32 %v7058_v22, %v5578_v20  ;;  %v6886_v20 = vld [vmem:[%s10664_s1 + $0x1cc] sm:$0xf] }
  0xbd   :  { %2979 = vmatpush.bf16.msra.mxu1 %v5643_v0  ;;  %3005 = vmatpush.bf16.msra.mxu3 %v6155_v6  ;;  %v7122_v24 = vld [vmem:[%s10664_s1 + $0x924] sm:$0xf0]  ;;  %v4908_v22 = vld [vmem:[%s10664_s1 + $0x1e8] sm:$0xf0] }
  0xbe   :  { %v6090_v25 = vld [vmem:[%s10664_s1 + $0xb08] sm:$0xf]  ;;  %v5835_v29 = vor.u32 %v7122_v24, %v5834_v23  ;;  %v6950_v23 = vld [vmem:[%s10664_s1 + $0x3cc] sm:$0xf] }
  0xbf   :  { %v7186_v26 = vld [vmem:[%s10664_s1 + $0xb24] sm:$0xf0]  ;;  %2967 = vmatpush.bf16.msra.mxu0 %v5355_v13  ;;  %v5164_v24 = vld [vmem:[%s10664_s1 + $0x3e8] sm:$0xf0] }
  0xc0   :  { %2993 = vmatpush.bf16.msra.mxu2 %v5867_v17  ;;  %v5290_v30 = vld [vmem:[%s10664_s1 + $0x4c8] sm:$0xf]  ;;  %v6091_v33 = vor.u32 %v7186_v26, %v6090_v25 }
  0xc1   :  { %2980 = vmatpush.bf16.msra.mxu1 %v5611_v16  ;;  %v6986_v31 = vld [vmem:[%s10664_s1 + $0x4e4] sm:$0xf0]  ;;  %3006 = vmatpush.bf16.msra.mxu3 %v6123_v21 }
  0xc2   :  { %v5546_v32 = vld [vmem:[%s10664_s1 + $0x6c8] sm:$0xf]  ;;  %v5291_v42 = vor.u32 %v6986_v31, %v5290_v30  ;;  %v4911_v31 = vor.u32 %v6886_v20, %v4908_v22  ;;  %v5036_v20 = vld [vmem:[%s10664_s1 + $0x2e8] sm:$0xf0] }
  0xc3   :  { %v7050_v35 = vld [vmem:[%s10664_s1 + $0x6e4] sm:$0xf0]  ;;  %2968 = vmatpush.bf16.msra.mxu0 %v5323_v27  ;;  %v7014_v27 = vld [vmem:[%s10664_s1 + $0x5cc] sm:$0xf] }
  0xc4   :  { %v5802_v36 = vld [vmem:[%s10664_s1 + $0x8c8] sm:$0xf]  ;;  %2994 = vmatpush.bf16.msra.mxu2 %v5835_v29  ;;  %v5547_v43 = vor.u32 %v7050_v35, %v5546_v32  ;;  %v5167_v32 = vor.u32 %v6950_v23, %v5164_v24  ;;  %v5292_v22 = vld [vmem:[%s10664_s1 + $0x4e8] sm:$0xf0] }
  0xc5   :  { %v7114_v37 = vld [vmem:[%s10664_s1 + $0x8e4] sm:$0xf0]  ;;  %2981 = vmatpush.bf16.msra.mxu1 %v5579_v28  ;;  %3007 = vmatpush.bf16.msra.mxu3 %v6091_v33  ;;  %v5420_v28 = vld [vmem:[%s10664_s1 + $0x5e8] sm:$0xf0] }
  0xc6   :  { %v6058_v39 = vld [vmem:[%s10664_s1 + $0xac8] sm:$0xf]  ;;  %v5803_v44 = vor.u32 %v7114_v37, %v5802_v36  ;;  %v6878_v36 = vld [vmem:[%s10664_s1 + $0x18c] sm:$0xf]  ;;  %v5423_v37 = vor.u32 %v7014_v27, %v5420_v28 }
  0xc7   :  { %v7178_v40 = vld [vmem:[%s10664_s1 + $0xae4] sm:$0xf0]  ;;  %2969 = vmatpush.bf16.msra.mxu0 %v5291_v42  ;;  %v5132_v42 = vld [vmem:[%s10664_s1 + $0x3a8] sm:$0xf0] }
  0xc8   :  { %v5258_v45 = vld [vmem:[%s10664_s1 + $0x488] sm:$0xf]  ;;  %v6059_v48 = vor.u32 %v7178_v40, %v6058_v39  ;;  %2995 = vmatpush.bf16.msra.mxu2 %v5803_v44  ;;  %v4876_v39 = vld [vmem:[%s10664_s1 + $0x1a8] sm:$0xf0] }
  0xc9   :  { %v6978_v46 = vld [vmem:[%s10664_s1 + $0x4a4] sm:$0xf0]  ;;  %2982 = vmatpush.bf16.msra.mxu1 %v5547_v43  ;;  %v6942_v40 = vld [vmem:[%s10664_s1 + $0x38c] sm:$0xf] }
  0xca   :  { %v5514_v47 = vld [vmem:[%s10664_s1 + $0x688] sm:$0xf]  ;;  %v5259_v54 = vor.u32 %v6978_v46, %v5258_v45  ;;  %3008 = vmatpush.bf16.msra.mxu3 %v6059_v48  ;;  %v7006_v43 = vld [vmem:[%s10664_s1 + $0x58c] sm:$0xf]  ;;  %v4879_v46 = vor.u32 %v6878_v36, %v4876_v39 }
  0xcb   :  { %v7042_v49 = vld [vmem:[%s10664_s1 + $0x6a4] sm:$0xf0]  ;;  %v5388_v44 = vld [vmem:[%s10664_s1 + $0x5a8] sm:$0xf0] }
  0xcc   :  { %v5770_v50 = vld [vmem:[%s10664_s1 + $0x888] sm:$0xf]  ;;  %v5515_v55 = vor.u32 %v7042_v49, %v5514_v47  ;;  %2970 = vmatpush.bf16.msra.mxu0 %v5259_v54  ;;  %v5135_v47 = vor.u32 %v6942_v40, %v5132_v42  ;;  %v5100_v54 = vld [vmem:[%s10664_s1 + $0x368] sm:$0xf0]  ;;  %v2792_v42 = vpop.f32.mrf.mxu2 }
  0xcd   :  { %v7106_v51 = vld [vmem:[%s10664_s1 + $0x8a4] sm:$0xf0]  ;;  %v5004_v36 = vld [vmem:[%s10664_s1 + $0x2a8] sm:$0xf0] }
  0xce   :  { %v6026_v52 = vld [vmem:[%s10664_s1 + $0xa88] sm:$0xf]  ;;  %v5771_v56 = vor.u32 %v7106_v51, %v5770_v50  ;;  %2983 = vmatpush.bf16.msra.mxu1 %v5515_v55  ;;  %v6870_v50 = vld [vmem:[%s10664_s1 + $0x14c] sm:$0xf]  ;;  %v5391_v51 = vor.u32 %v7006_v43, %v5388_v44 }
  0xcf   :  { %v7170_v53 = vld [vmem:[%s10664_s1 + $0xaa4] sm:$0xf0]  ;;  %v6998_v55 = vld [vmem:[%s10664_s1 + $0x54c] sm:$0xf] }
  0xd0   :  { %v5226_v57 = vld [vmem:[%s10664_s1 + $0x448] sm:$0xf]  ;;  %v6027_v60 = vor.u32 %v7170_v53, %v6026_v52  ;;  %2996 = vmatpush.bf16.msra.mxu2 %v5771_v56  ;;  %v4844_v52 = vld [vmem:[%s10664_s1 + $0x168] sm:$0xf0] }
  0xd1   :  { %v6970_v58 = vld [vmem:[%s10664_s1 + $0x464] sm:$0xf0]  ;;  %v6934_v53 = vld [vmem:[%s10664_s1 + $0x34c] sm:$0xf] }
  0xd2   :  { %v5482_v59 = vld [vmem:[%s10664_s1 + $0x648] sm:$0xf]  ;;  %v5227_v3 = vor.u32 %v6970_v58, %v5226_v57  ;;  %3009 = vmatpush.bf16.msra.mxu3 %v6027_v60  ;;  %v5356_v56 = vld [vmem:[%s10664_s1 + $0x568] sm:$0xf0]  ;;  %v5103_v60 = vor.u32 %v6934_v53, %v5100_v54 }
  0xd3   :  { %v7034_v61 = vld [vmem:[%s10664_s1 + $0x664] sm:$0xf0]  ;;  %v5260_v39 = vld [vmem:[%s10664_s1 + $0x4a8] sm:$0xf0] }
  0xd4   :  { %v5738_v62 = vld [vmem:[%s10664_s1 + $0x848] sm:$0xf]  ;;  %v5483_v6 = vor.u32 %v7034_v61, %v5482_v59  ;;  %2971 = vmatpush.bf16.msra.mxu0 %v5227_v3  ;;  %v4847_v59 = vor.u32 %v6870_v50, %v4844_v52  ;;  %v5068_v3 = vld [vmem:[%s10664_s1 + $0x328] sm:$0xf0] }
  0xd5   :  { %v7098_v63 = vld [vmem:[%s10664_s1 + $0x864] sm:$0xf0]  ;;  %v2766_v24 = vpop.f32.mrf.mxu0  ;;  %v6902_v52 = vld [vmem:[%s10664_s1 + $0x24c] sm:$0xf] }
  0xd6   :  { %v5994_v0 = vld [vmem:[%s10664_s1 + $0xa48] sm:$0xf]  ;;  %v5739_v7 = vor.u32 %v7098_v63, %v5738_v62  ;;  %2984 = vmatpush.bf16.msra.mxu1 %v5483_v6  ;;  %v6862_v62 = vld [vmem:[%s10664_s1 + $0x10c] sm:$0xf] }
  0xd7   :  { %v7162_v2 = vld [vmem:[%s10664_s1 + $0xa64] sm:$0xf0]  ;;  %v4812_v63 = vld [vmem:[%s10664_s1 + $0x128] sm:$0xf0] }
  0xd8   :  { %v5194_v4 = vld [vmem:[%s10664_s1 + $0x408] sm:$0xf]  ;;  %v5995_v12 = vor.u32 %v7162_v2, %v5994_v0  ;;  %2997 = vmatpush.bf16.msra.mxu2 %v5739_v7  ;;  %v5359_v0 = vor.u32 %v6998_v55, %v5356_v56  ;;  %v6926_v2 = vld [vmem:[%s10664_s1 + $0x30c] sm:$0xf]  ;;  %v2805_v56 = vpop.f32.mrf.mxu3 }
  0xd9   :  { %v6962_v5 = vld [vmem:[%s10664_s1 + $0x424] sm:$0xf0]  ;;  %v5324_v6 = vld [vmem:[%s10664_s1 + $0x528] sm:$0xf0] }
  0xda   :  { %v5450_v8 = vld [vmem:[%s10664_s1 + $0x608] sm:$0xf]  ;;  %v5195_v21 = vor.u32 %v6962_v5, %v5194_v4  ;;  %3010 = vmatpush.bf16.msra.mxu3 %v5995_v12  ;;  %v8504_v4 = vld [vmem:[%s10666_s2] sm:$0xff]  ;;  %v6990_v5 = vld [vmem:[%s10664_s1 + $0x50c] sm:$0xf] }
  0xdb   :  { %v7026_v10 = vld [vmem:[%s10664_s1 + $0x624] sm:$0xf0]  ;;  %v4972_v53 = vld [vmem:[%s10664_s1 + $0x268] sm:$0xf0] }
  0xdc   :  { %v5706_v11 = vld [vmem:[%s10664_s1 + $0x808] sm:$0xf]  ;;  %v5451_v25 = vor.u32 %v7026_v10, %v5450_v8  ;;  %2972 = vmatpush.bf16.msra.mxu0 %v5195_v21  ;;  %v4815_v10 = vor.u32 %v6862_v62, %v4812_v63  ;;  %v6982_v21 = vld [vmem:[%s10664_s1 + $0x4cc] sm:$0xf] }
  0xdd   :  { %v7090_v13 = vld [vmem:[%s10664_s1 + $0x824] sm:$0xf0]  ;;  %v6966_v54 = vld [vmem:[%s10664_s1 + $0x44c] sm:$0xf] }
  0xde   :  { %v5962_v16 = vld [vmem:[%s10664_s1 + $0xa08] sm:$0xf]  ;;  %v5707_v26 = vor.u32 %v7090_v13, %v5706_v11  ;;  %2985 = vmatpush.bf16.msra.mxu1 %v5451_v25  ;;  %v5071_v11 = vor.u32 %v6926_v2, %v5068_v3  ;;  %v6854_v13 = vld [vmem:[%s10664_s1 + $0xcc] sm:$0xf]  ;;  %v2779_v25 = vpop.f32.mrf.mxu1 }
  0xdf   :  { %v7154_v17 = vld [vmem:[%s10664_s1 + $0xa24] sm:$0xf0]  ;;  %2973 = vmatmul.bf16.vlgmr.msra.gmra.mxu0 %v7666_v1  ;;  %v5228_v55 = vld [vmem:[%s10664_s1 + $0x468] sm:$0xf0] }
  0xe0   :  { %v6442_v18 = vld [vmem:[%s10664_s1 + $0xdc8] sm:$0xf]  ;;  %v5963_v29 = vor.u32 %v7154_v17, %v5962_v16  ;;  %2998 = vmatpush.bf16.msra.mxu2 %v5707_v26  ;;  %v476_v16 = vperm.slane %v8504_v4, 0  ;;  %v5327_v17 = vor.u32 %v6990_v5, %v5324_v6  ;;  %v6830_v2 = vld [vmem:[%s10664_s1 + $0xc] sm:$0xf]  ;;  %v5231_v6 = vor.u32 %v6966_v54, %v5228_v55 }
  0xe1   :  { %v7274_v19 = vld [vmem:[%s10664_s1 + $0xde4] sm:$0xf0]  ;;  %2986 = vmatmul.bf16.vlgmr.msra.gmra.mxu1 %v7678_v9  ;;  %v4684_v3 = vld [vmem:[%s10664_s1 + $0x28] sm:$0xf0] }
  0xe2   :  { %v6443_v30 = vor.u32 %v7274_v19, %v6442_v18  ;;  %v6410_v33 = vld [vmem:[%s10664_s1 + $0xd88] sm:$0xf]  ;;  %3011 = vmatpush.bf16.msra.mxu3 %v5963_v29  ;;  %3030 = vmatpush.bf16.msrb.mxu1 %v4911_v31  ;;  %v4780_v18 = vld [vmem:[%s10664_s1 + $0xe8] sm:$0xf0]  ;;  %v2767_v31 = vadd.f32 %v2766_v24, %v476_v16  ;;  %v2794_v16 = vpop.f32.mrf.mxu2 }
  0xe3   :  { %v7266_v35 = vld [vmem:[%s10664_s1 + $0xda4] sm:$0xf0]  ;;  %2999 = vmatmul.bf16.vlgmr.msra.gmra.mxu2 %v7857_v38  ;;  %v6918_v19 = vld [vmem:[%s10664_s1 + $0x2cc] sm:$0xf]  ;;  %v4783_v26 = vor.u32 %v6854_v13, %v4780_v18 }
  0xe4   :  { %3017 = vmatpush.bf16.msrb.mxu0 %v6443_v30  ;;  %v6411_v45 = vor.u32 %v7266_v35, %v6410_v33  ;;  %3043 = vmatpush.bf16.msrb.mxu2 %v5167_v32  ;;  %v6378_v48 = vld [vmem:[%s10664_s1 + $0xd48] sm:$0xf]  ;;  %v5039_v27 = vor.u32 %v6918_v19, %v5036_v20  ;;  %v6846_v30 = vld [vmem:[%s10664_s1 + $0x8c] sm:$0xf]  ;;  %v5295_v32 = vor.u32 %v6982_v21, %v5292_v22 }
  0xe5   :  { %v7258_v49 = vld [vmem:[%s10664_s1 + $0xd64] sm:$0xf0]  ;;  %3012 = vmatmul.bf16.vlgmr.msra.gmra.mxu3 %v7865_v41  ;;  %v4748_v33 = vld [vmem:[%s10664_s1 + $0xa8] sm:$0xf0]  ;;  %v2780_v40 = vadd.f32 %v2779_v25, %v2767_v31  ;;  %v4687_v21 = vor.u32 %v6830_v2, %v4684_v3 }
  0xe6   :  { %3056 = vmatpush.bf16.msrb.mxu3 %v5423_v37  ;;  %v6379_v57 = vor.u32 %v7258_v49, %v6378_v48  ;;  %v6346_v58 = vld [vmem:[%s10664_s1 + $0xd08] sm:$0xf]  ;;  %3031 = vmatpush.bf16.msrb.mxu1 %v4879_v46  ;;  %v6910_v35 = vld [vmem:[%s10664_s1 + $0x28c] sm:$0xf]  ;;  %v4751_v44 = vor.u32 %v6846_v30, %v4748_v33 }
  0xe7   :  { %v7250_v61 = vld [vmem:[%s10664_s1 + $0xd24] sm:$0xf0]  ;;  %v6974_v37 = vld [vmem:[%s10664_s1 + $0x48c] sm:$0xf]  ;;  %v2793_v49 = vadd.f32 %v2792_v42, %v2780_v40 }
  0xe8   :  { %3018 = vmatpush.bf16.msrb.mxu0 %v6411_v45  ;;  %3044 = vmatpush.bf16.msrb.mxu2 %v5135_v47  ;;  %v6347_v7 = vor.u32 %v7250_v61, %v6346_v58  ;;  %v6314_v8 = vld [vmem:[%s10664_s1 + $0xcc8] sm:$0xf]  ;;  %v5007_v45 = vor.u32 %v6910_v35, %v5004_v36  ;;  %v6838_v48 = vld [vmem:[%s10664_s1 + $0x4c] sm:$0xf]  ;;  %v5263_v50 = vor.u32 %v6974_v37, %v5260_v39  ;;  %v2781_v61 = vpop.f32.mrf.mxu1 }
  0xe9   :  { %v7242_v12 = vld [vmem:[%s10664_s1 + $0xce4] sm:$0xf0]  ;;  %v8591_v62 = vadd.f32 %v2805_v56, %v2793_v49  ;;  %v6894_v5 = vld [vmem:[%s10664_s1 + $0x20c] sm:$0xf] }
  0xea   :  { %3057 = vmatpush.bf16.msrb.mxu3 %v5391_v51  ;;  %3032 = vmatpush.bf16.msrb.mxu1 %v4847_v59  ;;  %v6315_v23 = vor.u32 %v7242_v12, %v6314_v8  ;;  %v6282_v28 = vld [vmem:[%s10664_s1 + $0xc88] sm:$0xf]  ;;  %v4716_v51 = vld [vmem:[%s10664_s1 + $0x68] sm:$0xf0] }
  0xeb   :  { %v7234_v29 = vld [vmem:[%s10664_s1 + $0xca4] sm:$0xf0]  ;;  %v4719_v63 = vor.u32 %v6838_v48, %v4716_v51  ;;  %v6958_v8 = vld [vmem:[%s10664_s1 + $0x40c] sm:$0xf] }
  0xec   :  { %3019 = vmatpush.bf16.msrb.mxu0 %v6379_v57  ;;  %3045 = vmatpush.bf16.msrb.mxu2 %v5103_v60  ;;  %v6283_v43 = vor.u32 %v7234_v29, %v6282_v28  ;;  %v6250_v46 = vld [vmem:[%s10664_s1 + $0xc48] sm:$0xf]  ;;  %v2768_v60 = vpop.f32.mrf.mxu0  ;;  %v5676_v12 = vld [vmem:[%s10664_s1 + $0x7e8] sm:$0xf0] }
  0xed   :  { %v7226_v47 = vld [vmem:[%s10664_s1 + $0xc64] sm:$0xf0]  ;;  %v7142_v13 = vld [vmem:[%s10664_s1 + $0x9cc] sm:$0xf] }
  0xee   :  { %3058 = vmatpush.bf16.msrb.mxu3 %v5359_v0  ;;  %3033 = vmatpush.bf16.msrb.mxu1 %v4815_v10  ;;  %v6251_v57 = vor.u32 %v7226_v47, %v6250_v46  ;;  %v6218_v58 = vld [vmem:[%s10664_s1 + $0xc08] sm:$0xf]  ;;  %v4975_v0 = vor.u32 %v6902_v52, %v4972_v53  ;;  %v5196_v10 = vld [vmem:[%s10664_s1 + $0x428] sm:$0xf0] }
  0xef   :  { %v7218_v59 = vld [vmem:[%s10664_s1 + $0xc24] sm:$0xf0]  ;;  %v5932_v18 = vld [vmem:[%s10664_s1 + $0x9e8] sm:$0xf0]  ;;  %v5199_v25 = vor.u32 %v6958_v8, %v5196_v10 }
  0xf0   :  { %3020 = vmatpush.bf16.msrb.mxu0 %v6347_v7  ;;  %3046 = vmatpush.bf16.msrb.mxu2 %v5071_v11  ;;  %v4940_v7 = vld [vmem:[%s10664_s1 + $0x228] sm:$0xf0] }
  0xf1   :  { %v7078_v11 = vld [vmem:[%s10664_s1 + $0x7cc] sm:$0xf]  ;;  %v4943_v22 = vor.u32 %v6894_v5, %v4940_v7 }
  0xf2   :  { %3059 = vmatpush.bf16.msrb.mxu3 %v5327_v17  ;;  %3034 = vmatpush.bf16.msrb.mxu1 %v4783_v26  ;;  %v6219_v17 = vor.u32 %v7218_v59, %v6218_v58  ;;  %v7206_v19 = vld [vmem:[%s10664_s1 + $0xbcc] sm:$0xf]  ;;  %v5679_v26 = vor.u32 %v7078_v11, %v5676_v12  ;;  %v8711_v7 = vpop.f32.mrf.mxu1 }
  0xf3   :  { %v6188_v20 = vld [vmem:[%s10664_s1 + $0xbe8] sm:$0xf0] }
  0xf4   :  { %3021 = vmatpush.bf16.msrb.mxu0 %v6315_v23  ;;  %3047 = vmatpush.bf16.msrb.mxu2 %v5039_v27  ;;  %v7270_v23 = vld [vmem:[%s10664_s1 + $0xdcc] sm:$0xf]  ;;  %v5935_v27 = vor.u32 %v7142_v13, %v5932_v18  ;;  %v6191_v28 = vor.u32 %v7206_v19, %v6188_v20 }
  0xf5   :  { %v6444_v24 = vld [vmem:[%s10664_s1 + $0xde8] sm:$0xf0] }
  0xf6   :  { %3060 = vmatpush.bf16.msrb.mxu3 %v5295_v32  ;;  %3035 = vmatpush.bf16.msrb.mxu1 %v4751_v44  ;;  %v7070_v29 = vld [vmem:[%s10664_s1 + $0x78c] sm:$0xf]  ;;  %v2807_v32 = vpop.f32.mrf.mxu3  ;;  %v6447_v33 = vor.u32 %v7270_v23, %v6444_v24 }
  0xf7   :  { %v5644_v30 = vld [vmem:[%s10664_s1 + $0x7a8] sm:$0xf0] }
  0xf8   :  { %3022 = vmatpush.bf16.msrb.mxu0 %v6283_v43  ;;  %3048 = vmatpush.bf16.msrb.mxu2 %v5007_v45  ;;  %v7134_v31 = vld [vmem:[%s10664_s1 + $0x98c] sm:$0xf]  ;;  %v5647_v42 = vor.u32 %v7070_v29, %v5644_v30 }
  0xf9   :  { %v5900_v35 = vld [vmem:[%s10664_s1 + $0x9a8] sm:$0xf0] }
  0xfa   :  { %3061 = vmatpush.bf16.msrb.mxu3 %v5263_v50  ;;  %3036 = vmatpush.bf16.msrb.mxu1 %v4719_v63  ;;  %v7198_v36 = vld [vmem:[%s10664_s1 + $0xb8c] sm:$0xf]  ;;  %v5903_v43 = vor.u32 %v7134_v31, %v5900_v35 }
  0xfb   :  { %v6156_v37 = vld [vmem:[%s10664_s1 + $0xba8] sm:$0xf0] }
  0xfc   :  { %3023 = vmatpush.bf16.msrb.mxu0 %v6251_v57  ;;  %3049 = vmatpush.bf16.msrb.mxu2 %v4975_v0  ;;  %v7262_v39 = vld [vmem:[%s10664_s1 + $0xd8c] sm:$0xf]  ;;  %v6159_v44 = vor.u32 %v7198_v36, %v6156_v37 }
  0xfd   :  { %v6412_v40 = vld [vmem:[%s10664_s1 + $0xda8] sm:$0xf0] }
  0xfe   :  { %3062 = vmatpush.bf16.msrb.mxu3 %v5231_v6  ;;  %3037 = vmatpush.bf16.msrb.mxu1 %v4687_v21  ;;  %v7062_v45 = vld [vmem:[%s10664_s1 + $0x74c] sm:$0xf]  ;;  %v6415_v48 = vor.u32 %v7262_v39, %v6412_v40  ;;  %v2818_v6 = vpop.f32.mrf.mxu0  ;;  %v8763_v36 = vpop.f32.mrf.mxu3 }
  0xff   :  { %v5612_v46 = vld [vmem:[%s10664_s1 + $0x768] sm:$0xf0]  ;;  %v2833_v40 = vpop.f32.mrf.mxu1 }
 0x100   :  { %3024 = vmatpush.bf16.msrb.mxu0 %v6219_v17  ;;  %3050 = vmatpush.bf16.msrb.mxu2 %v4943_v22  ;;  %v7126_v47 = vld [vmem:[%s10664_s1 + $0x94c] sm:$0xf]  ;;  %v5615_v54 = vor.u32 %v7062_v45, %v5612_v46 }
 0x101   :  { %v5868_v49 = vld [vmem:[%s10664_s1 + $0x968] sm:$0xf0]  ;;  %3038 = vmatmul.bf16.vlgmr.msrb.gmra.mxu1 %v7689_v14 }
 0x102   :  { %3063 = vmatpush.bf16.msrb.mxu3 %v5199_v25  ;;  %3082 = vmatpush.bf16.msra.mxu1 %v5935_v27  ;;  %v7190_v50 = vld [vmem:[%s10664_s1 + $0xb4c] sm:$0xf]  ;;  %v5871_v55 = vor.u32 %v7126_v47, %v5868_v49  ;;  %v8737_v25 = vpop.f32.mrf.mxu2 }
 0x103   :  { %3025 = vmatmul.bf16.vlgmr.msrb.gmra.mxu0 %v7846_v34  ;;  %v6124_v51 = vld [vmem:[%s10664_s1 + $0xb68] sm:$0xf0]  ;;  %3051 = vmatmul.bf16.vlgmr.msrb.gmra.mxu2 %v7691_v15 }
 0x104   :  { %3069 = vmatpush.bf16.msra.mxu0 %v5679_v26  ;;  %3095 = vmatpush.bf16.msra.mxu2 %v6191_v28  ;;  %v7254_v52 = vld [vmem:[%s10664_s1 + $0xd4c] sm:$0xf]  ;;  %v6127_v56 = vor.u32 %v7190_v50, %v6124_v51 }
 0x105   :  { %v6380_v53 = vld [vmem:[%s10664_s1 + $0xd68] sm:$0xf0]  ;;  %3064 = vmatmul.bf16.vlgmr.msrb.gmra.mxu3 %v7666_v1 }
 0x106   :  { %3108 = vmatpush.bf16.msra.mxu3 %v6447_v33  ;;  %3083 = vmatpush.bf16.msra.mxu1 %v5903_v43  ;;  %v7054_v57 = vld [vmem:[%s10664_s1 + $0x70c] sm:$0xf]  ;;  %v6383_v60 = vor.u32 %v7254_v52, %v6380_v53  ;;  %v2820_v39 = vpop.f32.mrf.mxu0  ;;  %v2819_v53 = vadd.f32 %v2818_v6, %v8591_v62  ;;  %v6891_v6 = vld [vmem:[%s10664_s1 + $0x1ec] sm:$0xf0] }
 0x107   :  { %v5580_v58 = vld [vmem:[%s10664_s1 + $0x728] sm:$0xf0]  ;;  %v4850_v39 = vld [vmem:[%s10664_s1 + $0x150] sm:$0xf] }
 0x108   :  { %3070 = vmatpush.bf16.msra.mxu0 %v5647_v42  ;;  %3096 = vmatpush.bf16.msra.mxu2 %v6159_v44  ;;  %v7118_v59 = vld [vmem:[%s10664_s1 + $0x90c] sm:$0xf]  ;;  %v5583_v5 = vor.u32 %v7054_v57, %v5580_v58 }
 0x109   :  { %v5836_v61 = vld [vmem:[%s10664_s1 + $0x928] sm:$0xf0] }
 0x10a   :  { %3109 = vmatpush.bf16.msra.mxu3 %v6415_v48  ;;  %v7182_v63 = vld [vmem:[%s10664_s1 + $0xb0c] sm:$0xf]  ;;  %3084 = vmatpush.bf16.msra.mxu1 %v5871_v55  ;;  %v5839_v8 = vor.u32 %v7118_v59, %v5836_v61  ;;  %v2846_v61 = vpop.f32.mrf.mxu2 }
 0x10b   :  { %v6092_v0 = vld [vmem:[%s10664_s1 + $0xb28] sm:$0xf0]  ;;  %v6995_v61 = vld [vmem:[%s10664_s1 + $0x52c] sm:$0xf0] }
 0x10c   :  { %v7246_v2 = vld [vmem:[%s10664_s1 + $0xd0c] sm:$0xf]  ;;  %3071 = vmatpush.bf16.msra.mxu0 %v5615_v54  ;;  %3097 = vmatpush.bf16.msra.mxu2 %v6127_v56  ;;  %v6095_v10 = vor.u32 %v7182_v63, %v6092_v0 }
 0x10d   :  { %v6348_v3 = vld [vmem:[%s10664_s1 + $0xd28] sm:$0xf0] }
 0x10e   :  { %v7046_v11 = vld [vmem:[%s10664_s1 + $0x6cc] sm:$0xf]  ;;  %3110 = vmatpush.bf16.msra.mxu3 %v6383_v60  ;;  %v6351_v16 = vor.u32 %v7246_v2, %v6348_v3  ;;  %3085 = vmatpush.bf16.msra.mxu1 %v5839_v8  ;;  %v5170_v8 = vld [vmem:[%s10664_s1 + $0x3d0] sm:$0xf] }
 0x10f   :  { %v5548_v12 = vld [vmem:[%s10664_s1 + $0x6e8] sm:$0xf0] }
 0x110   :  { %v7110_v13 = vld [vmem:[%s10664_s1 + $0x8cc] sm:$0xf]  ;;  %3072 = vmatpush.bf16.msra.mxu0 %v5583_v5  ;;  %v5551_v22 = vor.u32 %v7046_v11, %v5548_v12  ;;  %3098 = vmatpush.bf16.msra.mxu2 %v6095_v10  ;;  %v4914_v5 = vld [vmem:[%s10664_s1 + $0x1d0] sm:$0xf]  ;;  %v2859_v10 = vpop.f32.mrf.mxu3  ;;  %v2832_v11 = vadd.f32 %v8711_v7, %v2819_v53 }
 0x111   :  { %v5804_v17 = vld [vmem:[%s10664_s1 + $0x8e8] sm:$0xf0]  ;;  %v5682_v7 = vld [vmem:[%s10664_s1 + $0x7d0] sm:$0xf] }
 0x112   :  { %v7174_v18 = vld [vmem:[%s10664_s1 + $0xacc] sm:$0xf]  ;;  %v5807_v23 = vor.u32 %v7110_v13, %v5804_v17  ;;  %3111 = vmatpush.bf16.msra.mxu3 %v6351_v16  ;;  %v6955_v13 = vld [vmem:[%s10664_s1 + $0x3ec] sm:$0xf0] }
 0x113   :  { %v6060_v19 = vld [vmem:[%s10664_s1 + $0xae8] sm:$0xf0]  ;;  %v5426_v16 = vld [vmem:[%s10664_s1 + $0x5d0] sm:$0xf] }
 0x114   :  { %v7238_v20 = vld [vmem:[%s10664_s1 + $0xccc] sm:$0xf]  ;;  %v6063_v24 = vor.u32 %v7174_v18, %v6060_v19  ;;  %3073 = vmatpush.bf16.msra.mxu0 %v5551_v22  ;;  %3086 = vmatpush.bf16.msra.mxu1 %v5807_v23  ;;  %v7019_v17 = vld [vmem:[%s10664_s1 + $0x5ec] sm:$0xf0]  ;;  %v4915_v22 = vor.u32 %v6891_v6, %v4914_v5  ;;  %v5171_v23 = vor.u32 %v6955_v13, %v5170_v8  ;;  %v8926_v6 = vpop.f32.mrf.mxu0 }
 0x115   :  { %v6316_v21 = vld [vmem:[%s10664_s1 + $0xce8] sm:$0xf0]  ;;  %v5042_v13 = vld [vmem:[%s10664_s1 + $0x2d0] sm:$0xf] }
 0x116   :  { %v7038_v26 = vld [vmem:[%s10664_s1 + $0x68c] sm:$0xf]  ;;  %v6319_v29 = vor.u32 %v7238_v20, %v6316_v21  ;;  %3099 = vmatpush.bf16.msra.mxu2 %v6063_v24  ;;  %v7083_v20 = vld [vmem:[%s10664_s1 + $0x7ec] sm:$0xf0]  ;;  %v5427_v24 = vor.u32 %v7019_v17, %v5426_v16  ;;  %v8937_v16 = vpop.f32.mrf.mxu1 }
 0x117   :  { %v5516_v27 = vld [vmem:[%s10664_s1 + $0x6a8] sm:$0xf0] }
 0x118   :  { %v7102_v28 = vld [vmem:[%s10664_s1 + $0x88c] sm:$0xf]  ;;  %v5519_v37 = vor.u32 %v7038_v26, %v5516_v27  ;;  %3112 = vmatpush.bf16.msra.mxu3 %v6319_v29  ;;  %v4882_v26 = vld [vmem:[%s10664_s1 + $0x190] sm:$0xf]  ;;  %v8849_v29 = vadd.f32 %v8737_v25, %v2832_v11 }
 0x119   :  { %v5772_v30 = vld [vmem:[%s10664_s1 + $0x8a8] sm:$0xf0]  ;;  %v6883_v27 = vld [vmem:[%s10664_s1 + $0x1ac] sm:$0xf0] }
 0x11a   :  { %v7166_v31 = vld [vmem:[%s10664_s1 + $0xa8c] sm:$0xf]  ;;  %v5775_v42 = vor.u32 %v7102_v28, %v5772_v30  ;;  %3074 = vmatpush.bf16.msra.mxu0 %v5519_v37  ;;  %v5138_v28 = vld [vmem:[%s10664_s1 + $0x390] sm:$0xf]  ;;  %v5683_v30 = vor.u32 %v7083_v20, %v5682_v7  ;;  %v4883_v37 = vor.u32 %v6883_v27, %v4882_v26  ;;  %vm3504_vm0 = vcmp.gt.f32.partialorder %v8849_v29, 1.0 }
 0x11b   :  { %v6028_v32 = vld [vmem:[%s10664_s1 + $0xaa8] sm:$0xf0]  ;;  %v5650_v25 = vld [vmem:[%s10664_s1 + $0x790] sm:$0xf] }
 0x11c   :  { %v7230_v33 = vld [vmem:[%s10664_s1 + $0xc8c] sm:$0xf]  ;;  %v6031_v43 = vor.u32 %v7166_v31, %v6028_v32  ;;  %3087 = vmatpush.bf16.msra.mxu1 %v5775_v42  ;;  %v6947_v31 = vld [vmem:[%s10664_s1 + $0x3ac] sm:$0xf0] }
 0x11d   :  { %v6284_v35 = vld [vmem:[%s10664_s1 + $0xca8] sm:$0xf0]  ;;  %v5394_v32 = vld [vmem:[%s10664_s1 + $0x590] sm:$0xf]  ;;  %v5139_v40 = vor.u32 %v6947_v31, %v5138_v28 }
 0x11e   :  { %v7030_v44 = vld [vmem:[%s10664_s1 + $0x64c] sm:$0xf]  ;;  %v6287_v47 = vor.u32 %v7230_v33, %v6284_v35  ;;  %3100 = vmatpush.bf16.msra.mxu2 %v6031_v43  ;;  %v7011_v33 = vld [vmem:[%s10664_s1 + $0x5ac] sm:$0xf0] }
 0x11f   :  { %v5484_v45 = vld [vmem:[%s10664_s1 + $0x668] sm:$0xf0]  ;;  %v7075_v35 = vld [vmem:[%s10664_s1 + $0x7ac] sm:$0xf0]  ;;  %v5395_v42 = vor.u32 %v7011_v33, %v5394_v32  ;;  %v8967_v32 = vpop.f32.mrf.mxu2 }
 0x120   :  { %v7094_v46 = vld [vmem:[%s10664_s1 + $0x84c] sm:$0xf]  ;;  %v5487_v54 = vor.u32 %v7030_v44, %v5484_v45  ;;  %3113 = vmatpush.bf16.msra.mxu3 %v6287_v47  ;;  %v6875_v43 = vld [vmem:[%s10664_s1 + $0x16c] sm:$0xf0]  ;;  %v5651_v47 = vor.u32 %v7075_v35, %v5650_v25 }
 0x121   :  { %v5740_v48 = vld [vmem:[%s10664_s1 + $0x868] sm:$0xf0]  ;;  %v5106_v44 = vld [vmem:[%s10664_s1 + $0x350] sm:$0xf] }
 0x122   :  { %v7158_v49 = vld [vmem:[%s10664_s1 + $0xa4c] sm:$0xf]  ;;  %v5743_v57 = vor.u32 %v7094_v46, %v5740_v48  ;;  %3075 = vmatpush.bf16.msra.mxu0 %v5487_v54  ;;  %v6939_v45 = vld [vmem:[%s10664_s1 + $0x36c] sm:$0xf0]  ;;  %v3536_v46 = vmul.f32 0.95, %v8849_v29 }
 0x123   :  { %v5996_v50 = vld [vmem:[%s10664_s1 + $0xa68] sm:$0xf0]  ;;  %v5362_v48 = vld [vmem:[%s10664_s1 + $0x550] sm:$0xf]  ;;  %v5107_v53 = vor.u32 %v6939_v45, %v5106_v44  ;;  %v2872_v45 = vpop.f32.mrf.mxu0 }
 0x124   :  { %v7222_v51 = vld [vmem:[%s10664_s1 + $0xc4c] sm:$0xf]  ;;  %v5999_v58 = vor.u32 %v7158_v49, %v5996_v50  ;;  %3088 = vmatpush.bf16.msra.mxu1 %v5743_v57  ;;  %v7003_v49 = vld [vmem:[%s10664_s1 + $0x56c] sm:$0xf0] }
 0x125   :  { %v6252_v52 = vld [vmem:[%s10664_s1 + $0xc68] sm:$0xf0]  ;;  %v5618_v50 = vld [vmem:[%s10664_s1 + $0x750] sm:$0xf]  ;;  %v5363_v54 = vor.u32 %v7003_v49, %v5362_v48 }
 0x126   :  { %v7022_v55 = vld [vmem:[%s10664_s1 + $0x60c] sm:$0xf]  ;;  %v6255_v63 = vor.u32 %v7222_v51, %v6252_v52  ;;  %3101 = vmatpush.bf16.msra.mxu2 %v5999_v58  ;;  %v7067_v51 = vld [vmem:[%s10664_s1 + $0x76c] sm:$0xf0]  ;;  %v4851_v52 = vor.u32 %v6875_v43, %v4850_v39  ;;  %v3544_v58 = vadd.f32 %v3536_v46, %v8849_v29  ;;  %v8975_v39 = vpop.f32.mrf.mxu3  ;;  %v477_v43 = vperm.slane %v8504_v4, 1 }
 0x127   :  { %v5452_v56 = vld [vmem:[%s10664_s1 + $0x628] sm:$0xf0]  ;;  %v5074_v57 = vld [vmem:[%s10664_s1 + $0x310] sm:$0xf] }
 0x128   :  { %v7086_v59 = vld [vmem:[%s10664_s1 + $0x80c] sm:$0xf]  ;;  %v5455_v12 = vor.u32 %v7022_v55, %v5452_v56  ;;  %3114 = vmatpush.bf16.msra.mxu3 %v6255_v63  ;;  %v4818_v55 = vld [vmem:[%s10664_s1 + $0x110] sm:$0xf]  ;;  %v7365_v63 = vmov 0.0  }
 0x129   :  { %v5708_v62 = vld [vmem:[%s10664_s1 + $0x828] sm:$0xf0]  ;;  %v6867_v56 = vld [vmem:[%s10664_s1 + $0x12c] sm:$0xf0] }
 0x12a   :  { %v7150_v60 = vld [vmem:[%s10664_s1 + $0xa0c] sm:$0xf]  ;;  %v5711_v18 = vor.u32 %v7086_v59, %v5708_v62  ;;  %3076 = vmatpush.bf16.msra.mxu0 %v5455_v12  ;;  %v5619_v59 = vor.u32 %v7067_v51, %v5618_v50  ;;  %v6931_v62 = vld [vmem:[%s10664_s1 + $0x32c] sm:$0xf0]  ;;  %v4819_v5 = vor.u32 %v6867_v56, %v4818_v55  ;;  %v2885_v51 = vpop.f32.mrf.mxu1 }
 0x12b   :  { %v5964_v0 = vld [vmem:[%s10664_s1 + $0xa28] sm:$0xf0]  ;;  %v5075_v8 = vor.u32 %v6931_v62, %v5074_v57  ;;  %v4786_v11 = vld [vmem:[%s10664_s1 + $0xd0] sm:$0xf]  ;;  %v2858_v62 = vadd.f32 %v8763_v36, %v477_v43  ;;  %v4884_v51 = vld [vmem:[%s10664_s1 + $0x1b0] sm:$0xf0] }
 0x12c   :  { %v7214_v2 = vld [vmem:[%s10664_s1 + $0xc0c] sm:$0xf]  ;;  %v5967_v19 = vor.u32 %v7150_v60, %v5964_v0  ;;  %3089 = vmatpush.bf16.msra.mxu1 %v5711_v18  ;;  %v5330_v60 = vld [vmem:[%s10664_s1 + $0x510] sm:$0xf]  ;;  %v8918_v0 = vsel %vm3504_vm0, 1.0, %v7365_v63 }
 0x12d   :  { %v6220_v3 = vld [vmem:[%s10664_s1 + $0xc28] sm:$0xf0]  ;;  %3077 = vmatmul.bf16.vlgmr.msra.gmra.mxu0 %v7678_v9  ;;  %v5331_v10 = vor.u32 %v6995_v61, %v5330_v60  ;;  %v6859_v12 = vld [vmem:[%s10664_s1 + $0xec] sm:$0xf0]  ;;  %v3552_v17 = vsub.f32 %v3544_v58, %v8918_v0 }
 0x12e   :  { %v6223_v21 = vor.u32 %v7214_v2, %v6220_v3  ;;  %3102 = vmatpush.bf16.msra.mxu2 %v5967_v19  ;;  %3121 = vmatpush.bf16.msrb.mxu0 %v4915_v22  ;;  %v5586_v2 = vld [vmem:[%s10664_s1 + $0x710] sm:$0xf] }
 0x12f   :  { %3090 = vmatmul.bf16.vlgmr.msra.gmra.mxu1 %v7857_v38  ;;  %v7059_v3 = vld [vmem:[%s10664_s1 + $0x72c] sm:$0xf0]  ;;  %v3592_v33 = vmul.f32 0.95, %v3552_v17  ;;  %vm3560_vm1 = vcmp.gt.f32.partialorder %v3552_v17, 1.0 }
 0x130   :  { %3115 = vmatpush.bf16.msra.mxu3 %v6223_v21  ;;  %3134 = vmatpush.bf16.msrb.mxu1 %v5171_v23  ;;  %v5587_v18 = vor.u32 %v7059_v3, %v5586_v2  ;;  %v6923_v19 = vld [vmem:[%s10664_s1 + $0x2ec] sm:$0xf0]  ;;  %v4787_v23 = vor.u32 %v6859_v12, %v4786_v11  ;;  %v9005_v57 = vsel %vm3560_vm1, 1.0, %v7365_v63  ;;  %v2898_v11 = vpop.f32.mrf.mxu2 }
 0x131   :  { %3103 = vmatmul.bf16.vlgmr.msra.gmra.mxu2 %v7865_v41  ;;  %v5298_v7 = vld [vmem:[%s10664_s1 + $0x4d0] sm:$0xf]  ;;  %v5043_v26 = vor.u32 %v6923_v19, %v5042_v13 }
 0x132   :  { %3147 = vmatpush.bf16.msrb.mxu2 %v5427_v24  ;;  %3122 = vmatpush.bf16.msrb.mxu0 %v4883_v37  ;;  %v6987_v20 = vld [vmem:[%s10664_s1 + $0x4ec] sm:$0xf0] }
 0x133   :  { %3116 = vmatmul.bf16.vlgmr.msra.gmra.mxu3 %v7846_v34  ;;  %v5554_v21 = vld [vmem:[%s10664_s1 + $0x6d0] sm:$0xf]  ;;  %v5299_v27 = vor.u32 %v6987_v20, %v5298_v7  ;;  %v2911_v7 = vpop.f32.mrf.mxu3 }
 0x134   :  { %3160 = vmatpush.bf16.msrb.mxu3 %v5683_v30  ;;  %3135 = vmatpush.bf16.msrb.mxu1 %v5139_v40  ;;  %v7051_v22 = vld [vmem:[%s10664_s1 + $0x6ec] sm:$0xf0] }
 0x135   :  { %v4754_v24 = vld [vmem:[%s10664_s1 + $0x90] sm:$0xf]  ;;  %v5555_v25 = vor.u32 %v7051_v22, %v5554_v21 }
 0x136   :  { %3148 = vmatpush.bf16.msrb.mxu2 %v5395_v42  ;;  %3123 = vmatpush.bf16.msrb.mxu0 %v4851_v52  ;;  %v6851_v28 = vld [vmem:[%s10664_s1 + $0xac] sm:$0xf0]  ;;  %v3600_v52 = vadd.f32 %v3592_v33, %v8849_v29  ;;  %v4916_v33 = vld [vmem:[%s10664_s1 + $0x1f0] sm:$0xf0] }
 0x137   :  { %v5010_v30 = vld [vmem:[%s10664_s1 + $0x290] sm:$0xf]  ;;  %v4755_v44 = vor.u32 %v6851_v28, %v4754_v24 }
 0x138   :  { %3161 = vmatpush.bf16.msrb.mxu3 %v5651_v47  ;;  %3136 = vmatpush.bf16.msrb.mxu1 %v5107_v53  ;;  %v6915_v31 = vld [vmem:[%s10664_s1 + $0x2ac] sm:$0xf0]  ;;  %v3608_v12 = vsub.f32 %v3600_v52, %v9005_v57 }
 0x139   :  { %v5266_v35 = vld [vmem:[%s10664_s1 + $0x490] sm:$0xf]  ;;  %v5011_v46 = vor.u32 %v6915_v31, %v5010_v30 }
 0x13a   :  { %3149 = vmatpush.bf16.msrb.mxu2 %v5363_v54  ;;  %3124 = vmatpush.bf16.msrb.mxu0 %v4819_v5  ;;  %v6979_v37 = vld [vmem:[%s10664_s1 + $0x4ac] sm:$0xf0]  ;;  %vm3616_vm2 = vcmp.gt.f32.partialorder %v3608_v12, 1.0 }
 0x13b   :  { %v5522_v40 = vld [vmem:[%s10664_s1 + $0x690] sm:$0xf]  ;;  %v5267_v47 = vor.u32 %v6979_v37, %v5266_v35 }
 0x13c   :  { %3162 = vmatpush.bf16.msrb.mxu3 %v5619_v59  ;;  %3137 = vmatpush.bf16.msrb.mxu1 %v5075_v8  ;;  %v7043_v42 = vld [vmem:[%s10664_s1 + $0x6ac] sm:$0xf0] }
 0x13d   :  { %v4722_v48 = vld [vmem:[%s10664_s1 + $0x50] sm:$0xf]  ;;  %v5523_v53 = vor.u32 %v7043_v42, %v5522_v40 }
 0x13e   :  { %3150 = vmatpush.bf16.msrb.mxu2 %v5331_v10  ;;  %3125 = vmatpush.bf16.msrb.mxu0 %v4787_v23  ;;  %v6843_v49 = vld [vmem:[%s10664_s1 + $0x6c] sm:$0xf0]  ;;  %v2871_v23 = vadd.f32 %v8926_v6, %v2858_v62  ;;  %v6887_v6 = vld [vmem:[%s10664_s1 + $0x1d4] sm:$0xf] }
 0x13f   :  { %v4978_v50 = vld [vmem:[%s10664_s1 + $0x250] sm:$0xf]  ;;  %v4723_v60 = vor.u32 %v6843_v49, %v4722_v48 }
 0x140   :  { %3163 = vmatpush.bf16.msrb.mxu3 %v5587_v18  ;;  %3138 = vmatpush.bf16.msrb.mxu1 %v5043_v26  ;;  %v6907_v54 = vld [vmem:[%s10664_s1 + $0x26c] sm:$0xf0] }
 0x141   :  { %v5234_v55 = vld [vmem:[%s10664_s1 + $0x450] sm:$0xf]  ;;  %v4979_v3 = vor.u32 %v6907_v54, %v4978_v50 }
 0x142   :  { %3151 = vmatpush.bf16.msrb.mxu2 %v5299_v27  ;;  %v6971_v56 = vld [vmem:[%s10664_s1 + $0x46c] sm:$0xf0]  ;;  %3126 = vmatpush.bf16.msrb.mxu0 %v4755_v44 }
 0x143   :  { %v5490_v58 = vld [vmem:[%s10664_s1 + $0x650] sm:$0xf]  ;;  %v5235_v5 = vor.u32 %v6971_v56, %v5234_v55 }
 0x144   :  { %3164 = vmatpush.bf16.msrb.mxu3 %v5555_v25  ;;  %v7035_v59 = vld [vmem:[%s10664_s1 + $0x66c] sm:$0xf0]  ;;  %3139 = vmatpush.bf16.msrb.mxu1 %v5011_v46  ;;  %v3648_v25 = vmul.f32 0.95, %v3608_v12  ;;  %v2884_v46 = vadd.f32 %v8937_v16, %v2871_v23  ;;  %v6879_v16 = vld [vmem:[%s10664_s1 + $0x194] sm:$0xf]  ;;  %v2922_v23 = vpop.f32.mrf.mxu0 }
 0x145   :  { %v4690_v61 = vld [vmem:[%s10664_s1 + $0x10] sm:$0xf]  ;;  %v5491_v13 = vor.u32 %v7035_v59, %v5490_v58 }
 0x146   :  { %v6835_v2 = vld [vmem:[%s10664_s1 + $0x2c] sm:$0xf0]  ;;  %3152 = vmatpush.bf16.msrb.mxu2 %v5267_v47  ;;  %3127 = vmatpush.bf16.msrb.mxu0 %v4723_v60  ;;  %v4919_v47 = vor.u32 %v6887_v6, %v4916_v33  ;;  %v3656_v52 = vadd.f32 %v3648_v25, %v8849_v29  ;;  %v2897_v62 = vadd.f32 %v8967_v32, %v2884_v46  ;;  %v6871_v32 = vld [vmem:[%s10664_s1 + $0x154] sm:$0xf] }
 0x147   :  { %v4946_v8 = vld [vmem:[%s10664_s1 + $0x210] sm:$0xf]  ;;  %v4691_v24 = vor.u32 %v6835_v2, %v4690_v61  ;;  %v4887_v60 = vor.u32 %v6879_v16, %v4884_v51  ;;  %v4788_v46 = vld [vmem:[%s10664_s1 + $0xf0] sm:$0xf0] }
 0x148   :  { %v6899_v36 = vld [vmem:[%s10664_s1 + $0x22c] sm:$0xf0]  ;;  %3165 = vmatpush.bf16.msrb.mxu3 %v5523_v53  ;;  %3140 = vmatpush.bf16.msrb.mxu1 %v4979_v3 }
 0x149   :  { %v5202_v10 = vld [vmem:[%s10664_s1 + $0x410] sm:$0xf]  ;;  %v4947_v30 = vor.u32 %v6899_v36, %v4946_v8  ;;  %v4852_v8 = vld [vmem:[%s10664_s1 + $0x170] sm:$0xf0] }
 0x14a   :  { %v6963_v17 = vld [vmem:[%s10664_s1 + $0x42c] sm:$0xf0]  ;;  %3153 = vmatpush.bf16.msrb.mxu2 %v5235_v5  ;;  %3128 = vmatpush.bf16.msrb.mxu0 %v4691_v24  ;;  %v9112_v5 = vsel %vm3616_vm2, 1.0, %v7365_v63  ;;  %v4855_v7 = vor.u32 %v6871_v32, %v4852_v8  ;;  %v6863_v24 = vld [vmem:[%s10664_s1 + $0x114] sm:$0xf]  ;;  %v2961_v8 = vpop.f32.mrf.mxu3 }
 0x14b   :  { %v5458_v18 = vld [vmem:[%s10664_s1 + $0x610] sm:$0xf]  ;;  %v5203_v31 = vor.u32 %v6963_v17, %v5202_v10  ;;  %v9123_v36 = vsub.f32 %v3656_v52, %v9112_v5 }
 0x14c   :  { %v7027_v19 = vld [vmem:[%s10664_s1 + $0x62c] sm:$0xf0]  ;;  %3166 = vmatpush.bf16.msrb.mxu3 %v5491_v13  ;;  %3141 = vmatpush.bf16.msrb.mxu1 %v4947_v30  ;;  %v2935_v30 = vpop.f32.mrf.mxu1 }
 0x14d   :  { %v5938_v20 = vld [vmem:[%s10664_s1 + $0x9d0] sm:$0xf]  ;;  %v5459_v35 = vor.u32 %v7027_v19, %v5458_v18  ;;  %3129 = vmatmul.bf16.vlgmr.msrb.gmra.mxu0 %v7689_v14  ;;  %v2910_v19 = vadd.f32 %v8975_v39, %v2897_v62  ;;  %v4820_v39 = vld [vmem:[%s10664_s1 + $0x130] sm:$0xf0]  ;;  %vm3672_vm5 = vcmp.gt.f32.partialorder %v9123_v36, 1.0 }
 0x14e   :  { %v7147_v21 = vld [vmem:[%s10664_s1 + $0x9ec] sm:$0xf0]  ;;  %3154 = vmatpush.bf16.msrb.mxu2 %v5203_v31 }
 0x14f   :  { %v6194_v22 = vld [vmem:[%s10664_s1 + $0xbd0] sm:$0xf]  ;;  %v5939_v37 = vor.u32 %v7147_v21, %v5938_v20  ;;  %3142 = vmatmul.bf16.vlgmr.msrb.gmra.mxu1 %v7691_v15 }
 0x150   :  { %v7211_v26 = vld [vmem:[%s10664_s1 + $0xbec] sm:$0xf0]  ;;  %3167 = vmatpush.bf16.msrb.mxu3 %v5459_v35 }
 0x151   :  { %v6450_v27 = vld [vmem:[%s10664_s1 + $0xdd0] sm:$0xf]  ;;  %v6195_v40 = vor.u32 %v7211_v26, %v6194_v22  ;;  %3173 = vmatpush.bf16.msra.mxu0 %v5939_v37  ;;  %3155 = vmatmul.bf16.vlgmr.msrb.gmra.mxu2 %v7666_v1  ;;  %v9152_v26 = vmul.f32 0.95, %v9123_v36  ;;  %v6935_v36 = vld [vmem:[%s10664_s1 + $0x354] sm:$0xf] }
 0x152   :  { %v7275_v28 = vld [vmem:[%s10664_s1 + $0xdec] sm:$0xf0] }
 0x153   :  { %v6451_v42 = vor.u32 %v7275_v28, %v6450_v27  ;;  %v5906_v43 = vld [vmem:[%s10664_s1 + $0x990] sm:$0xf]  ;;  %3186 = vmatpush.bf16.msra.mxu1 %v6195_v40  ;;  %3168 = vmatmul.bf16.vlgmr.msrb.gmra.mxu3 %v7678_v9  ;;  %v2923_v27 = vadd.f32 %v2922_v23, %v2910_v19  ;;  %v4823_v40 = vor.u32 %v6863_v24, %v4820_v39 }
 0x154   :  { %v7139_v44 = vld [vmem:[%s10664_s1 + $0x9ac] sm:$0xf0]  ;;  %3212 = vmatpush.bf16.msra.mxu3 %v4919_v47 }
 0x155   :  { %v6162_v45 = vld [vmem:[%s10664_s1 + $0xb90] sm:$0xf]  ;;  %v5907_v53 = vor.u32 %v7139_v44, %v5906_v43  ;;  %3199 = vmatpush.bf16.msra.mxu2 %v6451_v42  ;;  %v9166_v42 = vadd.f32 %v2935_v30, %v2923_v27  ;;  %v4724_v27 = vld [vmem:[%s10664_s1 + $0x70] sm:$0xf0] }
 0x156   :  { %v7203_v48 = vld [vmem:[%s10664_s1 + $0xbac] sm:$0xf0] }
 0x157   :  { %v6418_v49 = vld [vmem:[%s10664_s1 + $0xd90] sm:$0xf]  ;;  %v6163_v54 = vor.u32 %v7203_v48, %v6162_v45  ;;  %3174 = vmatpush.bf16.msra.mxu0 %v5907_v53  ;;  %v6855_v45 = vld [vmem:[%s10664_s1 + $0xd4] sm:$0xf]  ;;  %v478_v48 = vperm.slane %v8504_v4, 2  ;;  %vm3505_vm3 = vcmp.gt.f32.partialorder %v9166_v42, 1.0 }
 0x158   :  { %v7267_v50 = vld [vmem:[%s10664_s1 + $0xdac] sm:$0xf0]  ;;  %3213 = vmatpush.bf16.msra.mxu3 %v4887_v60  ;;  %v6465_v51 = vsel %vm3505_vm3, 1.0, %v7365_v63  ;;  %v6847_v60 = vld [vmem:[%s10664_s1 + $0x94] sm:$0xf] }
 0x159   :  { %v6419_v55 = vor.u32 %v7267_v50, %v6418_v49  ;;  %v5874_v56 = vld [vmem:[%s10664_s1 + $0x950] sm:$0xf]  ;;  %3187 = vmatpush.bf16.msra.mxu1 %v6163_v54  ;;  %v3537_v49 = vmul.f32 0.95, %v9166_v42 }
 0x15a   :  { %v7131_v58 = vld [vmem:[%s10664_s1 + $0x96c] sm:$0xf0] }
 0x15b   :  { %v6130_v59 = vld [vmem:[%s10664_s1 + $0xb50] sm:$0xf]  ;;  %v5875_v10 = vor.u32 %v7131_v58, %v5874_v56  ;;  %3200 = vmatpush.bf16.msra.mxu2 %v6419_v55  ;;  %v3528_v55 = vpack.c.bf16 %v6465_v51, %v8918_v0  ;;  %v3545_v56 = vadd.f32 %v3537_v49, %v9166_v42  ;;  %v4791_v58 = vor.u32 %v6855_v45, %v4788_v46  ;;  %v4756_v0 = vld [vmem:[%s10664_s1 + $0xb0] sm:$0xf0] }
 0x15c   :  { %v7195_v61 = vld [vmem:[%s10664_s1 + $0xb6c] sm:$0xf0]  ;;  %3214 = vmatpush.bf16.msra.mxu3 %v4855_v7  ;;  %v4759_v39 = vor.u32 %v6847_v60, %v4756_v0  ;;  %v6831_v45 = vld [vmem:[%s10664_s1 + $0x14] sm:$0xf] }
 0x15d   :  { %v6386_v2 = vld [vmem:[%s10664_s1 + $0xd50] sm:$0xf]  ;;  %v6131_v11 = vor.u32 %v7195_v61, %v6130_v59  ;;  %3175 = vmatpush.bf16.msra.mxu0 %v5875_v10  ;;  %v2948_v61 = vpop.f32.mrf.mxu2  ;;  %v2924_v10 = vpop.f32.mrf.mxu0  ;;  %3532 = vst [vmem:[#allocation2] sm:$0xff] %v3528_v55  ;;  %v4692_v46 = vld [vmem:[%s10664_s1 + $0x30] sm:$0xf0] }
 0x15e   :  { %v7259_v3 = vld [vmem:[%s10664_s1 + $0xd6c] sm:$0xf0]  ;;  %v2949_v32 = vadd.f32 %v2948_v61, %v478_v48  ;;  %v6951_v49 = vld [vmem:[%s10664_s1 + $0x3d4] sm:$0xf] }
 0x15f   :  { %v6387_v12 = vor.u32 %v7259_v3, %v6386_v2  ;;  %v5842_v13 = vld [vmem:[%s10664_s1 + $0x910] sm:$0xf]  ;;  %3188 = vmatpush.bf16.msra.mxu1 %v6131_v11  ;;  %v3553_v11 = vsub.f32 %v3545_v56, %v6465_v51  ;;  %v7015_v51 = vld [vmem:[%s10664_s1 + $0x5d4] sm:$0xf] }
 0x160   :  { %v7123_v17 = vld [vmem:[%s10664_s1 + $0x92c] sm:$0xf0]  ;;  %3215 = vmatpush.bf16.msra.mxu3 %v4823_v40  ;;  %v9231_v23 = vadd.f32 %v2961_v8, %v2949_v32  ;;  %v5684_v56 = vld [vmem:[%s10664_s1 + $0x7f0] sm:$0xf0] }
 0x161   :  { %v6098_v18 = vld [vmem:[%s10664_s1 + $0xb10] sm:$0xf]  ;;  %v5843_v28 = vor.u32 %v7123_v17, %v5842_v13  ;;  %3201 = vmatpush.bf16.msra.mxu2 %v6387_v12  ;;  %vm3561_vm4 = vcmp.gt.f32.partialorder %v3553_v11, 1.0  ;;  %v3593_v24 = vmul.f32 0.95, %v3553_v11 }
 0x162   :  { %v7187_v20 = vld [vmem:[%s10664_s1 + $0xb2c] sm:$0xf0]  ;;  %v7143_v61 = vld [vmem:[%s10664_s1 + $0x9d4] sm:$0xf] }
 0x163   :  { %v6354_v21 = vld [vmem:[%s10664_s1 + $0xd10] sm:$0xf]  ;;  %v6099_v6 = vor.u32 %v7187_v20, %v6098_v18  ;;  %3176 = vmatpush.bf16.msra.mxu0 %v5843_v28  ;;  %v2937_v18 = vpop.f32.mrf.mxu1  ;;  %v6473_v28 = vsel %vm3561_vm4, 1.0, %v7365_v63  ;;  %v5940_v0 = vld [vmem:[%s10664_s1 + $0x9f0] sm:$0xf0] }
 0x164   :  { %v7251_v22 = vld [vmem:[%s10664_s1 + $0xd2c] sm:$0xf0]  ;;  %3216 = vmatpush.bf16.msra.mxu3 %v4791_v58  ;;  %v3712_v58 = vadd.f32 %v9152_v26, %v8849_v29  ;;  %v4695_v29 = vor.u32 %v6831_v45, %v4692_v46  ;;  %v6943_v32 = vld [vmem:[%s10664_s1 + $0x394] sm:$0xf] }
 0x165   :  { %v5810_v31 = vld [vmem:[%s10664_s1 + $0x8d0] sm:$0xf]  ;;  %v6355_v33 = vor.u32 %v7251_v22, %v6354_v21  ;;  %3189 = vmatpush.bf16.msra.mxu1 %v6099_v6  ;;  %v6839_v22 = vld [vmem:[%s10664_s1 + $0x54] sm:$0xf]  ;;  %v3584_v6 = vpack.c.bf16 %v6473_v28, %v9005_v57 }
 0x166   :  { %v7115_v25 = vld [vmem:[%s10664_s1 + $0x8ec] sm:$0xf0]  ;;  %v4727_v48 = vor.u32 %v6839_v22, %v4724_v27  ;;  %v5140_v11 = vld [vmem:[%s10664_s1 + $0x3b0] sm:$0xf0] }
 0x167   :  { %v6066_v35 = vld [vmem:[%s10664_s1 + $0xad0] sm:$0xf]  ;;  %v5811_v50 = vor.u32 %v7115_v25, %v5810_v31  ;;  %3202 = vmatpush.bf16.msra.mxu2 %v6355_v33  ;;  %v3601_v33 = vadd.f32 %v3593_v24, %v9166_v42  ;;  %3588 = vst [vmem:[#allocation2 + $0x20] sm:$0xff] %v3584_v6  ;;  %v7071_v18 = vld [vmem:[%s10664_s1 + $0x794] sm:$0xf] }
 0x168   :  { %v7179_v37 = vld [vmem:[%s10664_s1 + $0xaec] sm:$0xf0]  ;;  %3217 = vmatpush.bf16.msra.mxu3 %v4759_v39  ;;  %v5143_v39 = vor.u32 %v6943_v32, %v5140_v11  ;;  %v6999_v6 = vld [vmem:[%s10664_s1 + $0x554] sm:$0xf] }
 0x169   :  { %v6322_v43 = vld [vmem:[%s10664_s1 + $0xcd0] sm:$0xf]  ;;  %v6067_v52 = vor.u32 %v7179_v37, %v6066_v35  ;;  %3177 = vmatpush.bf16.msra.mxu0 %v5811_v50  ;;  %v5172_v50 = vld [vmem:[%s10664_s1 + $0x3f0] sm:$0xf0] }
 0x16a   :  { %v7243_v44 = vld [vmem:[%s10664_s1 + $0xcec] sm:$0xf0]  ;;  %v5175_v26 = vor.u32 %v6951_v49, %v5172_v50  ;;  %v5076_v50 = vld [vmem:[%s10664_s1 + $0x330] sm:$0xf0] }
 0x16b   :  { %v5778_v47 = vld [vmem:[%s10664_s1 + $0x890] sm:$0xf]  ;;  %v6323_v53 = vor.u32 %v7243_v44, %v6322_v43  ;;  %3190 = vmatpush.bf16.msra.mxu1 %v6067_v52  ;;  %v5428_v52 = vld [vmem:[%s10664_s1 + $0x5f0] sm:$0xf0]  ;;  %v9396_v32 = vpop.f32.mrf.mxu1 }
 0x16c   :  { %v7107_v16 = vld [vmem:[%s10664_s1 + $0x8ac] sm:$0xf0]  ;;  %3218 = vmatpush.bf16.msra.mxu3 %v4727_v48  ;;  %v5431_v8 = vor.u32 %v7015_v51, %v5428_v52  ;;  %v5332_v51 = vld [vmem:[%s10664_s1 + $0x530] sm:$0xf0] }
 0x16d   :  { %v6034_v4 = vld [vmem:[%s10664_s1 + $0xa90] sm:$0xf]  ;;  %v5779_v12 = vor.u32 %v7107_v16, %v5778_v47  ;;  %3203 = vmatpush.bf16.msra.mxu2 %v6323_v53  ;;  %v3609_v47 = vsub.f32 %v3601_v33, %v6473_v28  ;;  %v2950_v16 = vpop.f32.mrf.mxu2  ;;  %v7079_v53 = vld [vmem:[%s10664_s1 + $0x7d4] sm:$0xf] }
 0x16e   :  { %v7171_v54 = vld [vmem:[%s10664_s1 + $0xaac] sm:$0xf0]  ;;  %v5687_v10 = vor.u32 %v7079_v53, %v5684_v56  ;;  %v6991_v16 = vld [vmem:[%s10664_s1 + $0x514] sm:$0xf] }
 0x16f   :  { %v6290_v59 = vld [vmem:[%s10664_s1 + $0xc90] sm:$0xf]  ;;  %v6035_v19 = vor.u32 %v7171_v54, %v6034_v4  ;;  %3178 = vmatpush.bf16.msra.mxu0 %v5779_v12  ;;  %v2963_v4 = vpop.f32.mrf.mxu3  ;;  %vm3617_vm6 = vcmp.gt.f32.partialorder %v3609_v47, 1.0  ;;  %v3649_v54 = vmul.f32 0.95, %v3609_v47 }
 0x170   :  { %v7235_v62 = vld [vmem:[%s10664_s1 + $0xcac] sm:$0xf0]  ;;  %v7007_v12 = vld [vmem:[%s10664_s1 + $0x594] sm:$0xf]  ;;  %3219 = vmatpush.bf16.msra.mxu3 %v4695_v29 }
 0x171   :  { %v5746_v2 = vld [vmem:[%s10664_s1 + $0x850] sm:$0xf]  ;;  %v6291_v7 = vor.u32 %v7235_v62, %v6290_v59  ;;  %3191 = vmatpush.bf16.msra.mxu1 %v6035_v19  ;;  %v6481_v59 = vsel %vm3617_vm6, 1.0, %v7365_v63  ;;  %v5652_v19 = vld [vmem:[%s10664_s1 + $0x7b0] sm:$0xf0] }
 0x172   :  { %v7099_v3 = vld [vmem:[%s10664_s1 + $0x86c] sm:$0xf0]  ;;  %v6927_v47 = vld [vmem:[%s10664_s1 + $0x314] sm:$0xf] }
 0x173   :  { %v6002_v13 = vld [vmem:[%s10664_s1 + $0xa50] sm:$0xf]  ;;  %v5747_v25 = vor.u32 %v7099_v3, %v5746_v2  ;;  %3204 = vmatpush.bf16.msra.mxu2 %v6291_v7  ;;  %v3640_v2 = vpack.c.bf16 %v6481_v59, %v9112_v5  ;;  %v3657_v3 = vadd.f32 %v3649_v54, %v9166_v42  ;;  %v5396_v5 = vld [vmem:[%s10664_s1 + $0x5b0] sm:$0xf0]  ;;  %v6488_v7 = vsel %vm3672_vm5, 1.0, %v7365_v63  ;;  %3220 = vmatmul.bf16.vlgmr.msra.gmra.mxu3 %v7689_v14 }
 0x174   :  { %v7163_v17 = vld [vmem:[%s10664_s1 + $0xa6c] sm:$0xf0]  ;;  %v3720_v22 = vsub.f32 %v3712_v58, %v6488_v7  ;;  %v5399_v28 = vor.u32 %v7007_v12, %v5396_v5  ;;  %v7055_v53 = vld [vmem:[%s10664_s1 + $0x714] sm:$0xf] }
 0x175   :  { %v6258_v20 = vld [vmem:[%s10664_s1 + $0xc50] sm:$0xf]  ;;  %v6003_v43 = vor.u32 %v7163_v17, %v6002_v13  ;;  %3179 = vmatpush.bf16.msra.mxu0 %v5747_v25  ;;  %3644 = vst [vmem:[#allocation2 + $0x40] sm:$0xff] %v3640_v2  ;;  %v3665_v13 = vsub.f32 %v3657_v3, %v6481_v59  ;;  %v5943_v17 = vor.u32 %v7143_v61, %v5940_v0  ;;  %v5588_v4 = vld [vmem:[%s10664_s1 + $0x730] sm:$0xf0]  ;;  %v9385_v61 = vpop.f32.mrf.mxu0 }
 0x176   :  { %v7227_v21 = vld [vmem:[%s10664_s1 + $0xc6c] sm:$0xf0]  ;;  %vm9349_vm8 = vcmp.gt.f32.partialorder %v3720_v22, 1.0  ;;  %v7119_v56 = vld [vmem:[%s10664_s1 + $0x914] sm:$0xf]  ;;  %v5335_v0 = vor.u32 %v6991_v16, %v5332_v51  ;;  %v5591_v2 = vor.u32 %v7055_v53, %v5588_v4 }
 0x177   :  { %v5714_v30 = vld [vmem:[%s10664_s1 + $0x810] sm:$0xf]  ;;  %v6259_v57 = vor.u32 %v7227_v21, %v6258_v20  ;;  %3192 = vmatpush.bf16.msra.mxu1 %v6003_v43  ;;  %v7135_v20 = vld [vmem:[%s10664_s1 + $0x994] sm:$0xf]  ;;  %vm3673_vm7 = vcmp.gt.f32.partialorder %v3665_v13, 1.0  ;;  %3264 = vmatpush.bf16.msrb.mxu3 %v5943_v17  ;;  %v6496_v54 = vsel %vm9349_vm8, 1.0, %v7365_v63 }
 0x178   :  { %v7091_v31 = vld [vmem:[%s10664_s1 + $0x82c] sm:$0xf0]  ;;  %v5908_v21 = vld [vmem:[%s10664_s1 + $0x9b0] sm:$0xf0]  ;;  %v3705_v24 = vmul.f32 0.95, %v3665_v13 }
 0x179   :  { %v5970_v35 = vld [vmem:[%s10664_s1 + $0xa10] sm:$0xf]  ;;  %v5715_v55 = vor.u32 %v7091_v31, %v5714_v30  ;;  %3205 = vmatpush.bf16.msra.mxu2 %v6259_v57  ;;  %v6489_v27 = vsel %vm3673_vm7, 1.0, %v7365_v63  ;;  %v5655_v30 = vor.u32 %v7071_v18, %v5652_v19  ;;  %v5108_v31 = vld [vmem:[%s10664_s1 + $0x370] sm:$0xf0] }
 0x17a   :  { %v7155_v37 = vld [vmem:[%s10664_s1 + $0xa2c] sm:$0xf0]  ;;  %v3696_v33 = vpack.c.bf16 %v6489_v27, %v6488_v7  ;;  %v3713_v25 = vadd.f32 %v3705_v24, %v9166_v42  ;;  %v5620_v43 = vld [vmem:[%s10664_s1 + $0x770] sm:$0xf0]  ;;  %v5111_v46 = vor.u32 %v6935_v36, %v5108_v31 }
 0x17b   :  { %v6226_v40 = vld [vmem:[%s10664_s1 + $0xc10] sm:$0xf]  ;;  %v5971_v62 = vor.u32 %v7155_v37, %v5970_v35  ;;  %3180 = vmatpush.bf16.msra.mxu0 %v5715_v55  ;;  %v5911_v35 = vor.u32 %v7135_v20, %v5908_v21  ;;  %v5364_v37 = vld [vmem:[%s10664_s1 + $0x570] sm:$0xf0]  ;;  %v9419_v21 = vpop.f32.mrf.mxu2 }
 0x17c   :  { %v7219_v44 = vld [vmem:[%s10664_s1 + $0xc2c] sm:$0xf0]  ;;  %v7127_v42 = vld [vmem:[%s10664_s1 + $0x954] sm:$0xf]  ;;  %3700 = vst [vmem:[#allocation2 + $0x60] sm:$0xff] %v3696_v33  ;;  %v3721_v45 = vsub.f32 %v3713_v25, %v6489_v27  ;;  %v5367_v48 = vor.u32 %v6999_v6, %v5364_v37  ;;  %v9430_v27 = vpop.f32.mrf.mxu3 }
 0x17d   :  { %v6227_v60 = vor.u32 %v7219_v44, %v6226_v40  ;;  %3193 = vmatpush.bf16.msra.mxu1 %v5971_v62  ;;  %v7063_v40 = vld [vmem:[%s10664_s1 + $0x754] sm:$0xf]  ;;  %3265 = vmatpush.bf16.msrb.mxu3 %v5911_v35  ;;  %v5079_v62 = vor.u32 %v6927_v47, %v5076_v50  ;;  %v2976_v6 = vpop.f32.mrf.mxu0 }
 0x17e   :  { %3181 = vmatmul.bf16.vlgmr.msra.gmra.mxu0 %v7857_v38  ;;  %v5876_v57 = vld [vmem:[%s10664_s1 + $0x970] sm:$0xf0]  ;;  %v5623_v49 = vor.u32 %v7063_v40, %v5620_v43  ;;  %vm3729_vm9 = vcmp.gt.f32.partialorder %v3721_v45, 1.0  ;;  %v2989_v43 = vpop.f32.mrf.mxu1 }
 0x17f   :  { %3206 = vmatpush.bf16.msra.mxu2 %v6227_v60  ;;  %3225 = vmatpush.bf16.msrb.mxu0 %v5175_v26  ;;  %v5879_v52 = vor.u32 %v7127_v42, %v5876_v57  ;;  %v6497_v55 = vsel %vm3729_vm9, 1.0, %v7365_v63  ;;  %v5844_v58 = vld [vmem:[%s10664_s1 + $0x930] sm:$0xf0] }
 0x180   :  { %3194 = vmatmul.bf16.vlgmr.msra.gmra.mxu1 %v7865_v41  ;;  %v3752_v59 = vpack.c.bf16 %v6497_v55, %v6496_v54  ;;  %v6919_v60 = vld [vmem:[%s10664_s1 + $0x2d4] sm:$0xf] }
 0x181   :  { %3238 = vmatpush.bf16.msrb.mxu1 %v5431_v8  ;;  %v5044_v3 = vld [vmem:[%s10664_s1 + $0x2f0] sm:$0xf0]  ;;  %3266 = vmatpush.bf16.msrb.mxu3 %v5879_v52  ;;  %v5847_v8 = vor.u32 %v7119_v56, %v5844_v58 }
 0x182   :  { %3207 = vmatmul.bf16.vlgmr.msra.gmra.mxu2 %v7846_v34  ;;  %v6983_v29 = vld [vmem:[%s10664_s1 + $0x4d4] sm:$0xf]  ;;  %3756 = vst [vmem:[#allocation2 + $0x80] sm:$0xff] %v3752_v59  ;;  %v5047_v13 = vor.u32 %v6919_v60, %v5044_v3 }
 0x183   :  { %3251 = vmatpush.bf16.msrb.mxu2 %v5687_v10  ;;  %3226 = vmatpush.bf16.msrb.mxu0 %v5143_v39  ;;  %v5300_v26 = vld [vmem:[%s10664_s1 + $0x4f0] sm:$0xf0]  ;;  %v3002_v54 = vpop.f32.mrf.mxu2 }
 0x184   :  { %v7047_v10 = vld [vmem:[%s10664_s1 + $0x6d4] sm:$0xf]  ;;  %v5303_v17 = vor.u32 %v6983_v29, %v5300_v26  ;;  %v4922_v26 = vld [vmem:[%s10664_s1 + $0x1d8] sm:$0xf] }
 0x185   :  { %3239 = vmatpush.bf16.msrb.mxu1 %v5399_v28  ;;  %v5556_v11 = vld [vmem:[%s10664_s1 + $0x6f0] sm:$0xf0]  ;;  %3267 = vmatpush.bf16.msrb.mxu3 %v5847_v8  ;;  %v6892_v8 = vld [vmem:[%s10664_s1 + $0x1f4] sm:$0xf0] }
 0x186   :  { %v7111_v12 = vld [vmem:[%s10664_s1 + $0x8d4] sm:$0xf]  ;;  %v5559_v18 = vor.u32 %v7047_v10, %v5556_v11  ;;  %v6868_v54 = vld [vmem:[%s10664_s1 + $0x134] sm:$0xf0] }
 0x187   :  { %3252 = vmatpush.bf16.msrb.mxu2 %v5655_v30  ;;  %3227 = vmatpush.bf16.msrb.mxu0 %v5111_v46  ;;  %v5812_v5 = vld [vmem:[%s10664_s1 + $0x8f0] sm:$0xf0] }
 0x188   :  { %v6911_v19 = vld [vmem:[%s10664_s1 + $0x294] sm:$0xf]  ;;  %v5815_v22 = vor.u32 %v7111_v12, %v5812_v5  ;;  %v5178_v12 = vld [vmem:[%s10664_s1 + $0x3d8] sm:$0xf] }
 0x189   :  { %3240 = vmatpush.bf16.msrb.mxu1 %v5367_v48  ;;  %v5012_v7 = vld [vmem:[%s10664_s1 + $0x2b0] sm:$0xf0]  ;;  %v6956_v5 = vld [vmem:[%s10664_s1 + $0x3f4] sm:$0xf0] }
 0x18a   :  { %v6975_v20 = vld [vmem:[%s10664_s1 + $0x494] sm:$0xf]  ;;  %v5015_v31 = vor.u32 %v6911_v19, %v5012_v7  ;;  %3268 = vmatpush.bf16.msrb.mxu3 %v5815_v22  ;;  %v4923_v19 = vor.u32 %v6892_v8, %v4922_v26 }
 0x18b   :  { %3253 = vmatpush.bf16.msrb.mxu2 %v5623_v49  ;;  %3228 = vmatpush.bf16.msrb.mxu0 %v5079_v62  ;;  %v5268_v24 = vld [vmem:[%s10664_s1 + $0x4b0] sm:$0xf0]  ;;  %v3015_v62 = vpop.f32.mrf.mxu3 }
 0x18c   :  { %v7039_v39 = vld [vmem:[%s10664_s1 + $0x694] sm:$0xf]  ;;  %v5271_v33 = vor.u32 %v6975_v20, %v5268_v24  ;;  %v2975_v24 = vadd.f32 %v9385_v61, %v9231_v23  ;;  %v5146_v23 = vld [vmem:[%s10664_s1 + $0x398] sm:$0xf] }
 0x18d   :  { %3241 = vmatpush.bf16.msrb.mxu1 %v5335_v0  ;;  %v5524_v36 = vld [vmem:[%s10664_s1 + $0x6b0] sm:$0xf0]  ;;  %v6948_v61 = vld [vmem:[%s10664_s1 + $0x3b4] sm:$0xf0] }
 0x18e   :  { %v7103_v28 = vld [vmem:[%s10664_s1 + $0x894] sm:$0xf]  ;;  %v5527_v25 = vor.u32 %v7039_v39, %v5524_v36  ;;  %v5179_v39 = vor.u32 %v6956_v5, %v5178_v12  ;;  %v5147_v43 = vor.u32 %v6948_v61, %v5146_v23  ;;  %v5050_v12 = vld [vmem:[%s10664_s1 + $0x2d8] sm:$0xf] }
 0x18f   :  { %3254 = vmatpush.bf16.msrb.mxu2 %v5591_v2  ;;  %v5780_v30 = vld [vmem:[%s10664_s1 + $0x8b0] sm:$0xf0]  ;;  %3229 = vmatpush.bf16.msrb.mxu0 %v5047_v13  ;;  %v5018_v23 = vld [vmem:[%s10664_s1 + $0x298] sm:$0xf] }
 0x190   :  { %v6903_v35 = vld [vmem:[%s10664_s1 + $0x254] sm:$0xf]  ;;  %v5783_v42 = vor.u32 %v7103_v28, %v5780_v30  ;;  %v4890_v28 = vld [vmem:[%s10664_s1 + $0x198] sm:$0xf] }
 0x191   :  { %3242 = vmatpush.bf16.msrb.mxu1 %v5303_v17  ;;  %v4980_v37 = vld [vmem:[%s10664_s1 + $0x270] sm:$0xf0]  ;;  %v6884_v30 = vld [vmem:[%s10664_s1 + $0x1b4] sm:$0xf0] }
 0x192   :  { %v6967_v40 = vld [vmem:[%s10664_s1 + $0x454] sm:$0xf]  ;;  %v4983_v48 = vor.u32 %v6903_v35, %v4980_v37  ;;  %3269 = vmatpush.bf16.msrb.mxu3 %v5783_v42  ;;  %v6916_v61 = vld [vmem:[%s10664_s1 + $0x2b4] sm:$0xf0] }
 0x193   :  { %3255 = vmatpush.bf16.msrb.mxu2 %v5559_v18  ;;  %v5236_v57 = vld [vmem:[%s10664_s1 + $0x470] sm:$0xf0]  ;;  %3230 = vmatpush.bf16.msrb.mxu0 %v5015_v31 }
 0x194   :  { %v7031_v44 = vld [vmem:[%s10664_s1 + $0x654] sm:$0xf]  ;;  %v5239_v16 = vor.u32 %v6967_v40, %v5236_v57  ;;  %v2988_v40 = vadd.f32 %v9396_v32, %v2975_v24  ;;  %v4858_v57 = vld [vmem:[%s10664_s1 + $0x158] sm:$0xf] }
 0x195   :  { %v5492_v45 = vld [vmem:[%s10664_s1 + $0x670] sm:$0xf0]  ;;  %3243 = vmatpush.bf16.msrb.mxu1 %v5271_v33  ;;  %v4891_v33 = vor.u32 %v6884_v30, %v4890_v28  ;;  %v5114_v32 = vld [vmem:[%s10664_s1 + $0x358] sm:$0xf]  ;;  %v9637_v28 = vpop.f32.mrf.mxu2  ;;  %v9639_v30 = vpop.f32.mrf.mxu3 }
 0x196   :  { %v7095_v46 = vld [vmem:[%s10664_s1 + $0x854] sm:$0xf]  ;;  %v5495_v51 = vor.u32 %v7031_v44, %v5492_v45  ;;  %v6876_v44 = vld [vmem:[%s10664_s1 + $0x174] sm:$0xf0] }
 0x197   :  { %v5748_v47 = vld [vmem:[%s10664_s1 + $0x870] sm:$0xf0]  ;;  %3256 = vmatpush.bf16.msrb.mxu2 %v5527_v25  ;;  %3231 = vmatpush.bf16.msrb.mxu0 %v4983_v48  ;;  %v6940_v45 = vld [vmem:[%s10664_s1 + $0x374] sm:$0xf0]  ;;  %v4859_v48 = vor.u32 %v6876_v44, %v4858_v57  ;;  %v5019_v57 = vor.u32 %v6916_v61, %v5018_v23 }
 0x198   :  { %v6895_v49 = vld [vmem:[%s10664_s1 + $0x214] sm:$0xf]  ;;  %v5751_v55 = vor.u32 %v7095_v46, %v5748_v47  ;;  %v7012_v61 = vld [vmem:[%s10664_s1 + $0x5b4] sm:$0xf0] }
 0x199   :  { %v4948_v50 = vld [vmem:[%s10664_s1 + $0x230] sm:$0xf0]  ;;  %3244 = vmatpush.bf16.msrb.mxu1 %v5239_v16 }
 0x19a   :  { %v6959_v52 = vld [vmem:[%s10664_s1 + $0x414] sm:$0xf]  ;;  %v4951_v3 = vor.u32 %v6895_v49, %v4948_v50  ;;  %3270 = vmatpush.bf16.msrb.mxu3 %v5751_v55  ;;  %v3026_v55 = vpop.f32.mrf.mxu0 }
 0x19b   :  { %v5204_v53 = vld [vmem:[%s10664_s1 + $0x430] sm:$0xf0]  ;;  %3257 = vmatpush.bf16.msrb.mxu2 %v5495_v51  ;;  %v3001_v51 = vadd.f32 %v9419_v21, %v2988_v40  ;;  %v6932_v21 = vld [vmem:[%s10664_s1 + $0x334] sm:$0xf0] }
 0x19c   :  { %v7023_v4 = vld [vmem:[%s10664_s1 + $0x614] sm:$0xf]  ;;  %v5207_v10 = vor.u32 %v6959_v52, %v5204_v53  ;;  %3232 = vmatpush.bf16.msrb.mxu0 %v4951_v3  ;;  %v5115_v52 = vor.u32 %v6940_v45, %v5114_v32  ;;  %v9599_v3 = vpop.f32.mrf.mxu1  ;;  %v4730_v32 = vld [vmem:[%s10664_s1 + $0x58] sm:$0xf] }
 0x19d   :  { %v5460_v56 = vld [vmem:[%s10664_s1 + $0x630] sm:$0xf0]  ;;  %v6844_v45 = vld [vmem:[%s10664_s1 + $0x74] sm:$0xf0] }
 0x19e   :  { %v7087_v58 = vld [vmem:[%s10664_s1 + $0x814] sm:$0xf]  ;;  %v5463_v11 = vor.u32 %v7023_v4, %v5460_v56  ;;  %3245 = vmatpush.bf16.msrb.mxu1 %v5207_v10  ;;  %v4826_v4 = vld [vmem:[%s10664_s1 + $0x118] sm:$0xf] }
 0x19f   :  { %v5716_v59 = vld [vmem:[%s10664_s1 + $0x830] sm:$0xf0]  ;;  %3233 = vmatmul.bf16.vlgmr.msrb.gmra.mxu0 %v7691_v15  ;;  %v5082_v56 = vld [vmem:[%s10664_s1 + $0x318] sm:$0xf]  ;;  %v4827_v62 = vor.u32 %v6868_v54, %v4826_v4 }
 0x1a0   :  { %v7207_v60 = vld [vmem:[%s10664_s1 + $0xbd4] sm:$0xf]  ;;  %v5719_v13 = vor.u32 %v7087_v58, %v5716_v59  ;;  %3258 = vmatpush.bf16.msrb.mxu2 %v5463_v11  ;;  %v5083_v26 = vor.u32 %v6932_v21, %v5082_v56  ;;  %v4794_v10 = vld [vmem:[%s10664_s1 + $0xd8] sm:$0xf] }
 0x1a1   :  { %v6196_v0 = vld [vmem:[%s10664_s1 + $0xbf0] sm:$0xf0]  ;;  %3246 = vmatmul.bf16.vlgmr.msrb.gmra.mxu1 %v7666_v1  ;;  %v6860_v11 = vld [vmem:[%s10664_s1 + $0xf4] sm:$0xf0] }
 0x1a2   :  { %v7271_v2 = vld [vmem:[%s10664_s1 + $0xdd4] sm:$0xf]  ;;  %v6199_v17 = vor.u32 %v7207_v60, %v6196_v0  ;;  %3271 = vmatpush.bf16.msrb.mxu3 %v5719_v13  ;;  %v4698_v54 = vld [vmem:[%s10664_s1 + $0x18] sm:$0xf] }
 0x1a3   :  { %v6452_v29 = vld [vmem:[%s10664_s1 + $0xdf0] sm:$0xf0]  ;;  %3259 = vmatmul.bf16.vlgmr.msrb.gmra.mxu2 %v7678_v9  ;;  %v4954_v21 = vld [vmem:[%s10664_s1 + $0x218] sm:$0xf] }
 0x1a4   :  { %v6455_v18 = vor.u32 %v7271_v2, %v6452_v29  ;;  %v7199_v7 = vld [vmem:[%s10664_s1 + $0xb94] sm:$0xf]  ;;  %3277 = vmatpush.bf16.msra.mxu0 %v6199_v17  ;;  %3303 = vmatpush.bf16.msra.mxu2 %v4923_v19  ;;  %v3014_v29 = vadd.f32 %v9430_v27, %v3001_v51  ;;  %v6924_v27 = vld [vmem:[%s10664_s1 + $0x2f4] sm:$0xf0] }
 0x1a5   :  { %v6164_v20 = vld [vmem:[%s10664_s1 + $0xbb0] sm:$0xf0]  ;;  %3272 = vmatmul.bf16.vlgmr.msrb.gmra.mxu3 %v7857_v38 }
 0x1a6   :  { %v7263_v22 = vld [vmem:[%s10664_s1 + $0xd94] sm:$0xf]  ;;  %v6167_v31 = vor.u32 %v7199_v7, %v6164_v20  ;;  %3290 = vmatpush.bf16.msra.mxu1 %v6455_v18  ;;  %3316 = vmatpush.bf16.msra.mxu3 %v5179_v39  ;;  %v9617_v5 = vadd.f32 %v3026_v55, %v3014_v29  ;;  %v4795_v18 = vor.u32 %v6860_v11, %v4794_v10  ;;  %v4762_v39 = vld [vmem:[%s10664_s1 + $0x98] sm:$0xf] }
 0x1a7   :  { %v6420_v36 = vld [vmem:[%s10664_s1 + $0xdb0] sm:$0xf0]  ;;  %v6836_v55 = vld [vmem:[%s10664_s1 + $0x34] sm:$0xf0] }
 0x1a8   :  { %v6423_v6 = vor.u32 %v7263_v22, %v6420_v36  ;;  %v7191_v25 = vld [vmem:[%s10664_s1 + $0xb54] sm:$0xf]  ;;  %3278 = vmatpush.bf16.msra.mxu0 %v6167_v31  ;;  %3304 = vmatpush.bf16.msra.mxu2 %v4891_v33  ;;  %v5051_v22 = vor.u32 %v6924_v27, %v5050_v12  ;;  %v6852_v36 = vld [vmem:[%s10664_s1 + $0xb4] sm:$0xf0]  ;;  %v3028_v31 = vpop.f32.mrf.mxu0  ;;  %vm3506_vm10 = vcmp.gt.f32.partialorder %v9617_v5, 1.0 }
 0x1a9   :  { %v6132_v35 = vld [vmem:[%s10664_s1 + $0xb70] sm:$0xf0]  ;;  %v7084_v12 = vld [vmem:[%s10664_s1 + $0x7f4] sm:$0xf0] }
 0x1aa   :  { %v7255_v37 = vld [vmem:[%s10664_s1 + $0xd54] sm:$0xf]  ;;  %v6135_v46 = vor.u32 %v7191_v25, %v6132_v35  ;;  %3291 = vmatpush.bf16.msra.mxu1 %v6423_v6  ;;  %3317 = vmatpush.bf16.msra.mxu3 %v5147_v43  ;;  %v3538_v6 = vmul.f32 0.95, %v9617_v5  ;;  %v4763_v35 = vor.u32 %v6852_v36, %v4762_v39  ;;  %v5946_v27 = vld [vmem:[%s10664_s1 + $0x9d8] sm:$0xf] }
 0x1ab   :  { %v6388_v42 = vld [vmem:[%s10664_s1 + $0xd70] sm:$0xf0]  ;;  %v5658_v31 = vld [vmem:[%s10664_s1 + $0x798] sm:$0xf] }
 0x1ac   :  { %v6391_v47 = vor.u32 %v7255_v37, %v6388_v42  ;;  %v7183_v49 = vld [vmem:[%s10664_s1 + $0xb14] sm:$0xf]  ;;  %3279 = vmatpush.bf16.msra.mxu0 %v6135_v46  ;;  %3305 = vmatpush.bf16.msra.mxu2 %v4859_v48  ;;  %v3041_v42 = vpop.f32.mrf.mxu1  ;;  %v4986_v46 = vld [vmem:[%s10664_s1 + $0x258] sm:$0xf] }
 0x1ad   :  { %v6100_v50 = vld [vmem:[%s10664_s1 + $0xb30] sm:$0xf0]  ;;  %v5370_v42 = vld [vmem:[%s10664_s1 + $0x558] sm:$0xf] }
 0x1ae   :  { %v7247_v16 = vld [vmem:[%s10664_s1 + $0xd14] sm:$0xf]  ;;  %v6103_v58 = vor.u32 %v7183_v49, %v6100_v50  ;;  %3292 = vmatpush.bf16.msra.mxu1 %v6391_v47  ;;  %3318 = vmatpush.bf16.msra.mxu3 %v5115_v52  ;;  %v6908_v47 = vld [vmem:[%s10664_s1 + $0x274] sm:$0xf0]  ;;  %v3546_v49 = vadd.f32 %v3538_v6, %v9617_v5 }
 0x1af   :  { %v6356_v53 = vld [vmem:[%s10664_s1 + $0xd30] sm:$0xf0]  ;;  %v4987_v56 = vor.u32 %v6908_v47, %v4986_v46  ;;  %v7076_v6 = vld [vmem:[%s10664_s1 + $0x7b4] sm:$0xf0] }
 0x1b0   :  { %v6359_v59 = vor.u32 %v7247_v16, %v6356_v53  ;;  %v7175_v60 = vld [vmem:[%s10664_s1 + $0xad4] sm:$0xf]  ;;  %3280 = vmatpush.bf16.msra.mxu0 %v6103_v58  ;;  %3306 = vmatpush.bf16.msra.mxu2 %v4827_v62  ;;  %v4731_v53 = vor.u32 %v6844_v45, %v4730_v32  ;;  %v6900_v58 = vld [vmem:[%s10664_s1 + $0x234] sm:$0xf0]  ;;  %v3054_v62 = vpop.f32.mrf.mxu2 }
 0x1b1   :  { %v6068_v0 = vld [vmem:[%s10664_s1 + $0xaf0] sm:$0xf0]  ;;  %v7004_v45 = vld [vmem:[%s10664_s1 + $0x574] sm:$0xf0] }
 0x1b2   :  { %v7239_v2 = vld [vmem:[%s10664_s1 + $0xcd4] sm:$0xf]  ;;  %v6071_v13 = vor.u32 %v7175_v60, %v6068_v0  ;;  %3293 = vmatpush.bf16.msra.mxu1 %v6359_v59  ;;  %3319 = vmatpush.bf16.msra.mxu3 %v5083_v26  ;;  %v5434_v59 = vld [vmem:[%s10664_s1 + $0x5d8] sm:$0xf]  ;;  %v3067_v60 = vpop.f32.mrf.mxu3  ;;  %v9704_v0 = vsel %vm3506_vm10, 1.0, %v7365_v63 }
 0x1b3   :  { %v6324_v8 = vld [vmem:[%s10664_s1 + $0xcf0] sm:$0xf0]  ;;  %v7020_v26 = vld [vmem:[%s10664_s1 + $0x5f4] sm:$0xf0]  ;;  %v3554_v10 = vsub.f32 %v3546_v49, %v9704_v0 }
 0x1b4   :  { %v6327_v17 = vor.u32 %v7239_v2, %v6324_v8  ;;  %v7167_v19 = vld [vmem:[%s10664_s1 + $0xa94] sm:$0xf]  ;;  %3281 = vmatpush.bf16.msra.mxu0 %v6071_v13  ;;  %3307 = vmatpush.bf16.msra.mxu2 %v4795_v18  ;;  %v9709_v2 = vld [vmem:[%s10666_s2] sm:$0xff]  ;;  %v5690_v8 = vld [vmem:[%s10664_s1 + $0x7d8] sm:$0xf]  ;;  %v4699_v18 = vor.u32 %v6836_v55, %v4698_v54 }
 0x1b5   :  { %v6036_v7 = vld [vmem:[%s10664_s1 + $0xab0] sm:$0xf0]  ;;  %v479_v29 = vperm.slane %v9709_v2, 3  ;;  %v7148_v13 = vld [vmem:[%s10664_s1 + $0x9f4] sm:$0xf0]  ;;  %v5691_v36 = vor.u32 %v7084_v12, %v5690_v8  ;;  %vm3562_vm11 = vcmp.gt.f32.partialorder %v3554_v10, 1.0 }
 0x1b6   :  { %v7231_v20 = vld [vmem:[%s10664_s1 + $0xc94] sm:$0xf]  ;;  %v6039_v33 = vor.u32 %v7167_v19, %v6036_v7  ;;  %3294 = vmatpush.bf16.msra.mxu1 %v6327_v17  ;;  %3320 = vmatpush.bf16.msra.mxu3 %v5051_v22  ;;  %v6202_v19 = vld [vmem:[%s10664_s1 + $0xbd8] sm:$0xf]  ;;  %v5435_v22 = vor.u32 %v7020_v26, %v5434_v59  ;;  %v5947_v23 = vor.u32 %v7148_v13, %v5946_v27 }
 0x1b7   :  { %v6292_v24 = vld [vmem:[%s10664_s1 + $0xcb0] sm:$0xf0]  ;;  %v7212_v7 = vld [vmem:[%s10664_s1 + $0xbf4] sm:$0xf0]  ;;  %v3040_v39 = vadd.f32 %v9599_v3, %v479_v29 }
 0x1b8   :  { %v6295_v25 = vor.u32 %v7231_v20, %v6292_v24  ;;  %v7159_v37 = vld [vmem:[%s10664_s1 + $0xa54] sm:$0xf]  ;;  %3282 = vmatpush.bf16.msra.mxu0 %v6039_v33  ;;  %3308 = vmatpush.bf16.msra.mxu2 %v4763_v35  ;;  %v4955_v20 = vor.u32 %v6900_v58, %v4954_v21  ;;  %v5402_v24 = vld [vmem:[%s10664_s1 + $0x598] sm:$0xf]  ;;  %v3594_v33 = vmul.f32 0.95, %v3554_v10 }
 0x1b9   :  { %v6004_v40 = vld [vmem:[%s10664_s1 + $0xa70] sm:$0xf0]  ;;  %v5914_v3 = vld [vmem:[%s10664_s1 + $0x998] sm:$0xf] }
 0x1ba   :  { %v7223_v43 = vld [vmem:[%s10664_s1 + $0xc54] sm:$0xf]  ;;  %v6007_v50 = vor.u32 %v7159_v37, %v6004_v40  ;;  %3295 = vmatpush.bf16.msra.mxu1 %v6295_v25  ;;  %3321 = vmatpush.bf16.msra.mxu3 %v5019_v57  ;;  %v6203_v25 = vor.u32 %v7212_v7, %v6202_v19  ;;  %v7140_v35 = vld [vmem:[%s10664_s1 + $0x9b4] sm:$0xf0]  ;;  %v3053_v57 = vadd.f32 %v9637_v28, %v3040_v39 }
 0x1bb   :  { %v6260_v44 = vld [vmem:[%s10664_s1 + $0xc70] sm:$0xf0]  ;;  %v6170_v37 = vld [vmem:[%s10664_s1 + $0xb98] sm:$0xf]  ;;  %v5915_v32 = vor.u32 %v7140_v35, %v5914_v3 }
 0x1bc   :  { %v7151_v48 = vld [vmem:[%s10664_s1 + $0xa14] sm:$0xf]  ;;  %v6263_v52 = vor.u32 %v7223_v43, %v6260_v44  ;;  %3283 = vmatpush.bf16.msra.mxu0 %v6007_v50  ;;  %3309 = vmatpush.bf16.msra.mxu2 %v4731_v53  ;;  %v7204_v40 = vld [vmem:[%s10664_s1 + $0xbb4] sm:$0xf0]  ;;  %v5403_v43 = vor.u32 %v7012_v61, %v5402_v24  ;;  %v5659_v44 = vor.u32 %v7076_v6, %v5658_v31 }
 0x1bd   :  { %v5972_v16 = vld [vmem:[%s10664_s1 + $0xa30] sm:$0xf0]  ;;  %v5626_v46 = vld [vmem:[%s10664_s1 + $0x758] sm:$0xf]  ;;  %v6171_v28 = vor.u32 %v7204_v40, %v6170_v37  ;;  %v3066_v54 = vadd.f32 %v9639_v30, %v3053_v57  ;;  %v3104_v37 = vpop.f32.mrf.mxu2 }
 0x1be   :  { %v7215_v51 = vld [vmem:[%s10664_s1 + $0xc14] sm:$0xf]  ;;  %v5975_v11 = vor.u32 %v7151_v48, %v5972_v16  ;;  %3296 = vmatpush.bf16.msra.mxu1 %v6263_v52  ;;  %3322 = vmatpush.bf16.msra.mxu3 %v4987_v56  ;;  %v7068_v47 = vld [vmem:[%s10664_s1 + $0x774] sm:$0xf0]  ;;  %v3602_v48 = vadd.f32 %v3594_v33, %v9617_v5  ;;  %v5371_v52 = vor.u32 %v7004_v45, %v5370_v42 }
 0x1bf   :  { %v6228_v4 = vld [vmem:[%s10664_s1 + $0xc30] sm:$0xf0]  ;;  %v5882_v49 = vld [vmem:[%s10664_s1 + $0x958] sm:$0xf]  ;;  %v5627_v55 = vor.u32 %v7068_v47, %v5626_v46 }
 0x1c0   :  { %v6231_v17 = vor.u32 %v7215_v51, %v6228_v4  ;;  %3284 = vmatpush.bf16.msra.mxu0 %v5975_v11  ;;  %3310 = vmatpush.bf16.msra.mxu2 %v4699_v18  ;;  %v7132_v50 = vld [vmem:[%s10664_s1 + $0x974] sm:$0xf0]  ;;  %v9793_v4 = vsel %vm3562_vm11, 1.0, %v7365_v63  ;;  %v3078_v11 = vpop.f32.mrf.mxu0  ;;  %v3091_v18 = vpop.f32.mrf.mxu1 }
 0x1c1   :  { %v6138_v16 = vld [vmem:[%s10664_s1 + $0xb58] sm:$0xf]  ;;  %v5883_v56 = vor.u32 %v7132_v50, %v5882_v49  ;;  %v3610_v59 = vsub.f32 %v3602_v48, %v9793_v4 }
 0x1c2   :  { %3297 = vmatpush.bf16.msra.mxu1 %v6231_v17  ;;  %3323 = vmatpush.bf16.msra.mxu3 %v4955_v20  ;;  %v7196_v51 = vld [vmem:[%s10664_s1 + $0xb74] sm:$0xf0]  ;;  %v3079_v17 = vadd.f32 %v3078_v11, %v3066_v54 }
 0x1c3   :  { %3285 = vmatmul.bf16.vlgmr.msra.gmra.mxu0 %v7865_v41  ;;  %3311 = vmatmul.bf16.vlgmr.msra.gmra.mxu2 %v7689_v14  ;;  %v5338_v53 = vld [vmem:[%s10664_s1 + $0x518] sm:$0xf]  ;;  %v6139_v62 = vor.u32 %v7196_v51, %v6138_v16  ;;  %vm3618_vm12 = vcmp.gt.f32.partialorder %v3610_v59, 1.0 }
 0x1c4   :  { %3329 = vmatpush.bf16.msrb.mxu0 %v5435_v22  ;;  %3355 = vmatpush.bf16.msrb.mxu2 %v5947_v23  ;;  %v6996_v21 = vld [vmem:[%s10664_s1 + $0x534] sm:$0xf0]  ;;  %v3650_v22 = vmul.f32 0.95, %v3610_v59  ;;  %v3092_v23 = vadd.f32 %v3091_v18, %v3079_v17  ;;  %v9875_v50 = vsel %vm3618_vm12, 1.0, %v7365_v63 }
 0x1c5   :  { %3298 = vmatmul.bf16.vlgmr.msra.gmra.mxu1 %v7846_v34  ;;  %3324 = vmatmul.bf16.vlgmr.msra.gmra.mxu3 %v7691_v15  ;;  %v5594_v58 = vld [vmem:[%s10664_s1 + $0x718] sm:$0xf]  ;;  %v5339_v10 = vor.u32 %v6996_v21, %v5338_v53 }
 0x1c6   :  { %3342 = vmatpush.bf16.msrb.mxu1 %v5691_v36  ;;  %3368 = vmatpush.bf16.msrb.mxu3 %v6203_v25  ;;  %v7060_v30 = vld [vmem:[%s10664_s1 + $0x734] sm:$0xf0]  ;;  %v3658_v42 = vadd.f32 %v3650_v22, %v9617_v5 }
 0x1c7   :  { %v5850_v60 = vld [vmem:[%s10664_s1 + $0x918] sm:$0xf]  ;;  %v5595_v27 = vor.u32 %v7060_v30, %v5594_v58 }
 0x1c8   :  { %3330 = vmatpush.bf16.msrb.mxu0 %v5403_v43  ;;  %3356 = vmatpush.bf16.msrb.mxu2 %v5915_v32  ;;  %v7124_v29 = vld [vmem:[%s10664_s1 + $0x934] sm:$0xf0]  ;;  %v3117_v32 = vpop.f32.mrf.mxu3  ;;  %v3080_v54 = vpop.f32.mrf.mxu0  ;;  %v9895_v30 = vsub.f32 %v3658_v42, %v9875_v50 }
 0x1c9   :  { %v6106_v26 = vld [vmem:[%s10664_s1 + $0xb18] sm:$0xf]  ;;  %v5851_v13 = vor.u32 %v7124_v29, %v5850_v60  ;;  %v6880_v54 = vld [vmem:[%s10664_s1 + $0x19c] sm:$0xf] }
 0x1ca   :  { %3343 = vmatpush.bf16.msrb.mxu1 %v5659_v44  ;;  %3369 = vmatpush.bf16.msrb.mxu3 %v6171_v28  ;;  %v7188_v8 = vld [vmem:[%s10664_s1 + $0xb34] sm:$0xf0]  ;;  %v3105_v44 = vadd.f32 %v3104_v37, %v3092_v23  ;;  %v3706_v23 = vmul.f32 0.95, %v9895_v30  ;;  %vm3674_vm15 = vcmp.gt.f32.partialorder %v9895_v30, 1.0 }
 0x1cb   :  { %v5306_v12 = vld [vmem:[%s10664_s1 + $0x4d8] sm:$0xf]  ;;  %v6107_v24 = vor.u32 %v7188_v8, %v6106_v26 }
 0x1cc   :  { %3331 = vmatpush.bf16.msrb.mxu0 %v5371_v52  ;;  %3357 = vmatpush.bf16.msrb.mxu2 %v5883_v56  ;;  %v6988_v19 = vld [vmem:[%s10664_s1 + $0x4f4] sm:$0xf0]  ;;  %v9877_v16 = vadd.f32 %v3117_v32, %v3105_v44  ;;  %v7016_v32 = vld [vmem:[%s10664_s1 + $0x5dc] sm:$0xf] }
 0x1cd   :  { %v5562_v7 = vld [vmem:[%s10664_s1 + $0x6d8] sm:$0xf]  ;;  %v5307_v6 = vor.u32 %v6988_v19, %v5306_v12 }
 0x1ce   :  { %3344 = vmatpush.bf16.msrb.mxu1 %v5627_v55  ;;  %v7052_v20 = vld [vmem:[%s10664_s1 + $0x6f4] sm:$0xf0]  ;;  %3370 = vmatpush.bf16.msrb.mxu3 %v6139_v62  ;;  %v3093_v62 = vpop.f32.mrf.mxu1  ;;  %vm3507_vm13 = vcmp.gt.f32.partialorder %v9877_v16, 1.0  ;;  %v3539_v60 = vmul.f32 0.95, %v9877_v16 }
 0x1cf   :  { %v5818_v39 = vld [vmem:[%s10664_s1 + $0x8d8] sm:$0xf]  ;;  %v5563_v3 = vor.u32 %v7052_v20, %v5562_v7  ;;  %v6467_v8 = vsel %vm3507_vm13, 1.0, %v7365_v63  ;;  %v5404_v62 = vld [vmem:[%s10664_s1 + $0x5b8] sm:$0xf0] }
 0x1d0   :  { %v7116_v36 = vld [vmem:[%s10664_s1 + $0x8f4] sm:$0xf0]  ;;  %3332 = vmatpush.bf16.msrb.mxu0 %v5339_v10  ;;  %3358 = vmatpush.bf16.msrb.mxu2 %v5851_v13  ;;  %v3529_v12 = vpack.c.bf16 %v6467_v8, %v9704_v0 }
 0x1d1   :  { %v6074_v61 = vld [vmem:[%s10664_s1 + $0xad8] sm:$0xf]  ;;  %v5819_v35 = vor.u32 %v7116_v36, %v5818_v39  ;;  %v3106_v36 = vpop.f32.mrf.mxu2 }
 0x1d2   :  { %v7180_v31 = vld [vmem:[%s10664_s1 + $0xaf4] sm:$0xf0]  ;;  %3345 = vmatpush.bf16.msrb.mxu1 %v5595_v27  ;;  %3371 = vmatpush.bf16.msrb.mxu3 %v6107_v24  ;;  %v3547_v27 = vadd.f32 %v3539_v60, %v9877_v16  ;;  %3533 = vst [vmem:[#allocation2 + $0x8] sm:$0xff] %v3529_v12 }
 0x1d3   :  { %v5274_v33 = vld [vmem:[%s10664_s1 + $0x498] sm:$0xf]  ;;  %v6075_v57 = vor.u32 %v7180_v31, %v6074_v61 }
 0x1d4   :  { %v6980_v25 = vld [vmem:[%s10664_s1 + $0x4b4] sm:$0xf0]  ;;  %3333 = vmatpush.bf16.msrb.mxu0 %v5307_v6  ;;  %3359 = vmatpush.bf16.msrb.mxu2 %v5819_v35  ;;  %v3555_v61 = vsub.f32 %v3547_v27, %v6467_v8  ;;  %v6952_v35 = vld [vmem:[%s10664_s1 + $0x3dc] sm:$0xf]  ;;  %v3714_v8 = vadd.f32 %v3706_v23, %v9617_v5 }
 0x1d5   :  { %v5530_v40 = vld [vmem:[%s10664_s1 + $0x698] sm:$0xf]  ;;  %v5275_v51 = vor.u32 %v6980_v25, %v5274_v33  ;;  %v3119_v33 = vpop.f32.mrf.mxu3  ;;  %v6888_v25 = vld [vmem:[%s10664_s1 + $0x1dc] sm:$0xf] }
 0x1d6   :  { %v7044_v43 = vld [vmem:[%s10664_s1 + $0x6b4] sm:$0xf0]  ;;  %3346 = vmatpush.bf16.msrb.mxu1 %v5563_v3  ;;  %3372 = vmatpush.bf16.msrb.mxu3 %v6075_v57  ;;  %v4924_v3 = vld [vmem:[%s10664_s1 + $0x1f8] sm:$0xf0]  ;;  %vm3563_vm14 = vcmp.gt.f32.partialorder %v3555_v61, 1.0 }
 0x1d7   :  { %v5786_v45 = vld [vmem:[%s10664_s1 + $0x898] sm:$0xf]  ;;  %v5531_v55 = vor.u32 %v7044_v43, %v5530_v40  ;;  %v3595_v37 = vmul.f32 0.95, %v3555_v61  ;;  %v5180_v43 = vld [vmem:[%s10664_s1 + $0x3f8] sm:$0xf0] }
 0x1d8   :  { %v7108_v46 = vld [vmem:[%s10664_s1 + $0x8b4] sm:$0xf0]  ;;  %3334 = vmatpush.bf16.msrb.mxu0 %v5275_v51  ;;  %v6475_v42 = vsel %vm3563_vm14, 1.0, %v7365_v63  ;;  %v4927_v51 = vor.u32 %v6888_v25, %v4924_v3  ;;  %v6864_v23 = vld [vmem:[%s10664_s1 + $0x11c] sm:$0xf]  ;;  %v6490_v61 = vsel %vm3674_vm15, 1.0, %v7365_v63 }
 0x1d9   :  { %v6042_v47 = vld [vmem:[%s10664_s1 + $0xa98] sm:$0xf]  ;;  %v5787_v56 = vor.u32 %v7108_v46, %v5786_v45  ;;  %v5436_v45 = vld [vmem:[%s10664_s1 + $0x5f8] sm:$0xf0]  ;;  %v3585_v46 = vpack.c.bf16 %v6475_v42, %v9793_v4  ;;  %v480_v3 = vperm.slane %v9709_v2, 4 }
 0x1da   :  { %v7172_v48 = vld [vmem:[%s10664_s1 + $0xab4] sm:$0xf0]  ;;  %3347 = vmatpush.bf16.msrb.mxu1 %v5531_v55  ;;  %v4892_v4 = vld [vmem:[%s10664_s1 + $0x1b8] sm:$0xf0] }
 0x1db   :  { %v5242_v28 = vld [vmem:[%s10664_s1 + $0x458] sm:$0xf]  ;;  %v6043_v29 = vor.u32 %v7172_v48, %v6042_v47  ;;  %3360 = vmatpush.bf16.msrb.mxu2 %v5787_v56  ;;  %v3603_v47 = vadd.f32 %v3595_v37, %v9877_v16  ;;  %3589 = vst [vmem:[#allocation2 + $0x28] sm:$0xff] %v3585_v46  ;;  %v5439_v56 = vor.u32 %v7016_v32, %v5436_v45  ;;  %v4828_v33 = vld [vmem:[%s10664_s1 + $0x138] sm:$0xf0]  ;;  %v3130_v46 = vpop.f32.mrf.mxu0 }
 0x1dc   :  { %v6972_v49 = vld [vmem:[%s10664_s1 + $0x474] sm:$0xf0]  ;;  %v6928_v25 = vld [vmem:[%s10664_s1 + $0x31c] sm:$0xf] }
 0x1dd   :  { %v5498_v52 = vld [vmem:[%s10664_s1 + $0x658] sm:$0xf]  ;;  %v5243_v13 = vor.u32 %v6972_v49, %v5242_v28  ;;  %3373 = vmatpush.bf16.msrb.mxu3 %v6043_v29  ;;  %v3611_v55 = vsub.f32 %v3603_v47, %v6475_v42  ;;  %v6992_v42 = vld [vmem:[%s10664_s1 + $0x51c] sm:$0xf]  ;;  %v3143_v47 = vpop.f32.mrf.mxu1 }
 0x1de   :  { %v7036_v53 = vld [vmem:[%s10664_s1 + $0x674] sm:$0xf0] }
 0x1df   :  { %v5754_v21 = vld [vmem:[%s10664_s1 + $0x858] sm:$0xf]  ;;  %v5499_v7 = vor.u32 %v7036_v53, %v5498_v52  ;;  %3335 = vmatpush.bf16.msrb.mxu0 %v5243_v13  ;;  %v5183_v52 = vor.u32 %v6952_v35, %v5180_v43  ;;  %vm3619_vm0 = vcmp.gt.f32.partialorder %v3611_v55, 1.0  ;;  %v3651_v60 = vmul.f32 0.95, %v3611_v55 }
 0x1e0   :  { %v7100_v58 = vld [vmem:[%s10664_s1 + $0x874] sm:$0xf0]  ;;  %v6872_v13 = vld [vmem:[%s10664_s1 + $0x15c] sm:$0xf]  ;;  %v3722_v35 = vsub.f32 %v3714_v8, %v6490_v61 }
 0x1e1   :  { %v6010_v59 = vld [vmem:[%s10664_s1 + $0xa58] sm:$0xf]  ;;  %v5755_v20 = vor.u32 %v7100_v58, %v5754_v21  ;;  %3348 = vmatpush.bf16.msrb.mxu1 %v5499_v7  ;;  %v6944_v21 = vld [vmem:[%s10664_s1 + $0x39c] sm:$0xf] }
 0x1e2   :  { %v7164_v26 = vld [vmem:[%s10664_s1 + $0xa74] sm:$0xf0]  ;;  %v5148_v58 = vld [vmem:[%s10664_s1 + $0x3b8] sm:$0xf0]  ;;  %vm3730_vm2 = vcmp.gt.f32.partialorder %v3722_v35, 1.0 }
 0x1e3   :  { %v5210_v10 = vld [vmem:[%s10664_s1 + $0x418] sm:$0xf]  ;;  %v6011_v31 = vor.u32 %v7164_v26, %v6010_v59  ;;  %3361 = vmatpush.bf16.msrb.mxu2 %v5755_v20  ;;  %v7008_v59 = vld [vmem:[%s10664_s1 + $0x59c] sm:$0xf]  ;;  %v5151_v12 = vor.u32 %v6944_v21, %v5148_v58 }
 0x1e4   :  { %v6964_v11 = vld [vmem:[%s10664_s1 + $0x434] sm:$0xf0]  ;;  %v5407_v5 = vor.u32 %v7008_v59, %v5404_v62  ;;  %v5116_v7 = vld [vmem:[%s10664_s1 + $0x378] sm:$0xf0] }
 0x1e5   :  { %v5466_v17 = vld [vmem:[%s10664_s1 + $0x618] sm:$0xf]  ;;  %v5211_v40 = vor.u32 %v6964_v11, %v5210_v10  ;;  %3374 = vmatpush.bf16.msrb.mxu3 %v6011_v31  ;;  %v6483_v10 = vsel %vm3619_vm0, 1.0, %v7365_v63  ;;  %v4895_v11 = vor.u32 %v6880_v54, %v4892_v4  ;;  %v5372_v20 = vld [vmem:[%s10664_s1 + $0x578] sm:$0xf0] }
 0x1e6   :  { %v7028_v18 = vld [vmem:[%s10664_s1 + $0x634] sm:$0xf0]  ;;  %v6920_v4 = vld [vmem:[%s10664_s1 + $0x2dc] sm:$0xf] }
 0x1e7   :  { %v5722_v19 = vld [vmem:[%s10664_s1 + $0x818] sm:$0xf]  ;;  %v5467_v57 = vor.u32 %v7028_v18, %v5466_v17  ;;  %3336 = vmatpush.bf16.msrb.mxu0 %v5211_v40  ;;  %v3641_v17 = vpack.c.bf16 %v6483_v10, %v9875_v50  ;;  %v3659_v18 = vadd.f32 %v3651_v60, %v9877_v16  ;;  %v7000_v50 = vld [vmem:[%s10664_s1 + $0x55c] sm:$0xf]  ;;  %v6498_v60 = vsel %vm3730_vm2, 1.0, %v7365_v63 }
 0x1e8   :  { %v7092_v0 = vld [vmem:[%s10664_s1 + $0x834] sm:$0xf0]  ;;  %v5375_v30 = vor.u32 %v7000_v50, %v5372_v20  ;;  %v5084_v40 = vld [vmem:[%s10664_s1 + $0x338] sm:$0xf0]  ;;  %v3169_v50 = vpop.f32.mrf.mxu3 }
 0x1e9   :  { %v5978_v22 = vld [vmem:[%s10664_s1 + $0xa18] sm:$0xf]  ;;  %v5723_v44 = vor.u32 %v7092_v0, %v5722_v19  ;;  %3349 = vmatpush.bf16.msrb.mxu1 %v5467_v57  ;;  %v4860_v19 = vld [vmem:[%s10664_s1 + $0x178] sm:$0xf0]  ;;  %3645 = vst [vmem:[#allocation2 + $0x48] sm:$0xff] %v3641_v17 }
 0x1ea   :  { %v7156_v24 = vld [vmem:[%s10664_s1 + $0xa34] sm:$0xf0]  ;;  %v6936_v0 = vld [vmem:[%s10664_s1 + $0x35c] sm:$0xf]  ;;  %3337 = vmatmul.bf16.vlgmr.msrb.gmra.mxu0 %v7666_v1  ;;  %v4863_v31 = vor.u32 %v6872_v13, %v4860_v19 }
 0x1eb   :  { %v6458_v39 = vld [vmem:[%s10664_s1 + $0xdd8] sm:$0xf]  ;;  %v5979_v48 = vor.u32 %v7156_v24, %v5978_v22  ;;  %3362 = vmatpush.bf16.msrb.mxu2 %v5723_v44  ;;  %v3667_v24 = vsub.f32 %v3659_v18, %v6483_v10  ;;  %v5340_v57 = vld [vmem:[%s10664_s1 + $0x538] sm:$0xf0] }
 0x1ec   :  { %v7276_v6 = vld [vmem:[%s10664_s1 + $0xdf4] sm:$0xf0]  ;;  %3350 = vmatmul.bf16.vlgmr.msrb.gmra.mxu1 %v7678_v9  ;;  %v5343_v54 = vor.u32 %v6992_v42, %v5340_v57  ;;  %v5052_v55 = vld [vmem:[%s10664_s1 + $0x2f8] sm:$0xf0] }
 0x1ed   :  { %v6459_v28 = vor.u32 %v7276_v6, %v6458_v39  ;;  %v6426_v49 = vld [vmem:[%s10664_s1 + $0xd98] sm:$0xf]  ;;  %3375 = vmatpush.bf16.msrb.mxu3 %v5979_v48  ;;  %3394 = vmatpush.bf16.msra.mxu1 %v4927_v51  ;;  %v5119_v6 = vor.u32 %v6936_v0, %v5116_v7  ;;  %vm3675_vm1 = vcmp.gt.f32.partialorder %v3667_v24, 1.0  ;;  %v3707_v37 = vmul.f32 0.95, %v3667_v24  ;;  %v3145_v24 = vpop.f32.mrf.mxu1 }
 0x1ee   :  { %v7268_v53 = vld [vmem:[%s10664_s1 + $0xdb4] sm:$0xf0]  ;;  %3363 = vmatmul.bf16.vlgmr.msrb.gmra.mxu2 %v7857_v38  ;;  %v6491_v43 = vsel %vm3675_vm1, 1.0, %v7365_v63  ;;  %v4831_v48 = vor.u32 %v6864_v23, %v4828_v33  ;;  %v4796_v51 = vld [vmem:[%s10664_s1 + $0xf8] sm:$0xf0]  ;;  %v5055_v8 = vor.u32 %v6920_v4, %v5052_v55 }
 0x1ef   :  { %3381 = vmatpush.bf16.msra.mxu0 %v6459_v28  ;;  %v6427_v29 = vor.u32 %v7268_v53, %v6426_v49  ;;  %v6394_v26 = vld [vmem:[%s10664_s1 + $0xd58] sm:$0xf]  ;;  %3407 = vmatpush.bf16.msra.mxu2 %v5183_v52  ;;  %v3697_v2 = vpack.c.bf16 %v6491_v43, %v6490_v61  ;;  %v3715_v44 = vadd.f32 %v3707_v37, %v9877_v16  ;;  %v6856_v16 = vld [vmem:[%s10664_s1 + $0xdc] sm:$0xf] }
 0x1f0   :  { %v7260_v27 = vld [vmem:[%s10664_s1 + $0xd74] sm:$0xf0]  ;;  %3376 = vmatmul.bf16.vlgmr.msrb.gmra.mxu3 %v7865_v41  ;;  %v5087_v28 = vor.u32 %v6928_v25, %v5084_v40  ;;  %v3131_v52 = vadd.f32 %v3130_v46, %v480_v3  ;;  %v5308_v21 = vld [vmem:[%s10664_s1 + $0x4f8] sm:$0xf0] }
 0x1f1   :  { %3420 = vmatpush.bf16.msra.mxu3 %v5439_v56  ;;  %v6362_v22 = vld [vmem:[%s10664_s1 + $0xd18] sm:$0xf]  ;;  %v6395_v39 = vor.u32 %v7260_v27, %v6394_v26  ;;  %3395 = vmatpush.bf16.msra.mxu1 %v4895_v11  ;;  %3701 = vst [vmem:[#allocation2 + $0x68] sm:$0xff] %v3697_v2  ;;  %v3723_v53 = vsub.f32 %v3715_v44, %v6491_v43  ;;  %v6984_v56 = vld [vmem:[%s10664_s1 + $0x4dc] sm:$0xf] }
 0x1f2   :  { %v7252_v36 = vld [vmem:[%s10664_s1 + $0xd34] sm:$0xf0]  ;;  %v3144_v58 = vadd.f32 %v3143_v47, %v3131_v52  ;;  %v4799_v26 = vor.u32 %v6856_v16, %v4796_v51  ;;  %v6848_v11 = vld [vmem:[%s10664_s1 + $0x9c] sm:$0xf]  ;;  %v5311_v13 = vor.u32 %v6984_v56, %v5308_v21 }
 0x1f3   :  { %3382 = vmatpush.bf16.msra.mxu0 %v6427_v29  ;;  %3408 = vmatpush.bf16.msra.mxu2 %v5151_v12  ;;  %v6363_v32 = vor.u32 %v7252_v36, %v6362_v22  ;;  %v6330_v45 = vld [vmem:[%s10664_s1 + $0xcd8] sm:$0xf]  ;;  %vm3731_vm3 = vcmp.gt.f32.partialorder %v3723_v53, 1.0  ;;  %v3156_v12 = vpop.f32.mrf.mxu2  ;;  %v4764_v17 = vld [vmem:[%s10664_s1 + $0xb8] sm:$0xf0]  ;;  %v3132_v22 = vpop.f32.mrf.mxu0 }
 0x1f4   :  { %v7244_v49 = vld [vmem:[%s10664_s1 + $0xcf4] sm:$0xf0]  ;;  %v6499_v29 = vsel %vm3731_vm3, 1.0, %v7365_v63  ;;  %v6912_v18 = vld [vmem:[%s10664_s1 + $0x29c] sm:$0xf]  ;;  %v3157_v19 = vadd.f32 %v3156_v12, %v3144_v58  ;;  %v4767_v36 = vor.u32 %v6848_v11, %v4764_v17  ;;  %v3171_v53 = vpop.f32.mrf.mxu3 }
 0x1f5   :  { %3421 = vmatpush.bf16.msra.mxu3 %v5407_v5  ;;  %3396 = vmatpush.bf16.msra.mxu1 %v4863_v31  ;;  %v6331_v59 = vor.u32 %v7244_v49, %v6330_v45  ;;  %v6298_v62 = vld [vmem:[%s10664_s1 + $0xc98] sm:$0xf]  ;;  %v3753_v27 = vpack.c.bf16 %v6499_v29, %v6498_v60  ;;  %v5020_v5 = vld [vmem:[%s10664_s1 + $0x2b8] sm:$0xf0] }
 0x1f6   :  { %v7236_v10 = vld [vmem:[%s10664_s1 + $0xcb4] sm:$0xf0]  ;;  %v6976_v0 = vld [vmem:[%s10664_s1 + $0x49c] sm:$0xf]  ;;  %v5023_v23 = vor.u32 %v6912_v18, %v5020_v5 }
 0x1f7   :  { %3383 = vmatpush.bf16.msra.mxu0 %v6395_v39  ;;  %3409 = vmatpush.bf16.msra.mxu2 %v5119_v6  ;;  %v5276_v7 = vld [vmem:[%s10664_s1 + $0x4b8] sm:$0xf0]  ;;  %3757 = vst [vmem:[#allocation2 + $0x88] sm:$0xff] %v3753_v27  ;;  %v6299_v20 = vor.u32 %v7236_v10, %v6298_v62  ;;  %v10094_v39 = vadd.f32 %v3169_v50, %v3157_v19  ;;  %v6266_v61 = vld [vmem:[%s10664_s1 + $0xc58] sm:$0xf] }
 0x1f8   :  { %v7228_v31 = vld [vmem:[%s10664_s1 + $0xc74] sm:$0xf0]  ;;  %v6840_v6 = vld [vmem:[%s10664_s1 + $0x5c] sm:$0xf]  ;;  %v5279_v33 = vor.u32 %v6976_v0, %v5276_v7 }
 0x1f9   :  { %3422 = vmatpush.bf16.msra.mxu3 %v5375_v30  ;;  %3397 = vmatpush.bf16.msra.mxu1 %v4831_v48  ;;  %v4732_v25 = vld [vmem:[%s10664_s1 + $0x78] sm:$0xf0]  ;;  %v6267_v40 = vor.u32 %v7228_v31, %v6266_v61  ;;  %v6234_v43 = vld [vmem:[%s10664_s1 + $0xc18] sm:$0xf] }
 0x1fa   :  { %v6904_v3 = vld [vmem:[%s10664_s1 + $0x25c] sm:$0xf]  ;;  %v7220_v42 = vld [vmem:[%s10664_s1 + $0xc34] sm:$0xf0]  ;;  %v4735_v57 = vor.u32 %v6840_v6, %v4732_v25 }
 0x1fb   :  { %3384 = vmatpush.bf16.msra.mxu0 %v6363_v32  ;;  %3410 = vmatpush.bf16.msra.mxu2 %v5087_v28  ;;  %v4988_v35 = vld [vmem:[%s10664_s1 + $0x278] sm:$0xf0]  ;;  %v3158_v46 = vpop.f32.mrf.mxu2 }
 0x1fc   :  { %v6968_v37 = vld [vmem:[%s10664_s1 + $0x45c] sm:$0xf]  ;;  %v4991_v2 = vor.u32 %v6904_v3, %v4988_v35 }
 0x1fd   :  { %3423 = vmatpush.bf16.msra.mxu3 %v5343_v54  ;;  %3398 = vmatpush.bf16.msra.mxu1 %v4799_v26  ;;  %v5244_v30 = vld [vmem:[%s10664_s1 + $0x478] sm:$0xf0]  ;;  %v6235_v54 = vor.u32 %v7220_v42, %v6234_v43 }
 0x1fe   :  { %v6832_v44 = vld [vmem:[%s10664_s1 + $0x1c] sm:$0xf]  ;;  %v5247_v47 = vor.u32 %v6968_v37, %v5244_v30 }
 0x1ff   :  { %3385 = vmatpush.bf16.msra.mxu0 %v6331_v59  ;;  %3411 = vmatpush.bf16.msra.mxu2 %v5055_v8  ;;  %v4700_v32 = vld [vmem:[%s10664_s1 + $0x38] sm:$0xf0] }
 0x200   :  { %v6896_v45 = vld [vmem:[%s10664_s1 + $0x21c] sm:$0xf]  ;;  %v4703_v21 = vor.u32 %v6832_v44, %v4700_v32  ;;  %v10244_v44 = vpop.f32.mrf.mxu0  ;;  %v10246_v32 = vpop.f32.mrf.mxu1 }
 0x201   :  { %3424 = vmatpush.bf16.msra.mxu3 %v5311_v13  ;;  %3399 = vmatpush.bf16.msra.mxu1 %v4767_v36  ;;  %v4956_v48 = vld [vmem:[%s10664_s1 + $0x238] sm:$0xf0] }
 0x202   :  { %v6960_v28 = vld [vmem:[%s10664_s1 + $0x41c] sm:$0xf]  ;;  %v4959_v58 = vor.u32 %v6896_v45, %v4956_v48 }
 0x203   :  { %3386 = vmatpush.bf16.msra.mxu0 %v6299_v20  ;;  %3412 = vmatpush.bf16.msra.mxu2 %v5023_v23  ;;  %v5212_v49 = vld [vmem:[%s10664_s1 + $0x438] sm:$0xf0] }
 0x204   :  { %v7080_v16 = vld [vmem:[%s10664_s1 + $0x7dc] sm:$0xf]  ;;  %v5215_v60 = vor.u32 %v6960_v28, %v5212_v49 }
 0x205   :  { %3425 = vmatpush.bf16.msra.mxu3 %v5279_v33  ;;  %v5692_v51 = vld [vmem:[%s10664_s1 + $0x7f8] sm:$0xf0]  ;;  %3400 = vmatpush.bf16.msra.mxu1 %v4735_v57 }
 0x206   :  { %v7144_v52 = vld [vmem:[%s10664_s1 + $0x9dc] sm:$0xf]  ;;  %v5695_v29 = vor.u32 %v7080_v16, %v5692_v51 }
 0x207   :  { %3387 = vmatpush.bf16.msra.mxu0 %v6267_v40  ;;  %v5948_v4 = vld [vmem:[%s10664_s1 + $0x9f8] sm:$0xf0]  ;;  %3413 = vmatpush.bf16.msra.mxu2 %v4991_v2 }
 0x208   :  { %v7208_v55 = vld [vmem:[%s10664_s1 + $0xbdc] sm:$0xf]  ;;  %v5951_v26 = vor.u32 %v7144_v52, %v5948_v4 }
 0x209   :  { %v6204_v56 = vld [vmem:[%s10664_s1 + $0xbf8] sm:$0xf0]  ;;  %3426 = vmatpush.bf16.msra.mxu3 %v5247_v47  ;;  %3401 = vmatpush.bf16.msra.mxu1 %v4703_v21  ;;  %v10272_v21 = vpop.f32.mrf.mxu2 }
 0x20a   :  { %v7272_v59 = vld [vmem:[%s10664_s1 + $0xddc] sm:$0xf]  ;;  %v6207_v8 = vor.u32 %v7208_v55, %v6204_v56 }
 0x20b   :  { %v6460_v62 = vld [vmem:[%s10664_s1 + $0xdf8] sm:$0xf0]  ;;  %3388 = vmatpush.bf16.msra.mxu0 %v6235_v54  ;;  %3414 = vmatpush.bf16.msra.mxu2 %v4959_v58 }
 0x20c   :  { %v7072_v10 = vld [vmem:[%s10664_s1 + $0x79c] sm:$0xf]  ;;  %v6463_v27 = vor.u32 %v7272_v59, %v6460_v62  ;;  %3402 = vmatmul.bf16.vlgmr.msra.gmra.mxu1 %v7689_v14 }
 0x20d   :  { %v5660_v11 = vld [vmem:[%s10664_s1 + $0x7b8] sm:$0xf0]  ;;  %3427 = vmatpush.bf16.msra.mxu3 %v5215_v60  ;;  %3446 = vmatpush.bf16.msrb.mxu1 %v5951_v26 }
 0x20e   :  { %v7136_v12 = vld [vmem:[%s10664_s1 + $0x99c] sm:$0xf]  ;;  %v5663_v0 = vor.u32 %v7072_v10, %v5660_v11  ;;  %3389 = vmatmul.bf16.vlgmr.msra.gmra.mxu0 %v7846_v34  ;;  %3415 = vmatmul.bf16.vlgmr.msra.gmra.mxu2 %v7691_v15 }
 0x20f   :  { %v5916_v13 = vld [vmem:[%s10664_s1 + $0x9b8] sm:$0xf0]  ;;  %3433 = vmatpush.bf16.msrb.mxu0 %v5695_v29  ;;  %3459 = vmatpush.bf16.msrb.mxu2 %v6207_v8 }
 0x210   :  { %v7200_v17 = vld [vmem:[%s10664_s1 + $0xb9c] sm:$0xf]  ;;  %v5919_v7 = vor.u32 %v7136_v12, %v5916_v13  ;;  %3428 = vmatmul.bf16.vlgmr.msra.gmra.mxu3 %v7666_v1  ;;  %v10298_v12 = vpop.f32.mrf.mxu3  ;;  %v3184_v13 = vpop.f32.mrf.mxu0 }
 0x211   :  { %v6172_v18 = vld [vmem:[%s10664_s1 + $0xbb8] sm:$0xf0]  ;;  %3472 = vmatpush.bf16.msrb.mxu3 %v6463_v27 }
 0x212   :  { %v7264_v5 = vld [vmem:[%s10664_s1 + $0xd9c] sm:$0xf]  ;;  %v6175_v50 = vor.u32 %v7200_v17, %v6172_v18  ;;  %3447 = vmatpush.bf16.msrb.mxu1 %v5919_v7  ;;  %v3197_v17 = vpop.f32.mrf.mxu1 }
 0x213   :  { %v6428_v19 = vld [vmem:[%s10664_s1 + $0xdb8] sm:$0xf0]  ;;  %3434 = vmatpush.bf16.msrb.mxu0 %v5663_v0  ;;  %v7303_v17 = vld [vmem:[%s10667_s3 + $0x50] sm:$0xff] }
 0x214   :  { %v7064_v20 = vld [vmem:[%s10664_s1 + $0x75c] sm:$0xf]  ;;  %v6431_v36 = vor.u32 %v7264_v5, %v6428_v19  ;;  %3460 = vmatpush.bf16.msrb.mxu2 %v6175_v50 }
 0x215   :  { %v5628_v22 = vld [vmem:[%s10664_s1 + $0x778] sm:$0xf0] }
 0x216   :  { %v7128_v24 = vld [vmem:[%s10664_s1 + $0x95c] sm:$0xf]  ;;  %v5631_v25 = vor.u32 %v7064_v20, %v5628_v22  ;;  %3473 = vmatpush.bf16.msrb.mxu3 %v6431_v36 }
 0x217   :  { %v5884_v23 = vld [vmem:[%s10664_s1 + $0x978] sm:$0xf0] }
 0x218   :  { %v7192_v61 = vld [vmem:[%s10664_s1 + $0xb5c] sm:$0xf]  ;;  %v5887_v3 = vor.u32 %v7128_v24, %v5884_v23  ;;  %3435 = vmatpush.bf16.msrb.mxu0 %v5631_v25 }
 0x219   :  { %v6140_v31 = vld [vmem:[%s10664_s1 + $0xb78] sm:$0xf0] }
 0x21a   :  { %v7256_v6 = vld [vmem:[%s10664_s1 + $0xd5c] sm:$0xf]  ;;  %v6143_v35 = vor.u32 %v7192_v61, %v6140_v31  ;;  %3448 = vmatpush.bf16.msrb.mxu1 %v5887_v3 }
 0x21b   :  { %v6396_v33 = vld [vmem:[%s10664_s1 + $0xd78] sm:$0xf0] }
 0x21c   :  { %v7056_v15 = vld [vmem:[%s10664_s1 + $0x71c] sm:$0xf]  ;;  %v6399_v30 = vor.u32 %v7256_v6, %v6396_v33  ;;  %3461 = vmatpush.bf16.msrb.mxu2 %v6143_v35  ;;  %v3210_v35 = vpop.f32.mrf.mxu2 }
 0x21d   :  { %v5596_v37 = vld [vmem:[%s10664_s1 + $0x738] sm:$0xf0]  ;;  %v7281_v35 = vld [vmem:[#allocation2 + $0x1c] sm:$0xf0] }
 0x21e   :  { %v7120_v1 = vld [vmem:[%s10664_s1 + $0x91c] sm:$0xf]  ;;  %v5599_v2 = vor.u32 %v7056_v15, %v5596_v37  ;;  %3474 = vmatpush.bf16.msrb.mxu3 %v6399_v30 }
 0x21f   :  { %v5852_v14 = vld [vmem:[%s10664_s1 + $0x938] sm:$0xf0] }
 0x220   :  { %v7184_v40 = vld [vmem:[%s10664_s1 + $0xb1c] sm:$0xf]  ;;  %v5855_v45 = vor.u32 %v7120_v1, %v5852_v14  ;;  %3436 = vmatpush.bf16.msrb.mxu0 %v5599_v2 }
 0x221   :  { %v6108_v43 = vld [vmem:[%s10664_s1 + $0xb38] sm:$0xf0] }
 0x222   :  { %v7248_v42 = vld [vmem:[%s10664_s1 + $0xd1c] sm:$0xf]  ;;  %v6111_v46 = vor.u32 %v7184_v40, %v6108_v43  ;;  %3449 = vmatpush.bf16.msrb.mxu1 %v5855_v45  ;;  %v3223_v43 = vpop.f32.mrf.mxu3 }
 0x223   :  { %v6364_v57 = vld [vmem:[%s10664_s1 + $0xd38] sm:$0xf0]  ;;  %v6506_v43 = vld [vmem:[#allocation2] sm:$0xf] }
 0x224   :  { %v7048_v47 = vld [vmem:[%s10664_s1 + $0x6dc] sm:$0xf]  ;;  %v6367_v49 = vor.u32 %v7248_v42, %v6364_v57  ;;  %3462 = vmatpush.bf16.msrb.mxu2 %v6111_v46 }
 0x225   :  { %v5564_v48 = vld [vmem:[%s10664_s1 + $0x6f8] sm:$0xf0] }
 0x226   :  { %v7112_v28 = vld [vmem:[%s10664_s1 + $0x8dc] sm:$0xf]  ;;  %v5567_v4 = vor.u32 %v7048_v47, %v5564_v48  ;;  %3475 = vmatpush.bf16.msrb.mxu3 %v6367_v49  ;;  %v7299_v49 = vld [vmem:[%s10667_s3 + $0x30] sm:$0xff] }
 0x227   :  { %v5820_v16 = vld [vmem:[%s10664_s1 + $0x8f8] sm:$0xf0] }
 0x228   :  { %v7176_v51 = vld [vmem:[%s10664_s1 + $0xadc] sm:$0xf]  ;;  %v5823_v55 = vor.u32 %v7112_v28, %v5820_v16  ;;  %3437 = vmatpush.bf16.msrb.mxu0 %v5567_v4  ;;  %v7307_v16 = vld [vmem:[%s10667_s3 + $0x70] sm:$0xff]  ;;  %v7305_v4 = vld [vmem:[%s10667_s3 + $0x60] sm:$0xff] }
 0x229   :  { %v6076_v52 = vld [vmem:[%s10664_s1 + $0xaf8] sm:$0xf0] }
 0x22a   :  { %v7240_v53 = vld [vmem:[%s10664_s1 + $0xcdc] sm:$0xf]  ;;  %v6079_v56 = vor.u32 %v7176_v51, %v6076_v52  ;;  %3450 = vmatpush.bf16.msrb.mxu1 %v5823_v55  ;;  %v7315_v51 = vld [vmem:[%s10667_s3 + $0xb0] sm:$0xff]  ;;  %v7313_v55 = vld [vmem:[%s10667_s3 + $0xa0] sm:$0xff] }
 0x22b   :  { %v6332_v54 = vld [vmem:[%s10664_s1 + $0xcf8] sm:$0xf0]  ;;  %v7323_v52 = vld [vmem:[%s10667_s3 + $0xf0] sm:$0xff] }
 0x22c   :  { %v7040_v58 = vld [vmem:[%s10664_s1 + $0x69c] sm:$0xf]  ;;  %v6335_v60 = vor.u32 %v7240_v53, %v6332_v54  ;;  %3463 = vmatpush.bf16.msrb.mxu2 %v6079_v56  ;;  %v3183_v53 = vadd.f32 %v10244_v44, %v10094_v39  ;;  %v7298_v54 = vld [vmem:[%s10667_s3 + $0x28] sm:$0xff]  ;;  %v7297_v39 = vld [vmem:[%s10667_s3 + $0x20] sm:$0xff]  ;;  %v3234_v44 = vpop.f32.mrf.mxu0  ;;  %v3247_v56 = vpop.f32.mrf.mxu1 }
 0x22d   :  { %v5532_v59 = vld [vmem:[%s10664_s1 + $0x6b8] sm:$0xf0] }
 0x22e   :  { %v7104_v62 = vld [vmem:[%s10664_s1 + $0x89c] sm:$0xf]  ;;  %v5535_v27 = vor.u32 %v7040_v58, %v5532_v59  ;;  %3476 = vmatpush.bf16.msrb.mxu3 %v6335_v60 }
 0x22f   :  { %v5788_v29 = vld [vmem:[%s10664_s1 + $0x8b8] sm:$0xf0] }
 0x230   :  { %v7168_v26 = vld [vmem:[%s10664_s1 + $0xa9c] sm:$0xf]  ;;  %v5791_v18 = vor.u32 %v7104_v62, %v5788_v29  ;;  %3438 = vmatpush.bf16.msrb.mxu0 %v5535_v27  ;;  %v10415_v29 = vpop.f32.mrf.mxu2  ;;  %v7295_v27 = vld [vmem:[%s10667_s3 + $0x10] sm:$0xff] }
 0x231   :  { %v6044_v8 = vld [vmem:[%s10664_s1 + $0xab8] sm:$0xf0] }
 0x232   :  { %v7232_v10 = vld [vmem:[%s10664_s1 + $0xc9c] sm:$0xf]  ;;  %v6047_v5 = vor.u32 %v7168_v26, %v6044_v8  ;;  %3451 = vmatpush.bf16.msrb.mxu1 %v5791_v18  ;;  %v10420_v26 = vpop.f32.mrf.mxu3  ;;  %v7311_v18 = vld [vmem:[%s10667_s3 + $0x90] sm:$0xff] }
 0x233   :  { %v6300_v11 = vld [vmem:[%s10664_s1 + $0xcb8] sm:$0xf0] }
 0x234   :  { %v7032_v19 = vld [vmem:[%s10664_s1 + $0x65c] sm:$0xf]  ;;  %v6303_v50 = vor.u32 %v7232_v10, %v6300_v11  ;;  %3464 = vmatpush.bf16.msrb.mxu2 %v6047_v5  ;;  %v10426_v10 = vld [vmem:[%s10666_s2] sm:$0xff]  ;;  %v3236_v13 = vpop.f32.mrf.mxu0  ;;  %v3249_v5 = vpop.f32.mrf.mxu1 }
 0x235   :  { %v5500_v0 = vld [vmem:[%s10664_s1 + $0x678] sm:$0xf0]  ;;  %v481_v11 = vperm.slane %v10426_v10, 5  ;;  %v6548_v5 = vld [vmem:[#allocation2 + $0x68] sm:$0xf0] }
 0x236   :  { %v7096_v7 = vld [vmem:[%s10664_s1 + $0x85c] sm:$0xf]  ;;  %v5503_v61 = vor.u32 %v7032_v19, %v5500_v0  ;;  %3477 = vmatpush.bf16.msrb.mxu3 %v6303_v50  ;;  %v7319_v19 = vld [vmem:[%s10667_s3 + $0xd0] sm:$0xff]  ;;  %v7294_v50 = vld [vmem:[%s10667_s3 + $0x8] sm:$0xff] }
 0x237   :  { %v5756_v20 = vld [vmem:[%s10664_s1 + $0x878] sm:$0xf0] }
 0x238   :  { %v7160_v22 = vld [vmem:[%s10664_s1 + $0xa5c] sm:$0xf]  ;;  %v5759_v31 = vor.u32 %v7096_v7, %v5756_v20  ;;  %3439 = vmatpush.bf16.msrb.mxu0 %v5503_v61  ;;  %v3222_v7 = vadd.f32 %v10298_v12, %v481_v11  ;;  %v7318_v12 = vld [vmem:[%s10667_s3 + $0xc8] sm:$0xff] }
 0x239   :  { %v6012_v24 = vld [vmem:[%s10664_s1 + $0xa78] sm:$0xf0] }
 0x23a   :  { %v7224_v36 = vld [vmem:[%s10664_s1 + $0xc5c] sm:$0xf]  ;;  %v6015_v6 = vor.u32 %v7160_v22, %v6012_v24  ;;  %3452 = vmatpush.bf16.msrb.mxu1 %v5759_v31  ;;  %v7302_v22 = vld [vmem:[%s10667_s3 + $0x48] sm:$0xff]  ;;  %v3235_v31 = vadd.f32 %v3234_v44, %v3222_v7  ;;  %v7285_v7 = vld [vmem:[#allocation2 + $0x44] sm:$0xf] }
 0x23b   :  { %v6268_v23 = vld [vmem:[%s10664_s1 + $0xc78] sm:$0xf0]  ;;  %v7310_v24 = vld [vmem:[%s10667_s3 + $0x88] sm:$0xff] }
 0x23c   :  { %v7024_v33 = vld [vmem:[%s10664_s1 + $0x61c] sm:$0xf]  ;;  %v6271_v15 = vor.u32 %v7224_v36, %v6268_v23  ;;  %3465 = vmatpush.bf16.msrb.mxu2 %v6015_v6  ;;  %v3262_v36 = vpop.f32.mrf.mxu2  ;;  %v3275_v23 = vpop.f32.mrf.mxu3  ;;  %v7293_v6 = vld [vmem:[%s10667_s3] sm:$0xff] }
 0x23d   :  { %v5468_v25 = vld [vmem:[%s10664_s1 + $0x638] sm:$0xf0] }
 0x23e   :  { %v7088_v3 = vld [vmem:[%s10664_s1 + $0x81c] sm:$0xf]  ;;  %v5471_v42 = vor.u32 %v7024_v33, %v5468_v25  ;;  %3478 = vmatpush.bf16.msrb.mxu3 %v6271_v15  ;;  %v7301_v33 = vld [vmem:[%s10667_s3 + $0x40] sm:$0xff] }
 0x23f   :  { %v5724_v37 = vld [vmem:[%s10664_s1 + $0x838] sm:$0xf0]  ;;  %v7309_v25 = vld [vmem:[%s10667_s3 + $0x80] sm:$0xff] }
 0x240   :  { %v7152_v1 = vld [vmem:[%s10664_s1 + $0xa1c] sm:$0xf]  ;;  %v5727_v57 = vor.u32 %v7088_v3, %v5724_v37  ;;  %3440 = vmatpush.bf16.msrb.mxu0 %v5471_v42  ;;  %v7317_v3 = vld [vmem:[%s10667_s3 + $0xc0] sm:$0xff]  ;;  %v6516_v42 = vld [vmem:[#allocation2 + $0x28] sm:$0xf0] }
 0x241   :  { %v5980_v30 = vld [vmem:[%s10664_s1 + $0xa38] sm:$0xf0]  ;;  %v6508_v37 = vld [vmem:[#allocation2 + $0x20] sm:$0xf0] }
 0x242   :  { %v7216_v14 = vld [vmem:[%s10664_s1 + $0xc1c] sm:$0xf]  ;;  %v5983_v2 = vor.u32 %v7152_v1, %v5980_v30  ;;  %3453 = vmatpush.bf16.msrb.mxu1 %v5727_v57  ;;  %v7282_v1 = vld [vmem:[#allocation2 + $0x24] sm:$0xf0]  ;;  %v6507_v57 = vor.u32 %v7281_v35, %v6506_v43  ;;  %v3299_v44 = vpop.f32.mrf.mxu1  ;;  %v7335_v35 = vld [vmem:[%s10667_s3 + $0x150] sm:$0xff] }
 0x243   :  { %v6236_v40 = vld [vmem:[%s10664_s1 + $0xc38] sm:$0xf0]  ;;  %3441 = vmatmul.bf16.vlgmr.msrb.gmra.mxu0 %v7678_v9  ;;  %v7306_v9 = vld [vmem:[%s10667_s3 + $0x68] sm:$0xff] }
 0x244   :  { %v6239_v45 = vor.u32 %v7216_v14, %v6236_v40  ;;  %v7300_v46 = vld [vmem:[%s10667_s3 + $0x38] sm:$0xff]  ;;  %3466 = vmatpush.bf16.msrb.mxu2 %v5983_v2  ;;  %v3248_v40 = vadd.f32 %v3247_v56, %v3235_v31  ;;  %v7277_v2 = vld [vmem:[#allocation2 + $0x4] sm:$0xf]  ;;  %v7286_v31 = vld [vmem:[#allocation2 + $0x4c] sm:$0xf] }
 0x245   :  { %v7308_v47 = vld [vmem:[%s10667_s3 + $0x78] sm:$0xff]  ;;  %4404 = vmatpush.bf16.msra.mxu0 %v7300_v46  ;;  %3454 = vmatmul.bf16.vlgmr.msrb.gmra.mxu1 %v7857_v38  ;;  %v7314_v38 = vld [vmem:[%s10667_s3 + $0xa8] sm:$0xff]  ;;  %v6511_v46 = vor.u32 %v7277_v2, %v6508_v37 }
 0x246   :  { %v7316_v48 = vld [vmem:[%s10667_s3 + $0xb8] sm:$0xff]  ;;  %3479 = vmatpush.bf16.msrb.mxu3 %v6239_v45  ;;  %4427 = vmatpush.bf16.msra.mxu1 %v7308_v47  ;;  %v6514_v45 = vld [vmem:[#allocation2 + $0x8] sm:$0xf] }
 0x247   :  { %v7324_v28 = vld [vmem:[%s10667_s3 + $0xf8] sm:$0xff]  ;;  %3467 = vmatmul.bf16.vlgmr.msrb.gmra.mxu2 %v7865_v41  ;;  %v3196_v41 = vadd.f32 %v10246_v32, %v3183_v53  ;;  %v7321_v32 = vld [vmem:[%s10667_s3 + $0xe0] sm:$0xff]  ;;  %v6515_v47 = vor.u32 %v7282_v1, %v6514_v45  ;;  %v7334_v43 = vld [vmem:[%s10667_s3 + $0x148] sm:$0xff] }
 0x248   :  { %4450 = vmatpush.bf16.msra.mxu2 %v7316_v48  ;;  %v7296_v59 = vld [vmem:[%s10667_s3 + $0x18] sm:$0xff]  ;;  %v7278_v48 = vld [vmem:[#allocation2 + $0xc] sm:$0xf] }
 0x249   :  { %3480 = vmatmul.bf16.vlgmr.msrb.gmra.mxu3 %v7846_v34  ;;  %4405 = vmatpush.bf16.msra.mxu0 %v7299_v49  ;;  %v7322_v34 = vld [vmem:[%s10667_s3 + $0xe8] sm:$0xff]  ;;  %v10404_v58 = vadd.f32 %v10272_v21, %v3196_v41  ;;  %v7304_v62 = vld [vmem:[%s10667_s3 + $0x58] sm:$0xff]  ;;  %v6519_v49 = vor.u32 %v7278_v48, %v6516_v42  ;;  %v3286_v41 = vpop.f32.mrf.mxu0  ;;  %v7325_v48 = vld [vmem:[%s10667_s3 + $0x100] sm:$0xff] }
 0x24a   :  { %4473 = vmatpush.bf16.msra.mxu3 %v7324_v28  ;;  %4428 = vmatpush.bf16.msra.mxu1 %v7307_v16  ;;  %v7312_v60 = vld [vmem:[%s10667_s3 + $0x98] sm:$0xff]  ;;  %v7331_v28 = vld [vmem:[%s10667_s3 + $0x130] sm:$0xff] }
 0x24b   :  { %v7320_v21 = vld [vmem:[%s10667_s3 + $0xd8] sm:$0xff]  ;;  %v3540_v8 = vmul.f32 0.95, %v10404_v58  ;;  %vm3508_vm4 = vcmp.gt.f32.partialorder %v10404_v58, 1.0  ;;  %v7339_v16 = vld [vmem:[%s10667_s3 + $0x170] sm:$0xff] }
 0x24c   :  { %4451 = vmatpush.bf16.msra.mxu2 %v7315_v51  ;;  %v10448_v20 = vsel %vm3508_vm4, 1.0, %v7365_v63  ;;  %v7332_v15 = vld [vmem:[%s10667_s3 + $0x138] sm:$0xff] }
 0x24d   :  { %4406 = vmatpush.bf16.msra.mxu0 %v7298_v54  ;;  %v3548_v0 = vadd.f32 %v3540_v8, %v10404_v58  ;;  %v7340_v30 = vld [vmem:[%s10667_s3 + $0x178] sm:$0xff]  ;;  %v7330_v54 = vld [vmem:[%s10667_s3 + $0x128] sm:$0xff] }
 0x24e   :  { %4474 = vmatpush.bf16.msra.mxu3 %v7323_v52  ;;  %4429 = vmatpush.bf16.msra.mxu1 %v7306_v9  ;;  %v3261_v52 = vadd.f32 %v10415_v29, %v3248_v40  ;;  %v7338_v9 = vld [vmem:[%s10667_s3 + $0x168] sm:$0xff]  ;;  %v7328_v29 = vld [vmem:[%s10667_s3 + $0x118] sm:$0xff] }
 0x24f   :  { %v3556_v61 = vsub.f32 %v3548_v0, %v10448_v20  ;;  %v7290_v8 = vld [vmem:[#allocation2 + $0x64] sm:$0xf0]  ;;  %v7336_v11 = vld [vmem:[%s10667_s3 + $0x158] sm:$0xff] }
 0x250   :  { %4452 = vmatpush.bf16.msra.mxu2 %v7314_v38  ;;  %v7326_v40 = vld [vmem:[%s10667_s3 + $0x108] sm:$0xff] }
 0x251   :  { %4407 = vmatpush.bf16.msra.mxu0 %v7297_v39  ;;  %v3596_v14 = vmul.f32 0.95, %v3556_v61  ;;  %vm3564_vm5 = vcmp.gt.f32.partialorder %v3556_v61, 1.0  ;;  %v3288_v36 = vpop.f32.mrf.mxu0 }
 0x252   :  { %4475 = vmatpush.bf16.msra.mxu3 %v7322_v34  ;;  %4430 = vmatpush.bf16.msra.mxu1 %v7305_v4  ;;  %v10487_v53 = vsel %vm3564_vm5, 1.0, %v7365_v63  ;;  %v3274_v34 = vadd.f32 %v10420_v26, %v3261_v52  ;;  %v7329_v4 = vld [vmem:[%s10667_s3 + $0x120] sm:$0xff] }
 0x253   :  { %v3604_v51 = vadd.f32 %v3596_v14, %v10404_v58  ;;  %v6540_v26 = vld [vmem:[#allocation2 + $0x60] sm:$0xf0] }
 0x254   :  { %4453 = vmatpush.bf16.msra.mxu2 %v7313_v55  ;;  %v3287_v39 = vadd.f32 %v3286_v41, %v3274_v34  ;;  %v7337_v55 = vld [vmem:[%s10667_s3 + $0x160] sm:$0xff]  ;;  %v6543_v23 = vor.u32 %v7285_v7, %v6540_v26 }
 0x255   :  { %4408 = vmatpush.bf16.msra.mxu0 %v7296_v59  ;;  %v3612_v38 = vsub.f32 %v3604_v51, %v10487_v53  ;;  %v482_v59 = vperm.slane %v10426_v10, 6 }
 0x256   :  { %4476 = vmatpush.bf16.msra.mxu3 %v7321_v32  ;;  %4431 = vmatpush.bf16.msra.mxu1 %v7304_v62  ;;  %v10503_v32 = vadd.f32 %v3299_v44, %v3287_v39 }
 0x257   :  { %v3652_v56 = vmul.f32 0.95, %v3612_v38  ;;  %vm3620_vm7 = vcmp.gt.f32.partialorder %v3612_v38, 1.0 }
 0x258   :  { %4454 = vmatpush.bf16.msra.mxu2 %v7312_v60  ;;  %vm3509_vm6 = vcmp.gt.f32.partialorder %v10503_v32, 1.0  ;;  %v3541_v62 = vmul.f32 0.95, %v10503_v32  ;;  %v7289_v60 = vld [vmem:[#allocation2 + $0x5c] sm:$0xf0] }
 0x259   :  { %4409 = vmatpush.bf16.msra.mxu0 %v7295_v27  ;;  %v3660_v27 = vadd.f32 %v3652_v56, %v10404_v58 }
 0x25a   :  { %4477 = vmatpush.bf16.msra.mxu3 %v7320_v21  ;;  %4432 = vmatpush.bf16.msra.mxu1 %v7303_v17  ;;  %v6469_v21 = vsel %vm3509_vm6, 1.0, %v7365_v63  ;;  %v3549_v17 = vadd.f32 %v3541_v62, %v10503_v32 }
 0x25b   :  { %v3530_v13 = vpack.c.bf16 %v6469_v21, %v10448_v20  ;;  %v7327_v20 = vld [vmem:[%s10667_s3 + $0x110] sm:$0xff] }
 0x25c   :  { %4455 = vmatpush.bf16.msra.mxu2 %v7311_v18  ;;  %v6538_v18 = vld [vmem:[#allocation2 + $0x40] sm:$0xf] }
 0x25d   :  { %4410 = vmatpush.bf16.msra.mxu0 %v7294_v50  ;;  %v6539_v0 = vor.u32 %v7289_v60, %v6538_v18  ;;  %v6546_v50 = vld [vmem:[#allocation2 + $0x48] sm:$0xf]  ;;  %3534 = vst [vmem:[#allocation2 + $0x10] sm:$0xff] %v3530_v13 }
 0x25e   :  { %4478 = vmatpush.bf16.msra.mxu3 %v7319_v19  ;;  %4433 = vmatpush.bf16.msra.mxu1 %v7302_v22  ;;  %v3312_v19 = vpop.f32.mrf.mxu2  ;;  %v6547_v61 = vor.u32 %v7290_v8, %v6546_v50 }
 0x25f   :  { %v3313_v22 = vadd.f32 %v3312_v19, %v482_v59 }
 0x260   :  { %4456 = vmatpush.bf16.msra.mxu2 %v7310_v24  ;;  %v3325_v24 = vpop.f32.mrf.mxu3 }
 0x261   :  { %4411 = vmatpush.bf16.msra.mxu0 %v7293_v6  ;;  %v3301_v6 = vpop.f32.mrf.mxu1 }
 0x262   :  { %4479 = vmatpush.bf16.msra.mxu3 %v7318_v12  ;;  %4434 = vmatpush.bf16.msra.mxu1 %v7301_v33  ;;  %v3557_v12 = vsub.f32 %v3549_v17, %v6469_v21  ;;  %v6484_v33 = vsel %vm3620_vm7, 1.0, %v7365_v63 }
 0x264   :  { %4457 = vmatpush.bf16.msra.mxu2 %v7309_v25  ;;  %4412 = vmatmul.bf16.vlgmr.msra.gmra.mxu0 %v6507_v57  ;;  %v6551_v25 = vor.u32 %v7286_v31, %v6548_v5  ;;  %vm3565_vm8 = vcmp.gt.f32.partialorder %v3557_v12, 1.0  ;;  %v3597_v37 = vmul.f32 0.95, %v3557_v12  ;;  %v6522_v19 = vld [vmem:[#allocation2 + $0x10] sm:$0xf] }
 0x265   :  { %4496 = vmatpush.bf16.msrb.mxu0 %v7332_v15  ;;  %4435 = vmatmul.bf16.vlgmr.msra.gmra.mxu1 %v6511_v46  ;;  %v3668_v15 = vsub.f32 %v3660_v27, %v6484_v33  ;;  %v6477_v1 = vsel %vm3565_vm8, 1.0, %v7365_v63  ;;  %v7279_v50 = vld [vmem:[#allocation2 + $0x14] sm:$0xf]  ;;  %vm4593_vm8 = vcmask 80896  }
 0x266   :  { %4480 = vmatpush.bf16.msra.mxu3 %v7317_v3  ;;  %4519 = vmatpush.bf16.msrb.mxu1 %v7340_v30  ;;  %v10523_v3 = vadd.f32 %v3325_v24, %v3313_v22  ;;  %v3586_v30 = vpack.c.bf16 %v6477_v1, %v10487_v53  ;;  %v3605_v14 = vadd.f32 %v3597_v37, %v10503_v32  ;;  %v3314_v2 = vpop.f32.mrf.mxu2  ;;  %v7347_v37 = vld [vmem:[%s10667_s3 + $0x1b0] sm:$0xff] }
 0x267   :  { %4458 = vmatmul.bf16.vlgmr.msra.gmra.mxu2 %v6515_v47  ;;  %v3708_v42 = vmul.f32 0.95, %v3668_v15  ;;  %v3776_v47 = vld [vmem:[#allocation2 + $0x80] sm:$0xff]  ;;  %vm3676_vm10 = vcmp.gt.f32.partialorder %v3668_v15, 1.0  ;;  %v3338_v27 = vpop.f32.mrf.mxu0 }
 0x268   :  { %3590 = vst [vmem:[#allocation2 + $0x30] sm:$0xff] %v3586_v30  ;;  %v3613_v57 = vsub.f32 %v3605_v14, %v6477_v1  ;;  %v3327_v45 = vpop.f32.mrf.mxu3  ;;  %v3965_v38 = vunpack.c.h.b16 %v3776_v47  ;;  %v6492_v41 = vsel %vm3676_vm10, 1.0, %v7365_v63  ;;  %v7355_v1 = vld [vmem:[%s10667_s3 + $0x1f0] sm:$0xff] }
 0x269   :  { %4481 = vmatmul.bf16.vlgmr.msra.gmra.mxu3 %v6519_v49  ;;  %4497 = vmatpush.bf16.msrb.mxu0 %v7331_v28  ;;  %v3777_v49 = vld [vmem:[#allocation2 + $0x88] sm:$0xff]  ;;  %v3716_v51 = vadd.f32 %v3708_v42, %v10404_v58  ;;  %v3351_v13 = vpop.f32.mrf.mxu1 }
 0x26a   :  { %4520 = vmatpush.bf16.msrb.mxu1 %v7339_v16  ;;  %vm3621_vm9 = vcmp.gt.f32.partialorder %v3613_v57, 1.0  ;;  %v3653_v46 = vmul.f32 0.95, %v3613_v57  ;;  %v7333_v16 = vld [vmem:[%s10667_s3 + $0x140] sm:$0xff]  ;;  %v3966_v34 = vunpack.c.l.b16 %v3777_v49  ;;  %v3967_v39 = vunpack.c.h.b16 %v3777_v49 }
 0x26b   :  { %v6485_v28 = vsel %vm3621_vm9, 1.0, %v7365_v63  ;;  %v3724_v44 = vsub.f32 %v3716_v51, %v6492_v41  ;;  %v3989_v62 = vpack.c.b16 %v3965_v38, %v3965_v38  ;;  %v7345_v57 = vld [vmem:[%s10667_s3 + $0x1a0] sm:$0xff] }
 0x26c   :  { %v3642_v52 = vpack.c.bf16 %v6485_v28, %v6484_v33  ;;  %v3661_v53 = vadd.f32 %v3653_v46, %v10503_v32  ;;  %v3990_v60 = vpack.c.b16 %v3966_v34, %v3966_v34  ;;  %v7348_v33 = vld [vmem:[%s10667_s3 + $0x1b8] sm:$0xff]  ;;  %v7353_v46 = vld [vmem:[%s10667_s3 + $0x1e0] sm:$0xff]  ;;  %v483_v34 = vperm.slane %v10426_v10, 7  ;;  %v7343_v10 = vld [vmem:[%s10667_s3 + $0x190] sm:$0xff] }
 0x26d   :  { %4498 = vmatpush.bf16.msrb.mxu0 %v7330_v54  ;;  %v3964_v54 = vunpack.c.l.b16 %v3776_v47  ;;  %vm3732_vm12 = vcmp.gt.f32.partialorder %v3724_v44, 1.0  ;;  %4542 = vmatpush.bf16.msrb.mxu2 %v7348_v33  ;;  %v7352_v44 = vld [vmem:[%s10667_s3 + $0x1d8] sm:$0xff] }
 0x26e   :  { %4521 = vmatpush.bf16.msrb.mxu1 %v7338_v9  ;;  %3646 = vst [vmem:[#allocation2 + $0x50] sm:$0xff] %v3642_v52  ;;  %v3669_v9 = vsub.f32 %v3661_v53, %v6485_v28  ;;  %v6500_v26 = vsel %vm3732_vm12, 1.0, %v7365_v63 }
 0x26f   :  { %v3988_v56 = vpack.c.b16 %v3964_v54, %v3964_v54  ;;  %v6524_v5 = vld [vmem:[#allocation2 + $0x30] sm:$0xf0] }
 0x270   :  { %vm3677_vm11 = vcmp.gt.f32.partialorder %v3669_v9, 1.0  ;;  %v6527_v24 = vor.u32 %v7279_v50, %v6524_v5 }
 0x271   :  { %4499 = vmatpush.bf16.msrb.mxu0 %v7329_v4  ;;  %v3709_v4 = vmul.f32 0.95, %v3669_v9  ;;  %v3364_v17 = vpop.f32.mrf.mxu2  ;;  %v3353_v22 = vpop.f32.mrf.mxu1  ;;  %4543 = vmatpush.bf16.msrb.mxu2 %v7347_v37 }
 0x272   :  { %4522 = vmatpush.bf16.msrb.mxu1 %v7337_v55  ;;  %v6493_v55 = vsel %vm3677_vm11, 1.0, %v7365_v63 }
 0x273   :  { %v3698_v58 = vpack.c.bf16 %v6493_v55, %v6492_v41  ;;  %v3717_v59 = vadd.f32 %v3709_v4, %v10503_v32  ;;  %v7283_v32 = vld [vmem:[#allocation2 + $0x2c] sm:$0xf0]  ;;  %v3377_v18 = vpop.f32.mrf.mxu3 }
 0x274   :  { %4417 = vmatmul.bf16.gmra.mxu0 %v6539_v0  ;;  %v3340_v0 = vpop.f32.mrf.mxu0  ;;  %v6523_v7 = vor.u32 %v7283_v32, %v6522_v19 }
 0x275   :  { %4500 = vmatpush.bf16.msrb.mxu0 %v7328_v29  ;;  %4440 = vmatmul.bf16.gmra.mxu1 %v6543_v23  ;;  %v3991_v29 = vpack.c.b16 %v3967_v39, %v3967_v39  ;;  %3702 = vst [vmem:[#allocation2 + $0x70] sm:$0xff] %v3698_v58  ;;  %v3725_v21 = vsub.f32 %v3717_v59, %v6493_v55  ;;  %v6554_v31 = vld [vmem:[#allocation2 + $0x50] sm:$0xf]  ;;  %v7287_v6 = vld [vmem:[#allocation2 + $0x54] sm:$0xf]  ;;  %v7344_v39 = vld [vmem:[%s10667_s3 + $0x198] sm:$0xff] }
 0x276   :  { %4523 = vmatpush.bf16.msrb.mxu1 %v7336_v11  ;;  %v7351_v58 = vld [vmem:[%s10667_s3 + $0x1d0] sm:$0xff] }
 0x277   :  { %4463 = vmatmul.bf16.gmra.mxu2 %v6547_v61  ;;  %vm3733_vm13 = vcmp.gt.f32.partialorder %v3725_v21, 1.0 }
 0x278   :  { %v6501_v8 = vsel %vm3733_vm13, 1.0, %v7365_v63 }
 0x279   :  { %4486 = vmatmul.bf16.gmra.mxu3 %v6551_v25  ;;  %4501 = vmatpush.bf16.msrb.mxu0 %v7327_v20  ;;  %v3754_v11 = vpack.c.bf16 %v6501_v8, %v6500_v26  ;;  %v3366_v36 = vpop.f32.mrf.mxu2  ;;  %v7356_v25 = vld [vmem:[%s10667_s3 + $0x1f8] sm:$0xff] }
 0x27a   :  { %4524 = vmatpush.bf16.msrb.mxu1 %v7335_v35  ;;  %v3339_v35 = vadd.f32 %v3338_v27, %v10523_v3  ;;  %4565 = vmatpush.bf16.msrb.mxu3 %v7356_v25  ;;  %v7346_v3 = vld [vmem:[%s10667_s3 + $0x1a8] sm:$0xff] }
 0x27b   :  { %v3379_v12 = vpop.f32.mrf.mxu3  ;;  %4544 = vmatpush.bf16.msrb.mxu2 %v7346_v3  ;;  %v3968_v47 = vunpack.c.l.b16 %v3754_v11  ;;  %v3969_v49 = vunpack.c.h.b16 %v3754_v11 }
 0x27c   :  { %v7291_v23 = vld [vmem:[#allocation2 + $0x6c] sm:$0xf0]  ;;  %v6556_v61 = vld [vmem:[#allocation2 + $0x70] sm:$0xf0]  ;;  %v3352_v14 = vadd.f32 %v3351_v13, %v3339_v35  ;;  %v7341_v13 = vld [vmem:[%s10667_s3 + $0x180] sm:$0xff] }
 0x27d   :  { %4502 = vmatpush.bf16.msrb.mxu0 %v7326_v40  ;;  %v6555_v20 = vor.u32 %v7291_v23, %v6554_v31  ;;  %v6559_v15 = vor.u32 %v7287_v6, %v6556_v61  ;;  %v3992_v52 = vpack.c.b16 %v3968_v47, %v3968_v47  ;;  %v3993_v53 = vpack.c.b16 %v3969_v49, %v3969_v49 }
 0x27e   :  { %4525 = vmatpush.bf16.msrb.mxu1 %v7334_v43  ;;  %4566 = vmatpush.bf16.msrb.mxu3 %v7355_v1  ;;  %v7354_v43 = vld [vmem:[%s10667_s3 + $0x1e8] sm:$0xff]  ;;  %v3365_v42 = vadd.f32 %v3364_v17, %v3352_v14  ;;  %v7349_v17 = vld [vmem:[%s10667_s3 + $0x1c0] sm:$0xff] }
 0x27f   :  { %4545 = vmatpush.bf16.msrb.mxu2 %v7345_v57 }
 0x280   :  { %v3378_v28 = vadd.f32 %v3377_v18, %v3365_v42 }
 0x281   :  { %4503 = vmatpush.bf16.msrb.mxu0 %v7325_v48 }
 0x282   :  { %4526 = vmatpush.bf16.msrb.mxu1 %v7333_v16  ;;  %4567 = vmatpush.bf16.msrb.mxu3 %v7354_v43 }
 0x283   :  { %4546 = vmatpush.bf16.msrb.mxu2 %v7344_v39 }
 0x284   :  { %4422 = vmatmul.bf16.gmra.mxu0 %v3988_v56 }
 0x285   :  { %4445 = vmatmul.bf16.gmra.mxu1 %v3989_v62 }
 0x286   :  { %4568 = vmatpush.bf16.msrb.mxu3 %v7353_v46  ;;  %v10618_v46 = vld [vmem:[%s10668_s4] ss:$0 sm:$0xff] }
 0x287   :  { %4468 = vmatmul.bf16.gmra.mxu2 %v3990_v60  ;;  %v7342_v60 = vld [vmem:[%s10667_s3 + $0x188] sm:$0xff] }
 0x288   :  { %4547 = vmatpush.bf16.msrb.mxu2 %v7343_v10 }
 0x289   :  { %4491 = vmatmul.bf16.gmra.mxu3 %v3991_v29  ;;  %v3403_v40 = vpop.f32.mrf.mxu1  ;;  %v7350_v29 = vld [vmem:[%s10667_s3 + $0x1c8] sm:$0xff] }
 0x28a   :  { %v3404_v55 = vadd.f32 %v3403_v40, %v483_v34  ;;  %4569 = vmatpush.bf16.msrb.mxu3 %v7352_v44 }
 0x28b   :  { %v3390_v30 = vpop.f32.mrf.mxu0 }
 0x28c   :  { %v10576_v51 = vadd.f32 %v3390_v30, %v3378_v28  ;;  %4548 = vmatpush.bf16.msrb.mxu2 %v7342_v60 }
 0x28e   :  { %v3542_v54 = vmul.f32 0.95, %v10576_v51  ;;  %vm3510_vm14 = vcmp.gt.f32.partialorder %v10576_v51, 1.0  ;;  %4570 = vmatpush.bf16.msrb.mxu3 %v7351_v58 }
 0x28f   :  { %v6470_v4 = vsel %vm3510_vm14, 1.0, %v7365_v63  ;;  %vm4606_vm14 = vcmask 162896  }
 0x290   :  { %v3550_v41 = vadd.f32 %v3542_v54, %v10576_v51  ;;  %4549 = vmatpush.bf16.msrb.mxu2 %v7341_v13 }
 0x291   :  { %v3416_v2 = vpop.f32.mrf.mxu2  ;;  %v3405_v16 = vpop.f32.mrf.mxu1 }
 0x292   :  { %v3558_v56 = vsub.f32 %v3550_v41, %v6470_v4  ;;  %v3417_v59 = vadd.f32 %v3416_v2, %v3404_v55  ;;  %4571 = vmatpush.bf16.msrb.mxu3 %v7350_v29 }
 0x293   :  { %v3429_v45 = vpop.f32.mrf.mxu3  ;;  %v3392_v48 = vpop.f32.mrf.mxu0 }
 0x294   :  { %4504 = vmatmul.bf16.vlgmr.msrb.gmra.mxu0 %v6523_v7  ;;  %v3598_v62 = vmul.f32 0.95, %v3558_v56  ;;  %v3430_v21 = vadd.f32 %v3429_v45, %v3417_v59  ;;  %vm3566_vm15 = vcmp.gt.f32.partialorder %v3558_v56, 1.0 }
 0x295   :  { %4527 = vmatmul.bf16.vlgmr.msrb.gmra.mxu1 %v6527_v24  ;;  %v6478_v32 = vsel %vm3566_vm15, 1.0, %v7365_v63  ;;  %vm4623_vm15 = vcmask 244896  }
 0x296   :  { %v3606_v8 = vadd.f32 %v3598_v62, %v10576_v51  ;;  %4572 = vmatpush.bf16.msrb.mxu3 %v7349_v17 }
 0x298   :  { %v3614_v18 = vsub.f32 %v3606_v8, %v6478_v32 }
 0x299   :  { %v3418_v9 = vpop.f32.mrf.mxu2 }
 0x29a   :  { %v3654_v22 = vmul.f32 0.95, %v3614_v18  ;;  %vm3622_vm1 = vcmp.gt.f32.partialorder %v3614_v18, 1.0 }
 0x29b   :  { %v3431_v38 = vpop.f32.mrf.mxu3  ;;  %v6486_v33 = vsel %vm3622_vm1, 1.0, %v7365_v63  ;;  %vm4657_vm1 = vcmask 408896  }
 0x29c   :  { %v3662_v23 = vadd.f32 %v3654_v22, %v10576_v51 }
 0x2a4   :  { %4509 = vmatmul.bf16.gmra.mxu0 %v6555_v20 }
 0x2a5   :  { %4532 = vmatmul.bf16.gmra.mxu1 %v6559_v15  ;;  %v3670_v15 = vsub.f32 %v3662_v23, %v6486_v33 }
 0x2a7   :  { %v3710_v40 = vmul.f32 0.95, %v3670_v15  ;;  %vm3678_vm4 = vcmp.gt.f32.partialorder %v3670_v15, 1.0 }
 0x2a8   :  { %v6494_v47 = vsel %vm3678_vm4, 1.0, %v7365_v63 }
 0x2a9   :  { %v3718_v42 = vadd.f32 %v3710_v40, %v10576_v51 }
 0x2ab   :  { %v3726_v28 = vsub.f32 %v3718_v42, %v6494_v47 }
 0x2ad   :  { %vm3734_vm6 = vcmp.gt.f32.partialorder %v3726_v28, 1.0 }
 0x2ae   :  { %v6502_v58 = vsel %vm3734_vm6, 1.0, %v7365_v63 }
 0x2b4   :  { %4514 = vmatmul.bf16.gmra.mxu0 %v3992_v52 }
 0x2b5   :  { %4537 = vmatmul.bf16.gmra.mxu1 %v3993_v53 }
 0x2c0   :  { %v3442_v26 = vpop.f32.mrf.mxu0 }
 0x2c1   :  { %v3443_v27 = vadd.f32 %v3442_v26, %v3430_v21 }
 0x2c2   :  { %v3455_v11 = vpop.f32.mrf.mxu1 }
 0x2c3   :  { %v3456_v5 = vadd.f32 %v3455_v11, %v3443_v27 }
 0x2c8   :  { %v3444_v50 = vpop.f32.mrf.mxu0 }
 0x2ca   :  { %v3468_v19 = vpop.f32.mrf.mxu2  ;;  %v3457_v24 = vpop.f32.mrf.mxu1 }
 0x2cb   :  { %v3469_v0 = vadd.f32 %v3468_v19, %v3456_v5 }
 0x2cc   :  { %v3481_v7 = vpop.f32.mrf.mxu3 }
 0x2cd   :  { %v3482_v36 = vadd.f32 %v3481_v7, %v3469_v0 }
 0x2cf   :  { %vm3511_vm0 = vcmp.gt.f32.partialorder %v3482_v36, 1.0  ;;  %v3543_v12 = vmul.f32 0.95, %v3482_v36 }
 0x2d0   :  { %v6471_v61 = vsel %vm3511_vm0, 1.0, %v7365_v63  ;;  %vm4640_vm0 = vcmask 326896  }
 0x2d1   :  { %v3531_v31 = vpack.c.bf16 %v6471_v61, %v6470_v4  ;;  %v3551_v20 = vadd.f32 %v3543_v12, %v3482_v36 }
 0x2d2   :  { %v3470_v6 = vpop.f32.mrf.mxu2 }
 0x2d3   :  { %3535 = vst [vmem:[#allocation2 + $0x18] sm:$0xff] %v3531_v31  ;;  %v3559_v25 = vsub.f32 %v3551_v20, %v6471_v61 }
 0x2d4   :  { %v3483_v35 = vpop.f32.mrf.mxu3 }
 0x2d5   :  { %vm3567_vm2 = vcmp.gt.f32.partialorder %v3559_v25, 1.0  ;;  %v3599_v37 = vmul.f32 0.95, %v3559_v25 }
 0x2d6   :  { %v6479_v1 = vsel %vm3567_vm2, 1.0, %v7365_v63 }
 0x2d7   :  { %v3587_v30 = vpack.c.bf16 %v6479_v1, %v6478_v32  ;;  %v3607_v14 = vadd.f32 %v3599_v37, %v3482_v36 }
 0x2d9   :  { %3591 = vst [vmem:[#allocation2 + $0x38] sm:$0xff] %v3587_v30  ;;  %v3615_v3 = vsub.f32 %v3607_v14, %v6479_v1 }
 0x2da   :  { %v6530_v16 = vld [vmem:[#allocation2 + $0x18] sm:$0xf]  ;;  %v7280_v34 = vld [vmem:[#allocation2 + $0x1c] sm:$0xf] }
 0x2db   :  { %vm3623_vm3 = vcmp.gt.f32.partialorder %v3615_v3, 1.0  ;;  %v3655_v43 = vmul.f32 0.95, %v3615_v3 }
 0x2dc   :  { %v6487_v57 = vsel %vm3623_vm3, 1.0, %v7365_v63 }
 0x2dd   :  { %v3643_v2 = vpack.c.bf16 %v6487_v57, %v6486_v33  ;;  %v3663_v45 = vadd.f32 %v3655_v43, %v3482_v36 }
 0x2df   :  { %3647 = vst [vmem:[#allocation2 + $0x58] sm:$0xff] %v3643_v2  ;;  %v3671_v48 = vsub.f32 %v3663_v45, %v6487_v57 }
 0x2e0   :  { %v7284_v52 = vld [vmem:[#allocation2 + $0x34] sm:$0xf0]  ;;  %v6532_v53 = vld [vmem:[#allocation2 + $0x38] sm:$0xf0] }
 0x2e1   :  { %v4413_v49 = vpop.f32.mrf.mxu0  ;;  %vm3679_vm5 = vcmp.gt.f32.partialorder %v3671_v48, 1.0  ;;  %v3711_v51 = vmul.f32 0.95, %v3671_v48  ;;  %v6531_v38 = vor.u32 %v7284_v52, %v6530_v16  ;;  %v6535_v39 = vor.u32 %v7280_v34, %v6532_v53 }
 0x2e2   :  { %v4414_v54 = vadd.f32 %v10618_v46, %v4413_v49  ;;  %v4436_v9 = vpop.f32.mrf.mxu1  ;;  %v6495_v41 = vsel %vm3679_vm5, 1.0, %v7365_v63 }
 0x2e3   :  { %v3699_v44 = vpack.c.bf16 %v6495_v41, %v6494_v47  ;;  %v3719_v4 = vadd.f32 %v3711_v51, %v3482_v36  ;;  %4550 = vmatmul.bf16.vlgmr.msrb.gmra.mxu2 %v6531_v38  ;;  %4573 = vmatmul.bf16.vlgmr.msrb.gmra.mxu3 %v6535_v39 }
 0x2e4   :  { %v4437_v55 = vadd.f32 %v4436_v9, %v4414_v54 }
 0x2e5   :  { %3703 = vst [vmem:[#allocation2 + $0x78] sm:$0xff] %v3699_v44  ;;  %v3727_v56 = vsub.f32 %v3719_v4, %v6495_v41 }
 0x2e6   :  { %v6562_v0 = vld [vmem:[#allocation2 + $0x58] sm:$0xf]  ;;  %v7288_v24 = vld [vmem:[#allocation2 + $0x5c] sm:$0xf] }
 0x2e7   :  { %vm3735_vm7 = vcmp.gt.f32.partialorder %v3727_v56, 1.0 }
 0x2e8   :  { %v6503_v59 = vsel %vm3735_vm7, 1.0, %v7365_v63 }
 0x2e9   :  { %v4415_v29 = vpop.f32.mrf.mxu0  ;;  %v3755_v21 = vpack.c.bf16 %v6503_v59, %v6502_v58 }
 0x2ea   :  { %v4459_v10 = vpop.f32.mrf.mxu2  ;;  %v4416_v26 = vadd.f32 %v10618_v46, %v4415_v29  ;;  %v4438_v8 = vpop.f32.mrf.mxu1 }
 0x2eb   :  { %v4460_v62 = vadd.f32 %v4459_v10, %v4437_v55  ;;  %v3970_v37 = vunpack.c.l.b16 %v3755_v21  ;;  %v3971_v1 = vunpack.c.h.b16 %v3755_v21 }
 0x2ec   :  { %v4482_v60 = vpop.f32.mrf.mxu3  ;;  %v4439_v27 = vadd.f32 %v4438_v8, %v4416_v26  ;;  %v7292_v13 = vld [vmem:[#allocation2 + $0x74] sm:$0xf0]  ;;  %v6564_v32 = vld [vmem:[#allocation2 + $0x78] sm:$0xf0] }
 0x2ed   :  { %v4483_v11 = vadd.f32 %v4482_v60, %v4460_v62  ;;  %v6563_v22 = vor.u32 %v7292_v13, %v6562_v0  ;;  %v6567_v12 = vor.u32 %v7288_v24, %v6564_v32  ;;  %v3994_v57 = vpack.c.b16 %v3970_v37, %v3970_v37 }
 0x2ee   :  { %v3995_v45 = vpack.c.b16 %v3971_v1, %v3971_v1 }
 0x2f1   :  { %v4418_v19 = vpop.f32.mrf.mxu0 }
 0x2f2   :  { %v4461_v17 = vpop.f32.mrf.mxu2  ;;  %v4419_v7 = vadd.f32 %v10618_v46, %v4418_v19  ;;  %v4441_v50 = vpop.f32.mrf.mxu1 }
 0x2f3   :  { %v4462_v18 = vadd.f32 %v4461_v17, %v4439_v27  ;;  %4555 = vmatmul.bf16.gmra.mxu2 %v6563_v22  ;;  %4578 = vmatmul.bf16.gmra.mxu3 %v6567_v12 }
 0x2f4   :  { %v4484_v5 = vpop.f32.mrf.mxu3  ;;  %v4442_v23 = vadd.f32 %v4441_v50, %v4419_v7 }
 0x2f5   :  { %v4485_v36 = vadd.f32 %v4484_v5, %v4462_v18 }
 0x2f9   :  { %v4420_v6 = vpop.f32.mrf.mxu0 }
 0x2fa   :  { %v4464_v61 = vpop.f32.mrf.mxu2  ;;  %v4421_v33 = vadd.f32 %v10618_v46, %v4420_v6  ;;  %v4443_v25 = vpop.f32.mrf.mxu1 }
 0x2fb   :  { %v4465_v31 = vadd.f32 %v4464_v61, %v4442_v23 }
 0x2fc   :  { %v4487_v20 = vpop.f32.mrf.mxu3  ;;  %v4444_v15 = vadd.f32 %v4443_v25, %v4421_v33 }
 0x2fd   :  { %v4488_v35 = vadd.f32 %v4487_v20, %v4465_v31 }
 0x301   :  { %v4423_v3 = vpop.f32.mrf.mxu0 }
 0x302   :  { %v4466_v30 = vpop.f32.mrf.mxu2  ;;  %v4424_v43 = vadd.f32 %v10618_v46, %v4423_v3  ;;  %v4446_v42 = vpop.f32.mrf.mxu1 }
 0x303   :  { %v4467_v14 = vadd.f32 %v4466_v30, %v4444_v15  ;;  %4560 = vmatmul.bf16.gmra.mxu2 %v3994_v57  ;;  %4583 = vmatmul.bf16.gmra.mxu3 %v3995_v45 }
 0x304   :  { %v4489_v40 = vpop.f32.mrf.mxu3  ;;  %v4447_v47 = vadd.f32 %v4446_v42, %v4424_v43 }
 0x305   :  { %v4490_v2 = vadd.f32 %v4489_v40, %v4467_v14 }
 0x309   :  { %v4425_v16 = vpop.f32.mrf.mxu0 }
 0x30a   :  { %v4469_v48 = vpop.f32.mrf.mxu2  ;;  %v4448_v52 = vpop.f32.mrf.mxu1 }
 0x30b   :  { %v4470_v28 = vadd.f32 %v4469_v48, %v4447_v47 }
 0x30c   :  { %v4492_v49 = vpop.f32.mrf.mxu3 }
 0x30d   :  { %v4493_v53 = vadd.f32 %v4492_v49, %v4470_v28 }
 0x311   :  { %v4505_v9 = vpop.f32.mrf.mxu0 }
 0x312   :  { %v4471_v51 = vpop.f32.mrf.mxu2  ;;  %v4506_v38 = vadd.f32 %v4505_v9, %v4483_v11  ;;  %v4528_v34 = vpop.f32.mrf.mxu1 }
 0x314   :  { %v4494_v54 = vpop.f32.mrf.mxu3  ;;  %v4529_v41 = vadd.f32 %v4528_v34, %v4506_v38 }
 0x319   :  { %v4507_v46 = vpop.f32.mrf.mxu0 }
 0x31a   :  { %v4508_v39 = vadd.f32 %v4507_v46, %v4485_v36  ;;  %v4530_v44 = vpop.f32.mrf.mxu1 }
 0x31c   :  { %v4531_v4 = vadd.f32 %v4530_v44, %v4508_v39 }
 0x321   :  { %v4510_v55 = vpop.f32.mrf.mxu0 }
 0x322   :  { %v4511_v56 = vadd.f32 %v4510_v55, %v4488_v35  ;;  %v4533_v10 = vpop.f32.mrf.mxu1 }
 0x324   :  { %v4534_v58 = vadd.f32 %v4533_v10, %v4511_v56 }
 0x329   :  { %v4512_v59 = vpop.f32.mrf.mxu0 }
 0x32a   :  { %v4513_v62 = vadd.f32 %v4512_v59, %v4490_v2  ;;  %v4535_v60 = vpop.f32.mrf.mxu1 }
 0x32c   :  { %v4536_v29 = vadd.f32 %v4535_v60, %v4513_v62 }
 0x331   :  { %v4515_v21 = vpop.f32.mrf.mxu0 }
 0x332   :  { %v4516_v26 = vadd.f32 %v4515_v21, %v4493_v53  ;;  %v4538_v8 = vpop.f32.mrf.mxu1 }
 0x334   :  { %v4539_v27 = vadd.f32 %v4538_v8, %v4516_v26 }
 0x339   :  { %v4517_v13 = vpop.f32.mrf.mxu0 }
 0x33a   :  { %v4540_v11 = vpop.f32.mrf.mxu1 }
 0x366   :  { %v4551_v17 = vpop.f32.mrf.mxu2  ;;  %v4574_v18 = vpop.f32.mrf.mxu3 }
 0x367   :  { %v4552_v32 = vadd.f32 %v4551_v17, %v4529_v41 }
 0x369   :  { %v4575_v5 = vadd.f32 %v4574_v18, %v4552_v32 }
 0x36b   :  { %vm4590_vm9 = vcmp.gt.f32.partialorder %v4575_v5, 1.0  ;;  %4595 = vst.msk [vmem:[%s10669_s6] sm:$0xff] %vm4593_vm8, %v4575_v5  ;;  %v4596_v24 = vmul.f32 0.95, %v4575_v5 }
 0x36c   :  { %v6824_v19 = vsel %vm4590_vm9, 1.0, %v7365_v63 }
 0x36d   :  { %4594 = vst.msk [vmem:[%s10670_s5] sm:$0xff] %vm4593_vm8, %v6824_v19 }
 0x36e   :  { %v4553_v0 = vpop.f32.mrf.mxu2  ;;  %v4576_v50 = vpop.f32.mrf.mxu3 }
 0x36f   :  { %v4554_v7 = vadd.f32 %v4553_v0, %v4531_v4 }
 0x371   :  { %v4577_v22 = vadd.f32 %v4576_v50, %v4554_v7 }
 0x373   :  { %v4597_v36 = vadd.f32 %v4596_v24, %v4577_v22 }
 0x375   :  { %v4598_v12 = vsub.f32 %v4597_v36, %v6824_v19 }
 0x376   :  { %v4556_v23 = vpop.f32.mrf.mxu2  ;;  %v4579_v31 = vpop.f32.mrf.mxu3 }
 0x377   :  { %v4557_v61 = vadd.f32 %v4556_v23, %v4534_v58  ;;  %4609 = vrot.lane.b32.xlu0 %v4598_v12, %s7366_s11  ;;  %v4613_v6 = vmul.f32 0.95, %v4598_v12  ;;  %vm4599_vm10 = vcmp.gt.f32.partialorder %v4598_v12, 1.0 }
 0x378   :  { %v6825_v25 = vsel %vm4599_vm10, 1.0, %v7365_v63 }
 0x379   :  { %v4580_v20 = vadd.f32 %v4579_v31, %v4557_v61 }
 0x37b   :  { %v4614_v33 = vadd.f32 %v4613_v6, %v4580_v20 }
 0x37d   :  { %v4615_v35 = vsub.f32 %v4614_v33, %v6825_v25 }
 0x37e   :  { %v4558_v15 = vpop.f32.mrf.mxu2  ;;  %v4581_v1 = vpop.f32.mrf.mxu3 }
 0x37f   :  { %v4559_v37 = vadd.f32 %v4558_v15, %v4536_v29  ;;  %4603 = vrot.lane.b32.xlu0 %v6825_v25, %s7366_s11  ;;  %4626 = vrot.lane.b32.xlu1 %v4615_v35, %s7367_s12  ;;  %v4630_v14 = vmul.f32 0.95, %v4615_v35  ;;  %vm4616_vm11 = vcmp.gt.f32.partialorder %v4615_v35, 1.0 }
 0x380   :  { %v6826_v3 = vsel %vm4616_vm11, 1.0, %v7365_v63 }
 0x381   :  { %v4582_v30 = vadd.f32 %v4581_v1, %v4559_v37 }
 0x383   :  { %v4631_v40 = vadd.f32 %v4630_v14, %v4582_v30 }
 0x385   :  { %v4632_v43 = vsub.f32 %v4631_v40, %v6826_v3 }
 0x386   :  { %v4561_v42 = vpop.f32.mrf.mxu2  ;;  %v4584_v2 = vpop.f32.mrf.mxu3 }
 0x387   :  { %v4562_v57 = vadd.f32 %v4561_v42, %v4539_v27  ;;  %4620 = vrot.lane.b32.xlu1 %v6826_v3, %s7367_s12  ;;  %vm4633_vm12 = vcmp.gt.f32.partialorder %v4632_v43, 1.0  ;;  %v4647_v48 = vmul.f32 0.95, %v4632_v43 }
 0x388   :  { %v6827_v45 = vsel %vm4633_vm12, 1.0, %v7365_v63 }
 0x389   :  { %v4585_v47 = vadd.f32 %v4584_v2, %v4562_v57  ;;  %4637 = vrot.lane.b32.xlu2 %v6827_v45, %s7368_s13 }
 0x38b   :  { %v4648_v28 = vadd.f32 %v4647_v48, %v4585_v47 }
 0x38d   :  { %v4649_v49 = vsub.f32 %v4648_v28, %v6827_v45 }
 0x38e   :  { %v4563_v16 = vpop.f32.mrf.mxu2  ;;  %v4586_v52 = vpop.f32.mrf.mxu3 }
 0x38f   :  { %4660 = vrot.lane.b32.xlu1 %v4649_v49, %s7369_s14  ;;  %vm4650_vm13 = vcmp.gt.f32.partialorder %v4649_v49, 1.0 }
 0x390   :  { %v6828_v53 = vsel %vm4650_vm13, 1.0, %v7365_v63 }
 0x391   :  { %4643 = vrot.lane.b32.xlu2 %v4632_v43, %s7368_s13  ;;  %4654 = vrot.lane.b32.xlu0 %v6828_v53, %s7369_s14 }
 0x3e3   :  { %v4638_v51 = vpop.permute.xlu2 %4637 }
 0x3e9   :  { %v4610_v54 = vpop.permute.xlu0 %4609 }
 0x3ea   :  { %4612 = vst.msk [vmem:[%s10669_s6] sm:$0xff] %vm4606_vm14, %v4610_v54 }
 0x3eb   :  { %v4644_v34 = vpop.permute.xlu2 %4643 }
 0x3f1   :  { %v4604_v9 = vpop.permute.xlu0 %4603  ;;  %v4627_v38 = vpop.permute.xlu1 %4626 }
 0x3f2   :  { %4607 = vst.msk [vmem:[%s10670_s5] sm:$0xff] %vm4606_vm14, %v4604_v9 }
 0x3f3   :  { %4629 = vst.msk [vmem:[%s10669_s6] sm:$0xff] %vm4623_vm15, %v4627_v38 }
 0x3f4   :  { %4646 = vst.msk [vmem:[%s10669_s6] sm:$0xff] %vm4640_vm0, %v4644_v34 }
 0x3f9   :  { %v4621_v63 = vpop.permute.xlu1 %4620 }
 0x3fa   :  { %4624 = vst.msk [vmem:[%s10670_s5] sm:$0xff] %vm4623_vm15, %v4621_v63 }
 0x3fb   :  { %4641 = vst.msk [vmem:[%s10670_s5] sm:$0xff] %vm4640_vm0, %v4638_v51 }
 0x401   :  { %v4661_v41 = vpop.permute.xlu1 %4660 }
 0x402   :  { %4663 = vst.msk [vmem:[%s10669_s6] sm:$0xff] %vm4657_vm1, %v4661_v41 }
 0x403   :  { %v4655_v46 = vpop.permute.xlu0 %4654 }
 0x404   :  { %4658 = vst.msk [vmem:[%s10670_s5] sm:$0xff] %vm4657_vm1, %v4655_v46 }

</bundles_post_ra>
